<compile_context>
chip_gen: v5e
topology: v5e:2x2
jax: 0.10.0
libtpu: 0.0.40
codegen_flags: <defaults>
</compile_context>

<pallas_src>
import math
import functools

import jax
import jax.numpy as jnp
from jax.experimental import pallas as pl
from jax.experimental import pallas as _pl_unused  # noqa: F401
from jax.experimental.pallas import tpu as pltpu   # reserved for scale-up TODO (CompilerParams)

# ----------------------------- config ---------------------------------------
VOCAB_SIZE = 64
BLOCK_SIZE = 16          # max sequence length
N_LAYER = 2
N_HEAD = 4
N_EMBD = 32
HEAD_DIM = N_EMBD // N_HEAD
LN_EPS = 1e-5
LM_PAD = 128             # lane-dense (multiple of 128) slab width

# ---- vector-slab row layout (all rows are 128 lanes, zero-padded) -----------
NUM_LN = 2 * N_LAYER + 1
ROW_LNW = 0                       # LayerNorm weights   [0 .. NUM_LN)
ROW_LNB = NUM_LN                  # LayerNorm biases    [NUM_LN .. 2*NUM_LN)
ROW_BFC = 2 * NUM_LN              # MLP c_fc biases     (one row per layer)
ROW_BAP = ROW_BFC + N_LAYER       # attn c_proj biases
ROW_BMP = ROW_BAP + N_LAYER       # MLP c_proj biases
VEC_ROWS = ROW_BMP + N_LAYER

# ---- matrix-slab row layout (all rows are 128 lanes, zero-padded) -----------
# per layer: [w_fc (C rows) | w_mlp_proj^T (C rows) | w_attn_proj (C rows)]
MAT_PER_LAYER = 3 * N_EMBD
ROW_LM = N_LAYER * MAT_PER_LAYER  # tied lm_head (wte^T), C rows
MAT_ROWS = ROW_LM + N_EMBD


# --------------------------- kernel helpers ----------------------------------
def _gelu_exact(x):
    # nn.GELU() default: exact erf-based GELU.
    return 0.5 * x * (1.0 + jax.lax.erf(x * (1.0 / math.sqrt(2.0))))


# ------------------------- fused full-forward kernel -------------------------
def gpt_kernel(n_layer, n_head, batch, seq,
               x_ref,        # (B*T, C)   token+pos embeddings
               bias_ref,     # (B*T, B*T) additive causal/block-diag mask (0 / -1e30)
               vec_ref,      # (VEC_ROWS, 128)  LN params + all biases
               wqkv_ref,     # (L, 3, H, C, hd) head-major qkv weights (q pre-scaled)
               bqkv_ref,     # (L, 3, H, hd)    head-major qkv biases  (q pre-scaled)
               mat_ref,      # (MAT_ROWS, 128)  w_fc | w_mlp_proj^T | w_attn_proj | lm_head
               out_ref):     # (B, LM_PAD) logits (padded)
    BT, C = x_ref.shape
    hd = C // n_head

    x = x_ref[...]                     # activations stay on-chip for the whole net
    bias2d = bias_ref[...]             # additive mask, hoisted out of all loops
    vec = vec_ref[...]                 # small lane-dense slab of vectors

    def ln(z, idx):
        w = vec[ROW_LNW + idx, :C]
        b = vec[ROW_LNB + idx, :C]
        mu = jnp.mean(z, axis=-1, keepdims=True)
        var = jnp.mean((z - mu) ** 2, axis=-1, keepdims=True)
        return (z - mu) * jax.lax.rsqrt(var + LN_EPS) * w + b

    for l in range(n_layer):           # static unroll over layers
        base = l * MAT_PER_LAYER

        # ---------------- attention branch ----------------
        h = ln(x, 2 * l)
        bq = bqkv_ref[l, 0]            # (H, hd)
        bk = bqkv_ref[l, 1]
        bv = bqkv_ref[l, 2]

        y_heads = []
        for i in range(n_head):        # static unroll over heads
            # head split done on the weight side -> no lane slicing of activations
            qh = jnp.dot(h, wqkv_ref[l, 0, i],
                         preferred_element_type=jnp.float32) + bq[i]      # (BT, hd)
            kh = jnp.dot(h, wqkv_ref[l, 1, i],
                         preferred_element_type=jnp.float32) + bk[i]
            vh = jnp.dot(h, wqkv_ref[l, 2, i],
                         preferred_element_type=jnp.float32) + bv[i]

            # q is pre-scaled by 1/sqrt(hd); scores = q @ k^T (contract last dims)
            s = jax.lax.dot_general(qh, kh, (((1,), (1,)), ((), ())),
                                    preferred_element_type=jnp.float32)    # (BT, BT)
            s = s + bias2d
            s = s - jnp.max(s, axis=-1, keepdims=True)
            p = jnp.exp(s)
            p = p * (1.0 / jnp.sum(p, axis=-1, keepdims=True))             # exact
            y_heads.append(jnp.dot(p, vh,
                                   preferred_element_type=jnp.float32))    # (BT, hd)

        # single K=C contraction for the output projection
        y_cat = jnp.concatenate(y_heads, axis=-1)                          # (BT, C)
        wproj = mat_ref[base + 2 * C: base + 3 * C, :C]                    # (C, C)
        y = jnp.dot(y_cat, wproj, preferred_element_type=jnp.float32)
        x = x + y + vec[ROW_BAP + l, :C]

        # ---------------- MLP branch ----------------
        h2 = ln(x, 2 * l + 1)
        wfc = mat_ref[base: base + C, :]                                   # (C, 4C)
        hfc = jnp.dot(h2, wfc, preferred_element_type=jnp.float32) + vec[ROW_BFC + l, :]
        hfc = _gelu_exact(hfc)
        wmoT = mat_ref[base + C: base + 2 * C, :]                          # (C, 4C) = w_mlp_proj^T
        m = jax.lax.dot_general(hfc, wmoT, (((1,), (1,)), ((), ())),
                                preferred_element_type=jnp.float32)        # (BT, C)
        x = x + m + vec[ROW_BMP + l, :C]

    # ---- final LayerNorm + lm_head on the last token of each sequence ----
    x_last = x.reshape(batch, seq, C)[:, seq - 1, :]                       # (B, C)
    hN = ln(x_last, 2 * n_layer)
    wlm = mat_ref[ROW_LM: ROW_LM + C, :]                                   # (C, LM_PAD)
    out_ref[...] = jnp.dot(hN, wlm, preferred_element_type=jnp.float32)    # lane-dense store


def _full_spec(shape):
    nd = len(shape)
    return pl.BlockSpec(shape, lambda *_: (0,) * nd)


def run_gpt_fused(x_flat, attn_bias, params, batch, seq):
    operands = (x_flat, attn_bias,
                params["vec_slab"], params["w_qkv_h"],
                params["b_qkv_h"], params["mat_slab"])
    return pl.pallas_call(
        functools.partial(gpt_kernel, N_LAYER, N_HEAD, batch, seq),
        out_shape=jax.ShapeDtypeStruct((batch, LM_PAD), jnp.float32),
        in_specs=[_full_spec(a.shape) for a in operands],
        out_specs=_full_spec((batch, LM_PAD)),
    )(*operands)


# ----------------------------- parameter packing ------------------------------
def _pad128(a):
    return jnp.pad(a, [(0, 0)] * (a.ndim - 1) + [(0, 128 - a.shape[-1])])


def pack_params(p):
    C, H, hd, L = N_EMBD, N_HEAD, HEAD_DIM, N_LAYER
    scale = 1.0 / math.sqrt(hd)

    # head-major qkv weights/biases; fold the attention scale into q.
    wqkv = p["w_qkv"].reshape(L, C, 3, H, hd)
    wqkv = jnp.transpose(wqkv, (0, 2, 3, 1, 4))          # (L, 3, H, C, hd)
    wqkv = wqkv.at[:, 0].multiply(scale)
    bqkv = p["b_qkv"].reshape(L, 3, H, hd)
    bqkv = bqkv.at[:, 0].multiply(scale)

    # vector slab: LN params + biases, one 128-lane row each.
    vec_slab = jnp.concatenate(
        [_pad128(p["ln_all"][:, 0]),        # LN weights   (NUM_LN rows)
         _pad128(p["ln_all"][:, 1]),        # LN biases    (NUM_LN rows)
         _pad128(p["b_fc"]),                # MLP c_fc b   (L rows)
         _pad128(p["b_proj"][:, 0]),        # attn c_proj b
         _pad128(p["b_proj"][:, 1])],       # MLP  c_proj b
        axis=0)
    assert vec_slab.shape == (VEC_ROWS, 128)

    # matrix slab: per layer [w_fc | w_mlp_proj^T | w_attn_proj], then lm_head.
    blocks = []
    for l in range(L):
        blocks.append(_pad128(p["w_fc"][l]))               # (C, 4C)
        blocks.append(_pad128(p["w_mlp_proj"][l].T))       # (C, 4C)
        blocks.append(_pad128(p["w_attn_proj"][l]))        # (C, C) -> (C, 128)
    blocks.append(_pad128(p["wte"].T))                     # tied lm_head (C, V) -> (C, 128)
    mat_slab = jnp.concatenate(blocks, axis=0)
    assert mat_slab.shape == (MAT_ROWS, 128)

    return dict(w_qkv_h=wqkv, b_qkv_h=bqkv, vec_slab=vec_slab, mat_slab=mat_slab)


# ----------------------------- parameter init --------------------------------
def init_params(key):
    std = 0.02
    proj_std = 0.02 / math.sqrt(2 * N_LAYER)
    C = N_EMBD
    k = jax.random.split(key, 6)

    wte = std * jax.random.normal(k[0], (VOCAB_SIZE, C), jnp.float32)
    wpe = std * jax.random.normal(k[1], (BLOCK_SIZE, C), jnp.float32)

    # Linear weights stored pre-transposed: (in, out); stacked over layers.
    w_qkv = std * jax.random.normal(k[2], (N_LAYER, C, 3 * C), jnp.float32)
    w_attn_proj = proj_std * jax.random.normal(k[3], (N_LAYER, C, C), jnp.float32)
    w_fc = std * jax.random.normal(k[4], (N_LAYER, C, 4 * C), jnp.float32)
    w_mlp_proj = proj_std * jax.random.normal(k[5], (N_LAYER, 4 * C, C), jnp.float32)

    b_qkv = jnp.zeros((N_LAYER, 3 * C), jnp.float32)
    b_fc = jnp.zeros((N_LAYER, 4 * C), jnp.float32)
    b_proj = jnp.zeros((N_LAYER, 2, C), jnp.float32)        # [attn proj b, mlp proj b]

    # LN params packed: [ln1, ln2] per layer, then ln_f; [:,0]=weight, [:,1]=bias
    ln_all = jnp.stack(
        [jnp.ones((2 * N_LAYER + 1, C), jnp.float32),
         jnp.zeros((2 * N_LAYER + 1, C), jnp.float32)], axis=1)

    params = dict(wte=wte, wpe=wpe, ln_all=ln_all,
                  w_qkv=w_qkv, b_qkv=b_qkv,
                  w_attn_proj=w_attn_proj,
                  w_fc=w_fc, b_fc=b_fc,
                  w_mlp_proj=w_mlp_proj, b_proj=b_proj)
    params.update(pack_params(params))
    return params


# ------------------------------ forward pass ---------------------------------
def _make_attn_bias(batch, seq):
    bt = batch * seq
    r = jnp.arange(bt)
    allowed = (r[:, None] >= r[None, :]) & ((r[:, None] // seq) == (r[None, :] // seq))
    # large finite negative (not -inf) so fully-masked padded rows can never NaN
    return jnp.where(allowed, 0.0, -1e30).astype(jnp.float32)


def gpt_forward(params, idx):
    b, t = idx.shape
    assert t <= BLOCK_SIZE
    # Embedding gathers are plain-JAX glue (data-dependent gather).
    tok_emb = params["wte"][idx]                  # (B, T, C)
    pos_emb = params["wpe"][:t][None, :, :]       # (1, T, C)
    x_flat = (tok_emb + pos_emb).reshape(b * t, N_EMBD)
    attn_bias = _make_attn_bias(b, t)             # (B*T, B*T) additive mask
    logits_pad = run_gpt_fused(x_flat, attn_bias, params, b, t)   # (B, LM_PAD)
    return logits_pad[:, :VOCAB_SIZE]


# --------------------------- pure-JAX reference -------------------------------
def _layernorm_ref(x, w, b):
    mu = jnp.mean(x, axis=-1, keepdims=True)
    var = jnp.mean((x - mu) ** 2, axis=-1, keepdims=True)
    return (x - mu) * jax.lax.rsqrt(var + LN_EPS) * w + b


def gpt_forward_ref(params, idx):
    b, t = idx.shape
    C, H = N_EMBD, N_HEAD
    hd = C // H
    x = params["wte"][idx] + params["wpe"][:t][None]
    mask = jnp.tril(jnp.ones((t, t), bool))
    ln = params["ln_all"]
    for l in range(N_LAYER):
        h = _layernorm_ref(x, ln[2 * l, 0], ln[2 * l, 1])
        qkv = h @ params["w_qkv"][l] + params["b_qkv"][l]
        q, k, v = jnp.split(qkv, 3, axis=-1)
        q = q.reshape(b, t, H, hd).transpose(0, 2, 1, 3)
        k = k.reshape(b, t, H, hd).transpose(0, 2, 1, 3)
        v = v.reshape(b, t, H, hd).transpose(0, 2, 1, 3)
        att = (q @ jnp.swapaxes(k, -1, -2)) / math.sqrt(hd)
        att = jnp.where(mask, att, -jnp.inf)
        att = jax.nn.softmax(att, axis=-1)
        y = (att @ v).transpose(0, 2, 1, 3).reshape(b, t, C)
        x = x + (y @ params["w_attn_proj"][l] + params["b_proj"][l, 0])
        h2 = _layernorm_ref(x, ln[2 * l + 1, 0], ln[2 * l + 1, 1])
        x = x + (_gelu_exact(h2 @ params["w_fc"][l] + params["b_fc"][l])
                 @ params["w_mlp_proj"][l] + params["b_proj"][l, 1])
    xl = _layernorm_ref(x[:, -1, :], ln[2 * N_LAYER, 0], ln[2 * N_LAYER, 1])
    return xl @ params["wte"].T


# ---------------------------------- main --------------------------------------
if __name__ == "__main__":
    key = jax.random.PRNGKey(0)
    pkey, ikey = jax.random.split(key)
    params = init_params(pkey)

    B, T = 2, 8
    idx = jax.random.randint(ikey, (B, T), 0, VOCAB_SIZE, dtype=jnp.int32)

    logits = jax.block_until_ready(jax.jit(gpt_forward)(params, idx))
    assert logits.shape == (B, VOCAB_SIZE)

    ref = jax.block_until_ready(gpt_forward_ref(params, idx))
    assert jnp.allclose(logits, ref, rtol=2e-4, atol=2e-4), "mismatch vs JAX reference"

    print("KERNEL_OK")
</pallas_src>

<mosaic_0001>
module attributes {stable_mosaic.version = 11 : i64} {
  func.func @gpt_kernel(%arg0: memref<16x32xf32, #tpu.memory_space<vmem>>, %arg1: memref<16x16xf32, #tpu.memory_space<vmem>>, %arg2: memref<16x128xf32, #tpu.memory_space<vmem>>, %arg3: memref<2x3x4x32x8xf32, #tpu.memory_space<vmem>>, %arg4: memref<2x3x4x8xf32, #tpu.memory_space<vmem>>, %arg5: memref<224x128xf32, #tpu.memory_space<vmem>>, %arg6: memref<2x128xf32, #tpu.memory_space<vmem>>) attributes {dimension_semantics = [], scalar_prefetch = 0 : i64, scratch_operands = 0 : i64, tpu.core_type = #tpu.core_type<tc>} {
    %c0 = arith.constant 0 : index
    %c0_0 = arith.constant 0 : index
    %0 = vector.load %arg0[%c0, %c0_0] : memref<16x32xf32, #tpu.memory_space<vmem>>, vector<16x32xf32>
    %c0_1 = arith.constant 0 : index
    %c0_2 = arith.constant 0 : index
    %1 = vector.load %arg1[%c0_1, %c0_2] : memref<16x16xf32, #tpu.memory_space<vmem>>, vector<16x16xf32>
    %c0_3 = arith.constant 0 : index
    %c0_4 = arith.constant 0 : index
    %2 = vector.load %arg2[%c0_3, %c0_4] : memref<16x128xf32, #tpu.memory_space<vmem>>, vector<16x128xf32>
    %3 = vector.extract_strided_slice %2 {offsets = [0, 0], sizes = [1, 32], strides = [1, 1]} : vector<16x128xf32> to vector<1x32xf32>
    %4 = vector.shape_cast %3 : vector<1x32xf32> to vector<32xf32>
    %5 = vector.extract_strided_slice %2 {offsets = [5, 0], sizes = [1, 32], strides = [1, 1]} : vector<16x128xf32> to vector<1x32xf32>
    %6 = vector.shape_cast %5 : vector<1x32xf32> to vector<32xf32>
    %cst = arith.constant dense<0.000000e+00> : vector<16xf32>
    %7 = vector.multi_reduction <add>, %0, %cst [1] : vector<16x32xf32> to vector<16xf32>
    %8 = vector.shape_cast %7 : vector<16xf32> to vector<16x1xf32>
    %cst_5 = arith.constant 3.200000e+01 : f32
    %9 = vector.broadcast %cst_5 : f32 to vector<16x1xf32>
    %10 = arith.divf %8, %9 : vector<16x1xf32>
    %11 = vector.broadcast %10 : vector<16x1xf32> to vector<16x32xf32>
    %12 = arith.subf %0, %11 : vector<16x32xf32>
    %13 = arith.mulf %12, %12 : vector<16x32xf32>
    %cst_6 = arith.constant dense<0.000000e+00> : vector<16xf32>
    %14 = vector.multi_reduction <add>, %13, %cst_6 [1] : vector<16x32xf32> to vector<16xf32>
    %15 = vector.shape_cast %14 : vector<16xf32> to vector<16x1xf32>
    %cst_7 = arith.constant 3.200000e+01 : f32
    %16 = vector.broadcast %cst_7 : f32 to vector<16x1xf32>
    %17 = arith.divf %15, %16 : vector<16x1xf32>
    %18 = vector.broadcast %10 : vector<16x1xf32> to vector<16x32xf32>
    %19 = arith.subf %0, %18 : vector<16x32xf32>
    %cst_8 = arith.constant 9.99999974E-6 : f32
    %20 = vector.broadcast %cst_8 : f32 to vector<16x1xf32>
    %21 = arith.addf %17, %20 : vector<16x1xf32>
    %22 = math.rsqrt %21 : vector<16x1xf32>
    %23 = vector.broadcast %22 : vector<16x1xf32> to vector<16x32xf32>
    %24 = arith.mulf %19, %23 : vector<16x32xf32>
    %25 = vector.shape_cast %4 : vector<32xf32> to vector<1x32xf32>
    %26 = vector.broadcast %25 : vector<1x32xf32> to vector<16x32xf32>
    %27 = arith.mulf %24, %26 : vector<16x32xf32>
    %28 = vector.shape_cast %6 : vector<32xf32> to vector<1x32xf32>
    %29 = vector.broadcast %28 : vector<1x32xf32> to vector<16x32xf32>
    %30 = arith.addf %27, %29 : vector<16x32xf32>
    %c0_9 = arith.constant 0 : index
    %c0_10 = arith.constant 0 : index
    %c0_11 = arith.constant 0 : index
    %c0_12 = arith.constant 0 : index
    %31 = vector.load %arg4[%c0_9, %c0_10, %c0_11, %c0_12] : memref<2x3x4x8xf32, #tpu.memory_space<vmem>>, vector<1x1x4x8xf32>
    %32 = vector.shape_cast %31 : vector<1x1x4x8xf32> to vector<4x8xf32>
    %c0_13 = arith.constant 0 : index
    %c1 = arith.constant 1 : index
    %c0_14 = arith.constant 0 : index
    %c0_15 = arith.constant 0 : index
    %33 = vector.load %arg4[%c0_13, %c1, %c0_14, %c0_15] : memref<2x3x4x8xf32, #tpu.memory_space<vmem>>, vector<1x1x4x8xf32>
    %34 = vector.shape_cast %33 : vector<1x1x4x8xf32> to vector<4x8xf32>
    %c0_16 = arith.constant 0 : index
    %c2 = arith.constant 2 : index
    %c0_17 = arith.constant 0 : index
    %c0_18 = arith.constant 0 : index
    %35 = vector.load %arg4[%c0_16, %c2, %c0_17, %c0_18] : memref<2x3x4x8xf32, #tpu.memory_space<vmem>>, vector<1x1x4x8xf32>
    %36 = vector.shape_cast %35 : vector<1x1x4x8xf32> to vector<4x8xf32>
    %c0_19 = arith.constant 0 : index
    %c0_20 = arith.constant 0 : index
    %c0_21 = arith.constant 0 : index
    %c0_22 = arith.constant 0 : index
    %c0_23 = arith.constant 0 : index
    %37 = vector.load %arg3[%c0_19, %c0_20, %c0_21, %c0_22, %c0_23] : memref<2x3x4x32x8xf32, #tpu.memory_space<vmem>>, vector<1x1x1x32x8xf32>
    %38 = vector.shape_cast %37 : vector<1x1x1x32x8xf32> to vector<32x8xf32>
    %cst_24 = arith.constant dense<0.000000e+00> : vector<16x8xf32>
    %39 = tpu.matmul %30, %38, %cst_24 {dimension_numbers = #tpu.dot_dimension_numbers<[1], [0], [0], [1], [0, 0, 1, 1], [], []>} : vector<16x32xf32>, vector<32x8xf32>, vector<16x8xf32> -> vector<16x8xf32>
    %40 = vector.extract_strided_slice %32 {offsets = [0, 0], sizes = [1, 8], strides = [1, 1]} : vector<4x8xf32> to vector<1x8xf32>
    %41 = vector.shape_cast %40 : vector<1x8xf32> to vector<8xf32>
    %42 = vector.shape_cast %41 : vector<8xf32> to vector<1x8xf32>
    %43 = vector.broadcast %42 : vector<1x8xf32> to vector<16x8xf32>
    %44 = arith.addf %39, %43 : vector<16x8xf32>
    %c0_25 = arith.constant 0 : index
    %c1_26 = arith.constant 1 : index
    %c0_27 = arith.constant 0 : index
    %c0_28 = arith.constant 0 : index
    %c0_29 = arith.constant 0 : index
    %45 = vector.load %arg3[%c0_25, %c1_26, %c0_27, %c0_28, %c0_29] : memref<2x3x4x32x8xf32, #tpu.memory_space<vmem>>, vector<1x1x1x32x8xf32>
    %46 = vector.shape_cast %45 : vector<1x1x1x32x8xf32> to vector<32x8xf32>
    %cst_30 = arith.constant dense<0.000000e+00> : vector<16x8xf32>
    %47 = tpu.matmul %30, %46, %cst_30 {dimension_numbers = #tpu.dot_dimension_numbers<[1], [0], [0], [1], [0, 0, 1, 1], [], []>} : vector<16x32xf32>, vector<32x8xf32>, vector<16x8xf32> -> vector<16x8xf32>
    %48 = vector.extract_strided_slice %34 {offsets = [0, 0], sizes = [1, 8], strides = [1, 1]} : vector<4x8xf32> to vector<1x8xf32>
    %49 = vector.shape_cast %48 : vector<1x8xf32> to vector<8xf32>
    %50 = vector.shape_cast %49 : vector<8xf32> to vector<1x8xf32>
    %51 = vector.broadcast %50 : vector<1x8xf32> to vector<16x8xf32>
    %52 = arith.addf %47, %51 : vector<16x8xf32>
    %c0_31 = arith.constant 0 : index
    %c2_32 = arith.constant 2 : index
    %c0_33 = arith.constant 0 : index
    %c0_34 = arith.constant 0 : index
    %c0_35 = arith.constant 0 : index
    %53 = vector.load %arg3[%c0_31, %c2_32, %c0_33, %c0_34, %c0_35] : memref<2x3x4x32x8xf32, #tpu.memory_space<vmem>>, vector<1x1x1x32x8xf32>
    %54 = vector.shape_cast %53 : vector<1x1x1x32x8xf32> to vector<32x8xf32>
    %cst_36 = arith.constant dense<0.000000e+00> : vector<16x8xf32>
    %55 = tpu.matmul %30, %54, %cst_36 {dimension_numbers = #tpu.dot_dimension_numbers<[1], [0], [0], [1], [0, 0, 1, 1], [], []>} : vector<16x32xf32>, vector<32x8xf32>, vector<16x8xf32> -> vector<16x8xf32>
    %56 = vector.extract_strided_slice %36 {offsets = [0, 0], sizes = [1, 8], strides = [1, 1]} : vector<4x8xf32> to vector<1x8xf32>
    %57 = vector.shape_cast %56 : vector<1x8xf32> to vector<8xf32>
    %58 = vector.shape_cast %57 : vector<8xf32> to vector<1x8xf32>
    %59 = vector.broadcast %58 : vector<1x8xf32> to vector<16x8xf32>
    %60 = arith.addf %55, %59 : vector<16x8xf32>
    %cst_37 = arith.constant dense<0.000000e+00> : vector<16x16xf32>
    %61 = tpu.matmul %44, %52, %cst_37 {dimension_numbers = #tpu.dot_dimension_numbers<[1], [1], [0], [0], [0, 0, 1, 0], [], []>} : vector<16x8xf32>, vector<16x8xf32>, vector<16x16xf32> -> vector<16x16xf32>
    %62 = arith.addf %61, %1 : vector<16x16xf32>
    %cst_38 = arith.constant dense<0xFF800000> : vector<16xf32>
    %63 = vector.multi_reduction <maximumf>, %62, %cst_38 [1] : vector<16x16xf32> to vector<16xf32>
    %64 = vector.shape_cast %63 : vector<16xf32> to vector<16x1xf32>
    %65 = vector.broadcast %64 : vector<16x1xf32> to vector<16x16xf32>
    %66 = arith.subf %62, %65 : vector<16x16xf32>
    %67 = math.exp %66 : vector<16x16xf32>
    %cst_39 = arith.constant dense<0.000000e+00> : vector<16xf32>
    %68 = vector.multi_reduction <add>, %67, %cst_39 [1] : vector<16x16xf32> to vector<16xf32>
    %69 = vector.shape_cast %68 : vector<16xf32> to vector<16x1xf32>
    %cst_40 = arith.constant 1.000000e+00 : f32
    %70 = vector.broadcast %cst_40 : f32 to vector<16x1xf32>
    %71 = arith.divf %70, %69 : vector<16x1xf32>
    %72 = vector.broadcast %71 : vector<16x1xf32> to vector<16x16xf32>
    %73 = arith.mulf %67, %72 : vector<16x16xf32>
    %cst_41 = arith.constant dense<0.000000e+00> : vector<16x8xf32>
    %74 = tpu.matmul %73, %60, %cst_41 {dimension_numbers = #tpu.dot_dimension_numbers<[1], [0], [0], [1], [0, 0, 1, 1], [], []>} : vector<16x16xf32>, vector<16x8xf32>, vector<16x8xf32> -> vector<16x8xf32>
    %c0_42 = arith.constant 0 : index
    %c0_43 = arith.constant 0 : index
    %c1_44 = arith.constant 1 : index
    %c0_45 = arith.constant 0 : index
    %c0_46 = arith.constant 0 : index
    %75 = vector.load %arg3[%c0_42, %c0_43, %c1_44, %c0_45, %c0_46] : memref<2x3x4x32x8xf32, #tpu.memory_space<vmem>>, vector<1x1x1x32x8xf32>
    %76 = vector.shape_cast %75 : vector<1x1x1x32x8xf32> to vector<32x8xf32>
    %cst_47 = arith.constant dense<0.000000e+00> : vector<16x8xf32>
    %77 = tpu.matmul %30, %76, %cst_47 {dimension_numbers = #tpu.dot_dimension_numbers<[1], [0], [0], [1], [0, 0, 1, 1], [], []>} : vector<16x32xf32>, vector<32x8xf32>, vector<16x8xf32> -> vector<16x8xf32>
    %78 = vector.extract_strided_slice %32 {offsets = [1, 0], sizes = [1, 8], strides = [1, 1]} : vector<4x8xf32> to vector<1x8xf32>
    %79 = vector.shape_cast %78 : vector<1x8xf32> to vector<8xf32>
    %80 = vector.shape_cast %79 : vector<8xf32> to vector<1x8xf32>
    %81 = vector.broadcast %80 : vector<1x8xf32> to vector<16x8xf32>
    %82 = arith.addf %77, %81 : vector<16x8xf32>
    %c0_48 = arith.constant 0 : index
    %c1_49 = arith.constant 1 : index
    %c1_50 = arith.constant 1 : index
    %c0_51 = arith.constant 0 : index
    %c0_52 = arith.constant 0 : index
    %83 = vector.load %arg3[%c0_48, %c1_49, %c1_50, %c0_51, %c0_52] : memref<2x3x4x32x8xf32, #tpu.memory_space<vmem>>, vector<1x1x1x32x8xf32>
    %84 = vector.shape_cast %83 : vector<1x1x1x32x8xf32> to vector<32x8xf32>
    %cst_53 = arith.constant dense<0.000000e+00> : vector<16x8xf32>
    %85 = tpu.matmul %30, %84, %cst_53 {dimension_numbers = #tpu.dot_dimension_numbers<[1], [0], [0], [1], [0, 0, 1, 1], [], []>} : vector<16x32xf32>, vector<32x8xf32>, vector<16x8xf32> -> vector<16x8xf32>
    %86 = vector.extract_strided_slice %34 {offsets = [1, 0], sizes = [1, 8], strides = [1, 1]} : vector<4x8xf32> to vector<1x8xf32>
    %87 = vector.shape_cast %86 : vector<1x8xf32> to vector<8xf32>
    %88 = vector.shape_cast %87 : vector<8xf32> to vector<1x8xf32>
    %89 = vector.broadcast %88 : vector<1x8xf32> to vector<16x8xf32>
    %90 = arith.addf %85, %89 : vector<16x8xf32>
    %c0_54 = arith.constant 0 : index
    %c2_55 = arith.constant 2 : index
    %c1_56 = arith.constant 1 : index
    %c0_57 = arith.constant 0 : index
    %c0_58 = arith.constant 0 : index
    %91 = vector.load %arg3[%c0_54, %c2_55, %c1_56, %c0_57, %c0_58] : memref<2x3x4x32x8xf32, #tpu.memory_space<vmem>>, vector<1x1x1x32x8xf32>
    %92 = vector.shape_cast %91 : vector<1x1x1x32x8xf32> to vector<32x8xf32>
    %cst_59 = arith.constant dense<0.000000e+00> : vector<16x8xf32>
    %93 = tpu.matmul %30, %92, %cst_59 {dimension_numbers = #tpu.dot_dimension_numbers<[1], [0], [0], [1], [0, 0, 1, 1], [], []>} : vector<16x32xf32>, vector<32x8xf32>, vector<16x8xf32> -> vector<16x8xf32>
    %94 = vector.extract_strided_slice %36 {offsets = [1, 0], sizes = [1, 8], strides = [1, 1]} : vector<4x8xf32> to vector<1x8xf32>
    %95 = vector.shape_cast %94 : vector<1x8xf32> to vector<8xf32>
    %96 = vector.shape_cast %95 : vector<8xf32> to vector<1x8xf32>
    %97 = vector.broadcast %96 : vector<1x8xf32> to vector<16x8xf32>
    %98 = arith.addf %93, %97 : vector<16x8xf32>
    %cst_60 = arith.constant dense<0.000000e+00> : vector<16x16xf32>
    %99 = tpu.matmul %82, %90, %cst_60 {dimension_numbers = #tpu.dot_dimension_numbers<[1], [1], [0], [0], [0, 0, 1, 0], [], []>} : vector<16x8xf32>, vector<16x8xf32>, vector<16x16xf32> -> vector<16x16xf32>
    %100 = arith.addf %99, %1 : vector<16x16xf32>
    %cst_61 = arith.constant dense<0xFF800000> : vector<16xf32>
    %101 = vector.multi_reduction <maximumf>, %100, %cst_61 [1] : vector<16x16xf32> to vector<16xf32>
    %102 = vector.shape_cast %101 : vector<16xf32> to vector<16x1xf32>
    %103 = vector.broadcast %102 : vector<16x1xf32> to vector<16x16xf32>
    %104 = arith.subf %100, %103 : vector<16x16xf32>
    %105 = math.exp %104 : vector<16x16xf32>
    %cst_62 = arith.constant dense<0.000000e+00> : vector<16xf32>
    %106 = vector.multi_reduction <add>, %105, %cst_62 [1] : vector<16x16xf32> to vector<16xf32>
    %107 = vector.shape_cast %106 : vector<16xf32> to vector<16x1xf32>
    %cst_63 = arith.constant 1.000000e+00 : f32
    %108 = vector.broadcast %cst_63 : f32 to vector<16x1xf32>
    %109 = arith.divf %108, %107 : vector<16x1xf32>
    %110 = vector.broadcast %109 : vector<16x1xf32> to vector<16x16xf32>
    %111 = arith.mulf %105, %110 : vector<16x16xf32>
    %cst_64 = arith.constant dense<0.000000e+00> : vector<16x8xf32>
    %112 = tpu.matmul %111, %98, %cst_64 {dimension_numbers = #tpu.dot_dimension_numbers<[1], [0], [0], [1], [0, 0, 1, 1], [], []>} : vector<16x16xf32>, vector<16x8xf32>, vector<16x8xf32> -> vector<16x8xf32>
    %c0_65 = arith.constant 0 : index
    %c0_66 = arith.constant 0 : index
    %c2_67 = arith.constant 2 : index
    %c0_68 = arith.constant 0 : index
    %c0_69 = arith.constant 0 : index
    %113 = vector.load %arg3[%c0_65, %c0_66, %c2_67, %c0_68, %c0_69] : memref<2x3x4x32x8xf32, #tpu.memory_space<vmem>>, vector<1x1x1x32x8xf32>
    %114 = vector.shape_cast %113 : vector<1x1x1x32x8xf32> to vector<32x8xf32>
    %cst_70 = arith.constant dense<0.000000e+00> : vector<16x8xf32>
    %115 = tpu.matmul %30, %114, %cst_70 {dimension_numbers = #tpu.dot_dimension_numbers<[1], [0], [0], [1], [0, 0, 1, 1], [], []>} : vector<16x32xf32>, vector<32x8xf32>, vector<16x8xf32> -> vector<16x8xf32>
    %116 = vector.extract_strided_slice %32 {offsets = [2, 0], sizes = [1, 8], strides = [1, 1]} : vector<4x8xf32> to vector<1x8xf32>
    %117 = vector.shape_cast %116 : vector<1x8xf32> to vector<8xf32>
    %118 = vector.shape_cast %117 : vector<8xf32> to vector<1x8xf32>
    %119 = vector.broadcast %118 : vector<1x8xf32> to vector<16x8xf32>
    %120 = arith.addf %115, %119 : vector<16x8xf32>
    %c0_71 = arith.constant 0 : index
    %c1_72 = arith.constant 1 : index
    %c2_73 = arith.constant 2 : index
    %c0_74 = arith.constant 0 : index
    %c0_75 = arith.constant 0 : index
    %121 = vector.load %arg3[%c0_71, %c1_72, %c2_73, %c0_74, %c0_75] : memref<2x3x4x32x8xf32, #tpu.memory_space<vmem>>, vector<1x1x1x32x8xf32>
    %122 = vector.shape_cast %121 : vector<1x1x1x32x8xf32> to vector<32x8xf32>
    %cst_76 = arith.constant dense<0.000000e+00> : vector<16x8xf32>
    %123 = tpu.matmul %30, %122, %cst_76 {dimension_numbers = #tpu.dot_dimension_numbers<[1], [0], [0], [1], [0, 0, 1, 1], [], []>} : vector<16x32xf32>, vector<32x8xf32>, vector<16x8xf32> -> vector<16x8xf32>
    %124 = vector.extract_strided_slice %34 {offsets = [2, 0], sizes = [1, 8], strides = [1, 1]} : vector<4x8xf32> to vector<1x8xf32>
    %125 = vector.shape_cast %124 : vector<1x8xf32> to vector<8xf32>
    %126 = vector.shape_cast %125 : vector<8xf32> to vector<1x8xf32>
    %127 = vector.broadcast %126 : vector<1x8xf32> to vector<16x8xf32>
    %128 = arith.addf %123, %127 : vector<16x8xf32>
    %c0_77 = arith.constant 0 : index
    %c2_78 = arith.constant 2 : index
    %c2_79 = arith.constant 2 : index
    %c0_80 = arith.constant 0 : index
    %c0_81 = arith.constant 0 : index
    %129 = vector.load %arg3[%c0_77, %c2_78, %c2_79, %c0_80, %c0_81] : memref<2x3x4x32x8xf32, #tpu.memory_space<vmem>>, vector<1x1x1x32x8xf32>
    %130 = vector.shape_cast %129 : vector<1x1x1x32x8xf32> to vector<32x8xf32>
    %cst_82 = arith.constant dense<0.000000e+00> : vector<16x8xf32>
    %131 = tpu.matmul %30, %130, %cst_82 {dimension_numbers = #tpu.dot_dimension_numbers<[1], [0], [0], [1], [0, 0, 1, 1], [], []>} : vector<16x32xf32>, vector<32x8xf32>, vector<16x8xf32> -> vector<16x8xf32>
    %132 = vector.extract_strided_slice %36 {offsets = [2, 0], sizes = [1, 8], strides = [1, 1]} : vector<4x8xf32> to vector<1x8xf32>
    %133 = vector.shape_cast %132 : vector<1x8xf32> to vector<8xf32>
    %134 = vector.shape_cast %133 : vector<8xf32> to vector<1x8xf32>
    %135 = vector.broadcast %134 : vector<1x8xf32> to vector<16x8xf32>
    %136 = arith.addf %131, %135 : vector<16x8xf32>
    %cst_83 = arith.constant dense<0.000000e+00> : vector<16x16xf32>
    %137 = tpu.matmul %120, %128, %cst_83 {dimension_numbers = #tpu.dot_dimension_numbers<[1], [1], [0], [0], [0, 0, 1, 0], [], []>} : vector<16x8xf32>, vector<16x8xf32>, vector<16x16xf32> -> vector<16x16xf32>
    %138 = arith.addf %137, %1 : vector<16x16xf32>
    %cst_84 = arith.constant dense<0xFF800000> : vector<16xf32>
    %139 = vector.multi_reduction <maximumf>, %138, %cst_84 [1] : vector<16x16xf32> to vector<16xf32>
    %140 = vector.shape_cast %139 : vector<16xf32> to vector<16x1xf32>
    %141 = vector.broadcast %140 : vector<16x1xf32> to vector<16x16xf32>
    %142 = arith.subf %138, %141 : vector<16x16xf32>
    %143 = math.exp %142 : vector<16x16xf32>
    %cst_85 = arith.constant dense<0.000000e+00> : vector<16xf32>
    %144 = vector.multi_reduction <add>, %143, %cst_85 [1] : vector<16x16xf32> to vector<16xf32>
    %145 = vector.shape_cast %144 : vector<16xf32> to vector<16x1xf32>
    %cst_86 = arith.constant 1.000000e+00 : f32
    %146 = vector.broadcast %cst_86 : f32 to vector<16x1xf32>
    %147 = arith.divf %146, %145 : vector<16x1xf32>
    %148 = vector.broadcast %147 : vector<16x1xf32> to vector<16x16xf32>
    %149 = arith.mulf %143, %148 : vector<16x16xf32>
    %cst_87 = arith.constant dense<0.000000e+00> : vector<16x8xf32>
    %150 = tpu.matmul %149, %136, %cst_87 {dimension_numbers = #tpu.dot_dimension_numbers<[1], [0], [0], [1], [0, 0, 1, 1], [], []>} : vector<16x16xf32>, vector<16x8xf32>, vector<16x8xf32> -> vector<16x8xf32>
    %c0_88 = arith.constant 0 : index
    %c0_89 = arith.constant 0 : index
    %c3 = arith.constant 3 : index
    %c0_90 = arith.constant 0 : index
    %c0_91 = arith.constant 0 : index
    %151 = vector.load %arg3[%c0_88, %c0_89, %c3, %c0_90, %c0_91] : memref<2x3x4x32x8xf32, #tpu.memory_space<vmem>>, vector<1x1x1x32x8xf32>
    %152 = vector.shape_cast %151 : vector<1x1x1x32x8xf32> to vector<32x8xf32>
    %cst_92 = arith.constant dense<0.000000e+00> : vector<16x8xf32>
    %153 = tpu.matmul %30, %152, %cst_92 {dimension_numbers = #tpu.dot_dimension_numbers<[1], [0], [0], [1], [0, 0, 1, 1], [], []>} : vector<16x32xf32>, vector<32x8xf32>, vector<16x8xf32> -> vector<16x8xf32>
    %154 = vector.extract_strided_slice %32 {offsets = [3, 0], sizes = [1, 8], strides = [1, 1]} : vector<4x8xf32> to vector<1x8xf32>
    %155 = vector.shape_cast %154 : vector<1x8xf32> to vector<8xf32>
    %156 = vector.shape_cast %155 : vector<8xf32> to vector<1x8xf32>
    %157 = vector.broadcast %156 : vector<1x8xf32> to vector<16x8xf32>
    %158 = arith.addf %153, %157 : vector<16x8xf32>
    %c0_93 = arith.constant 0 : index
    %c1_94 = arith.constant 1 : index
    %c3_95 = arith.constant 3 : index
    %c0_96 = arith.constant 0 : index
    %c0_97 = arith.constant 0 : index
    %159 = vector.load %arg3[%c0_93, %c1_94, %c3_95, %c0_96, %c0_97] : memref<2x3x4x32x8xf32, #tpu.memory_space<vmem>>, vector<1x1x1x32x8xf32>
    %160 = vector.shape_cast %159 : vector<1x1x1x32x8xf32> to vector<32x8xf32>
    %cst_98 = arith.constant dense<0.000000e+00> : vector<16x8xf32>
    %161 = tpu.matmul %30, %160, %cst_98 {dimension_numbers = #tpu.dot_dimension_numbers<[1], [0], [0], [1], [0, 0, 1, 1], [], []>} : vector<16x32xf32>, vector<32x8xf32>, vector<16x8xf32> -> vector<16x8xf32>
    %162 = vector.extract_strided_slice %34 {offsets = [3, 0], sizes = [1, 8], strides = [1, 1]} : vector<4x8xf32> to vector<1x8xf32>
    %163 = vector.shape_cast %162 : vector<1x8xf32> to vector<8xf32>
    %164 = vector.shape_cast %163 : vector<8xf32> to vector<1x8xf32>
    %165 = vector.broadcast %164 : vector<1x8xf32> to vector<16x8xf32>
    %166 = arith.addf %161, %165 : vector<16x8xf32>
    %c0_99 = arith.constant 0 : index
    %c2_100 = arith.constant 2 : index
    %c3_101 = arith.constant 3 : index
    %c0_102 = arith.constant 0 : index
    %c0_103 = arith.constant 0 : index
    %167 = vector.load %arg3[%c0_99, %c2_100, %c3_101, %c0_102, %c0_103] : memref<2x3x4x32x8xf32, #tpu.memory_space<vmem>>, vector<1x1x1x32x8xf32>
    %168 = vector.shape_cast %167 : vector<1x1x1x32x8xf32> to vector<32x8xf32>
    %cst_104 = arith.constant dense<0.000000e+00> : vector<16x8xf32>
    %169 = tpu.matmul %30, %168, %cst_104 {dimension_numbers = #tpu.dot_dimension_numbers<[1], [0], [0], [1], [0, 0, 1, 1], [], []>} : vector<16x32xf32>, vector<32x8xf32>, vector<16x8xf32> -> vector<16x8xf32>
    %170 = vector.extract_strided_slice %36 {offsets = [3, 0], sizes = [1, 8], strides = [1, 1]} : vector<4x8xf32> to vector<1x8xf32>
    %171 = vector.shape_cast %170 : vector<1x8xf32> to vector<8xf32>
    %172 = vector.shape_cast %171 : vector<8xf32> to vector<1x8xf32>
    %173 = vector.broadcast %172 : vector<1x8xf32> to vector<16x8xf32>
    %174 = arith.addf %169, %173 : vector<16x8xf32>
    %cst_105 = arith.constant dense<0.000000e+00> : vector<16x16xf32>
    %175 = tpu.matmul %158, %166, %cst_105 {dimension_numbers = #tpu.dot_dimension_numbers<[1], [1], [0], [0], [0, 0, 1, 0], [], []>} : vector<16x8xf32>, vector<16x8xf32>, vector<16x16xf32> -> vector<16x16xf32>
    %176 = arith.addf %175, %1 : vector<16x16xf32>
    %cst_106 = arith.constant dense<0xFF800000> : vector<16xf32>
    %177 = vector.multi_reduction <maximumf>, %176, %cst_106 [1] : vector<16x16xf32> to vector<16xf32>
    %178 = vector.shape_cast %177 : vector<16xf32> to vector<16x1xf32>
    %179 = vector.broadcast %178 : vector<16x1xf32> to vector<16x16xf32>
    %180 = arith.subf %176, %179 : vector<16x16xf32>
    %181 = math.exp %180 : vector<16x16xf32>
    %cst_107 = arith.constant dense<0.000000e+00> : vector<16xf32>
    %182 = vector.multi_reduction <add>, %181, %cst_107 [1] : vector<16x16xf32> to vector<16xf32>
    %183 = vector.shape_cast %182 : vector<16xf32> to vector<16x1xf32>
    %cst_108 = arith.constant 1.000000e+00 : f32
    %184 = vector.broadcast %cst_108 : f32 to vector<16x1xf32>
    %185 = arith.divf %184, %183 : vector<16x1xf32>
    %186 = vector.broadcast %185 : vector<16x1xf32> to vector<16x16xf32>
    %187 = arith.mulf %181, %186 : vector<16x16xf32>
    %cst_109 = arith.constant dense<0.000000e+00> : vector<16x8xf32>
    %188 = tpu.matmul %187, %174, %cst_109 {dimension_numbers = #tpu.dot_dimension_numbers<[1], [0], [0], [1], [0, 0, 1, 1], [], []>} : vector<16x16xf32>, vector<16x8xf32>, vector<16x8xf32> -> vector<16x8xf32>
    %189 = tpu.concatenate %74, %112, %150, %188 in 1 : vector<16x8xf32>, vector<16x8xf32>, vector<16x8xf32>, vector<16x8xf32> -> vector<16x32xf32>
    %c64 = arith.constant 64 : index
    %c0_110 = arith.constant 0 : index
    %190 = vector.load %arg5[%c64, %c0_110] : memref<224x128xf32, #tpu.memory_space<vmem>>, vector<32x32xf32>
    %cst_111 = arith.constant dense<0.000000e+00> : vector<16x32xf32>
    %191 = tpu.matmul %189, %190, %cst_111 {dimension_numbers = #tpu.dot_dimension_numbers<[1], [0], [0], [1], [0, 0, 1, 1], [], []>} : vector<16x32xf32>, vector<32x32xf32>, vector<16x32xf32> -> vector<16x32xf32>
    %192 = arith.addf %0, %191 : vector<16x32xf32>
    %193 = vector.extract_strided_slice %2 {offsets = [12, 0], sizes = [1, 32], strides = [1, 1]} : vector<16x128xf32> to vector<1x32xf32>
    %194 = vector.shape_cast %193 : vector<1x32xf32> to vector<32xf32>
    %195 = vector.shape_cast %194 : vector<32xf32> to vector<1x32xf32>
    %196 = vector.broadcast %195 : vector<1x32xf32> to vector<16x32xf32>
    %197 = arith.addf %192, %196 : vector<16x32xf32>
    %198 = vector.extract_strided_slice %2 {offsets = [1, 0], sizes = [1, 32], strides = [1, 1]} : vector<16x128xf32> to vector<1x32xf32>
    %199 = vector.shape_cast %198 : vector<1x32xf32> to vector<32xf32>
    %200 = vector.extract_strided_slice %2 {offsets = [6, 0], sizes = [1, 32], strides = [1, 1]} : vector<16x128xf32> to vector<1x32xf32>
    %201 = vector.shape_cast %200 : vector<1x32xf32> to vector<32xf32>
    %cst_112 = arith.constant dense<0.000000e+00> : vector<16xf32>
    %202 = vector.multi_reduction <add>, %197, %cst_112 [1] : vector<16x32xf32> to vector<16xf32>
    %203 = vector.shape_cast %202 : vector<16xf32> to vector<16x1xf32>
    %cst_113 = arith.constant 3.200000e+01 : f32
    %204 = vector.broadcast %cst_113 : f32 to vector<16x1xf32>
    %205 = arith.divf %203, %204 : vector<16x1xf32>
    %206 = vector.broadcast %205 : vector<16x1xf32> to vector<16x32xf32>
    %207 = arith.subf %197, %206 : vector<16x32xf32>
    %208 = arith.mulf %207, %207 : vector<16x32xf32>
    %cst_114 = arith.constant dense<0.000000e+00> : vector<16xf32>
    %209 = vector.multi_reduction <add>, %208, %cst_114 [1] : vector<16x32xf32> to vector<16xf32>
    %210 = vector.shape_cast %209 : vector<16xf32> to vector<16x1xf32>
    %cst_115 = arith.constant 3.200000e+01 : f32
    %211 = vector.broadcast %cst_115 : f32 to vector<16x1xf32>
    %212 = arith.divf %210, %211 : vector<16x1xf32>
    %213 = vector.broadcast %205 : vector<16x1xf32> to vector<16x32xf32>
    %214 = arith.subf %197, %213 : vector<16x32xf32>
    %cst_116 = arith.constant 9.99999974E-6 : f32
    %215 = vector.broadcast %cst_116 : f32 to vector<16x1xf32>
    %216 = arith.addf %212, %215 : vector<16x1xf32>
    %217 = math.rsqrt %216 : vector<16x1xf32>
    %218 = vector.broadcast %217 : vector<16x1xf32> to vector<16x32xf32>
    %219 = arith.mulf %214, %218 : vector<16x32xf32>
    %220 = vector.shape_cast %199 : vector<32xf32> to vector<1x32xf32>
    %221 = vector.broadcast %220 : vector<1x32xf32> to vector<16x32xf32>
    %222 = arith.mulf %219, %221 : vector<16x32xf32>
    %223 = vector.shape_cast %201 : vector<32xf32> to vector<1x32xf32>
    %224 = vector.broadcast %223 : vector<1x32xf32> to vector<16x32xf32>
    %225 = arith.addf %222, %224 : vector<16x32xf32>
    %c0_117 = arith.constant 0 : index
    %c0_118 = arith.constant 0 : index
    %226 = vector.load %arg5[%c0_117, %c0_118] : memref<224x128xf32, #tpu.memory_space<vmem>>, vector<32x128xf32>
    %cst_119 = arith.constant dense<0.000000e+00> : vector<16x128xf32>
    %227 = tpu.matmul %225, %226, %cst_119 {dimension_numbers = #tpu.dot_dimension_numbers<[1], [0], [0], [1], [0, 0, 1, 1], [], []>} : vector<16x32xf32>, vector<32x128xf32>, vector<16x128xf32> -> vector<16x128xf32>
    %228 = vector.extract_strided_slice %2 {offsets = [10, 0], sizes = [1, 128], strides = [1, 1]} : vector<16x128xf32> to vector<1x128xf32>
    %229 = vector.shape_cast %228 : vector<1x128xf32> to vector<128xf32>
    %230 = vector.shape_cast %229 : vector<128xf32> to vector<1x128xf32>
    %231 = vector.broadcast %230 : vector<1x128xf32> to vector<16x128xf32>
    %232 = arith.addf %227, %231 : vector<16x128xf32>
    %cst_120 = arith.constant 5.000000e-01 : f32
    %233 = vector.broadcast %cst_120 : f32 to vector<16x128xf32>
    %234 = arith.mulf %233, %232 : vector<16x128xf32>
    %cst_121 = arith.constant 0.707106769 : f32
    %235 = vector.broadcast %cst_121 : f32 to vector<16x128xf32>
    %236 = arith.mulf %232, %235 : vector<16x128xf32>
    %237 = math.erf %236 : vector<16x128xf32>
    %cst_122 = arith.constant 1.000000e+00 : f32
    %238 = vector.broadcast %cst_122 : f32 to vector<16x128xf32>
    %239 = arith.addf %238, %237 : vector<16x128xf32>
    %240 = arith.mulf %234, %239 : vector<16x128xf32>
    %c32 = arith.constant 32 : index
    %c0_123 = arith.constant 0 : index
    %241 = vector.load %arg5[%c32, %c0_123] : memref<224x128xf32, #tpu.memory_space<vmem>>, vector<32x128xf32>
    %cst_124 = arith.constant dense<0.000000e+00> : vector<16x32xf32>
    %242 = tpu.matmul %240, %241, %cst_124 {dimension_numbers = #tpu.dot_dimension_numbers<[1], [1], [0], [0], [0, 0, 1, 0], [], []>} : vector<16x128xf32>, vector<32x128xf32>, vector<16x32xf32> -> vector<16x32xf32>
    %243 = arith.addf %197, %242 : vector<16x32xf32>
    %244 = vector.extract_strided_slice %2 {offsets = [14, 0], sizes = [1, 32], strides = [1, 1]} : vector<16x128xf32> to vector<1x32xf32>
    %245 = vector.shape_cast %244 : vector<1x32xf32> to vector<32xf32>
    %246 = vector.shape_cast %245 : vector<32xf32> to vector<1x32xf32>
    %247 = vector.broadcast %246 : vector<1x32xf32> to vector<16x32xf32>
    %248 = arith.addf %243, %247 : vector<16x32xf32>
    %249 = vector.extract_strided_slice %2 {offsets = [2, 0], sizes = [1, 32], strides = [1, 1]} : vector<16x128xf32> to vector<1x32xf32>
    %250 = vector.shape_cast %249 : vector<1x32xf32> to vector<32xf32>
    %251 = vector.extract_strided_slice %2 {offsets = [7, 0], sizes = [1, 32], strides = [1, 1]} : vector<16x128xf32> to vector<1x32xf32>
    %252 = vector.shape_cast %251 : vector<1x32xf32> to vector<32xf32>
    %cst_125 = arith.constant dense<0.000000e+00> : vector<16xf32>
    %253 = vector.multi_reduction <add>, %248, %cst_125 [1] : vector<16x32xf32> to vector<16xf32>
    %254 = vector.shape_cast %253 : vector<16xf32> to vector<16x1xf32>
    %cst_126 = arith.constant 3.200000e+01 : f32
    %255 = vector.broadcast %cst_126 : f32 to vector<16x1xf32>
    %256 = arith.divf %254, %255 : vector<16x1xf32>
    %257 = vector.broadcast %256 : vector<16x1xf32> to vector<16x32xf32>
    %258 = arith.subf %248, %257 : vector<16x32xf32>
    %259 = arith.mulf %258, %258 : vector<16x32xf32>
    %cst_127 = arith.constant dense<0.000000e+00> : vector<16xf32>
    %260 = vector.multi_reduction <add>, %259, %cst_127 [1] : vector<16x32xf32> to vector<16xf32>
    %261 = vector.shape_cast %260 : vector<16xf32> to vector<16x1xf32>
    %cst_128 = arith.constant 3.200000e+01 : f32
    %262 = vector.broadcast %cst_128 : f32 to vector<16x1xf32>
    %263 = arith.divf %261, %262 : vector<16x1xf32>
    %264 = vector.broadcast %256 : vector<16x1xf32> to vector<16x32xf32>
    %265 = arith.subf %248, %264 : vector<16x32xf32>
    %cst_129 = arith.constant 9.99999974E-6 : f32
    %266 = vector.broadcast %cst_129 : f32 to vector<16x1xf32>
    %267 = arith.addf %263, %266 : vector<16x1xf32>
    %268 = math.rsqrt %267 : vector<16x1xf32>
    %269 = vector.broadcast %268 : vector<16x1xf32> to vector<16x32xf32>
    %270 = arith.mulf %265, %269 : vector<16x32xf32>
    %271 = vector.shape_cast %250 : vector<32xf32> to vector<1x32xf32>
    %272 = vector.broadcast %271 : vector<1x32xf32> to vector<16x32xf32>
    %273 = arith.mulf %270, %272 : vector<16x32xf32>
    %274 = vector.shape_cast %252 : vector<32xf32> to vector<1x32xf32>
    %275 = vector.broadcast %274 : vector<1x32xf32> to vector<16x32xf32>
    %276 = arith.addf %273, %275 : vector<16x32xf32>
    %c1_130 = arith.constant 1 : index
    %c0_131 = arith.constant 0 : index
    %c0_132 = arith.constant 0 : index
    %c0_133 = arith.constant 0 : index
    %277 = vector.load %arg4[%c1_130, %c0_131, %c0_132, %c0_133] : memref<2x3x4x8xf32, #tpu.memory_space<vmem>>, vector<1x1x4x8xf32>
    %278 = vector.shape_cast %277 : vector<1x1x4x8xf32> to vector<4x8xf32>
    %c1_134 = arith.constant 1 : index
    %c1_135 = arith.constant 1 : index
    %c0_136 = arith.constant 0 : index
    %c0_137 = arith.constant 0 : index
    %279 = vector.load %arg4[%c1_134, %c1_135, %c0_136, %c0_137] : memref<2x3x4x8xf32, #tpu.memory_space<vmem>>, vector<1x1x4x8xf32>
    %280 = vector.shape_cast %279 : vector<1x1x4x8xf32> to vector<4x8xf32>
    %c1_138 = arith.constant 1 : index
    %c2_139 = arith.constant 2 : index
    %c0_140 = arith.constant 0 : index
    %c0_141 = arith.constant 0 : index
    %281 = vector.load %arg4[%c1_138, %c2_139, %c0_140, %c0_141] : memref<2x3x4x8xf32, #tpu.memory_space<vmem>>, vector<1x1x4x8xf32>
    %282 = vector.shape_cast %281 : vector<1x1x4x8xf32> to vector<4x8xf32>
    %c1_142 = arith.constant 1 : index
    %c0_143 = arith.constant 0 : index
    %c0_144 = arith.constant 0 : index
    %c0_145 = arith.constant 0 : index
    %c0_146 = arith.constant 0 : index
    %283 = vector.load %arg3[%c1_142, %c0_143, %c0_144, %c0_145, %c0_146] : memref<2x3x4x32x8xf32, #tpu.memory_space<vmem>>, vector<1x1x1x32x8xf32>
    %284 = vector.shape_cast %283 : vector<1x1x1x32x8xf32> to vector<32x8xf32>
    %cst_147 = arith.constant dense<0.000000e+00> : vector<16x8xf32>
    %285 = tpu.matmul %276, %284, %cst_147 {dimension_numbers = #tpu.dot_dimension_numbers<[1], [0], [0], [1], [0, 0, 1, 1], [], []>} : vector<16x32xf32>, vector<32x8xf32>, vector<16x8xf32> -> vector<16x8xf32>
    %286 = vector.extract_strided_slice %278 {offsets = [0, 0], sizes = [1, 8], strides = [1, 1]} : vector<4x8xf32> to vector<1x8xf32>
    %287 = vector.shape_cast %286 : vector<1x8xf32> to vector<8xf32>
    %288 = vector.shape_cast %287 : vector<8xf32> to vector<1x8xf32>
    %289 = vector.broadcast %288 : vector<1x8xf32> to vector<16x8xf32>
    %290 = arith.addf %285, %289 : vector<16x8xf32>
    %c1_148 = arith.constant 1 : index
    %c1_149 = arith.constant 1 : index
    %c0_150 = arith.constant 0 : index
    %c0_151 = arith.constant 0 : index
    %c0_152 = arith.constant 0 : index
    %291 = vector.load %arg3[%c1_148, %c1_149, %c0_150, %c0_151, %c0_152] : memref<2x3x4x32x8xf32, #tpu.memory_space<vmem>>, vector<1x1x1x32x8xf32>
    %292 = vector.shape_cast %291 : vector<1x1x1x32x8xf32> to vector<32x8xf32>
    %cst_153 = arith.constant dense<0.000000e+00> : vector<16x8xf32>
    %293 = tpu.matmul %276, %292, %cst_153 {dimension_numbers = #tpu.dot_dimension_numbers<[1], [0], [0], [1], [0, 0, 1, 1], [], []>} : vector<16x32xf32>, vector<32x8xf32>, vector<16x8xf32> -> vector<16x8xf32>
    %294 = vector.extract_strided_slice %280 {offsets = [0, 0], sizes = [1, 8], strides = [1, 1]} : vector<4x8xf32> to vector<1x8xf32>
    %295 = vector.shape_cast %294 : vector<1x8xf32> to vector<8xf32>
    %296 = vector.shape_cast %295 : vector<8xf32> to vector<1x8xf32>
    %297 = vector.broadcast %296 : vector<1x8xf32> to vector<16x8xf32>
    %298 = arith.addf %293, %297 : vector<16x8xf32>
    %c1_154 = arith.constant 1 : index
    %c2_155 = arith.constant 2 : index
    %c0_156 = arith.constant 0 : index
    %c0_157 = arith.constant 0 : index
    %c0_158 = arith.constant 0 : index
    %299 = vector.load %arg3[%c1_154, %c2_155, %c0_156, %c0_157, %c0_158] : memref<2x3x4x32x8xf32, #tpu.memory_space<vmem>>, vector<1x1x1x32x8xf32>
    %300 = vector.shape_cast %299 : vector<1x1x1x32x8xf32> to vector<32x8xf32>
    %cst_159 = arith.constant dense<0.000000e+00> : vector<16x8xf32>
    %301 = tpu.matmul %276, %300, %cst_159 {dimension_numbers = #tpu.dot_dimension_numbers<[1], [0], [0], [1], [0, 0, 1, 1], [], []>} : vector<16x32xf32>, vector<32x8xf32>, vector<16x8xf32> -> vector<16x8xf32>
    %302 = vector.extract_strided_slice %282 {offsets = [0, 0], sizes = [1, 8], strides = [1, 1]} : vector<4x8xf32> to vector<1x8xf32>
    %303 = vector.shape_cast %302 : vector<1x8xf32> to vector<8xf32>
    %304 = vector.shape_cast %303 : vector<8xf32> to vector<1x8xf32>
    %305 = vector.broadcast %304 : vector<1x8xf32> to vector<16x8xf32>
    %306 = arith.addf %301, %305 : vector<16x8xf32>
    %cst_160 = arith.constant dense<0.000000e+00> : vector<16x16xf32>
    %307 = tpu.matmul %290, %298, %cst_160 {dimension_numbers = #tpu.dot_dimension_numbers<[1], [1], [0], [0], [0, 0, 1, 0], [], []>} : vector<16x8xf32>, vector<16x8xf32>, vector<16x16xf32> -> vector<16x16xf32>
    %308 = arith.addf %307, %1 : vector<16x16xf32>
    %cst_161 = arith.constant dense<0xFF800000> : vector<16xf32>
    %309 = vector.multi_reduction <maximumf>, %308, %cst_161 [1] : vector<16x16xf32> to vector<16xf32>
    %310 = vector.shape_cast %309 : vector<16xf32> to vector<16x1xf32>
    %311 = vector.broadcast %310 : vector<16x1xf32> to vector<16x16xf32>
    %312 = arith.subf %308, %311 : vector<16x16xf32>
    %313 = math.exp %312 : vector<16x16xf32>
    %cst_162 = arith.constant dense<0.000000e+00> : vector<16xf32>
    %314 = vector.multi_reduction <add>, %313, %cst_162 [1] : vector<16x16xf32> to vector<16xf32>
    %315 = vector.shape_cast %314 : vector<16xf32> to vector<16x1xf32>
    %cst_163 = arith.constant 1.000000e+00 : f32
    %316 = vector.broadcast %cst_163 : f32 to vector<16x1xf32>
    %317 = arith.divf %316, %315 : vector<16x1xf32>
    %318 = vector.broadcast %317 : vector<16x1xf32> to vector<16x16xf32>
    %319 = arith.mulf %313, %318 : vector<16x16xf32>
    %cst_164 = arith.constant dense<0.000000e+00> : vector<16x8xf32>
    %320 = tpu.matmul %319, %306, %cst_164 {dimension_numbers = #tpu.dot_dimension_numbers<[1], [0], [0], [1], [0, 0, 1, 1], [], []>} : vector<16x16xf32>, vector<16x8xf32>, vector<16x8xf32> -> vector<16x8xf32>
    %c1_165 = arith.constant 1 : index
    %c0_166 = arith.constant 0 : index
    %c1_167 = arith.constant 1 : index
    %c0_168 = arith.constant 0 : index
    %c0_169 = arith.constant 0 : index
    %321 = vector.load %arg3[%c1_165, %c0_166, %c1_167, %c0_168, %c0_169] : memref<2x3x4x32x8xf32, #tpu.memory_space<vmem>>, vector<1x1x1x32x8xf32>
    %322 = vector.shape_cast %321 : vector<1x1x1x32x8xf32> to vector<32x8xf32>
    %cst_170 = arith.constant dense<0.000000e+00> : vector<16x8xf32>
    %323 = tpu.matmul %276, %322, %cst_170 {dimension_numbers = #tpu.dot_dimension_numbers<[1], [0], [0], [1], [0, 0, 1, 1], [], []>} : vector<16x32xf32>, vector<32x8xf32>, vector<16x8xf32> -> vector<16x8xf32>
    %324 = vector.extract_strided_slice %278 {offsets = [1, 0], sizes = [1, 8], strides = [1, 1]} : vector<4x8xf32> to vector<1x8xf32>
    %325 = vector.shape_cast %324 : vector<1x8xf32> to vector<8xf32>
    %326 = vector.shape_cast %325 : vector<8xf32> to vector<1x8xf32>
    %327 = vector.broadcast %326 : vector<1x8xf32> to vector<16x8xf32>
    %328 = arith.addf %323, %327 : vector<16x8xf32>
    %c1_171 = arith.constant 1 : index
    %c1_172 = arith.constant 1 : index
    %c1_173 = arith.constant 1 : index
    %c0_174 = arith.constant 0 : index
    %c0_175 = arith.constant 0 : index
    %329 = vector.load %arg3[%c1_171, %c1_172, %c1_173, %c0_174, %c0_175] : memref<2x3x4x32x8xf32, #tpu.memory_space<vmem>>, vector<1x1x1x32x8xf32>
    %330 = vector.shape_cast %329 : vector<1x1x1x32x8xf32> to vector<32x8xf32>
    %cst_176 = arith.constant dense<0.000000e+00> : vector<16x8xf32>
    %331 = tpu.matmul %276, %330, %cst_176 {dimension_numbers = #tpu.dot_dimension_numbers<[1], [0], [0], [1], [0, 0, 1, 1], [], []>} : vector<16x32xf32>, vector<32x8xf32>, vector<16x8xf32> -> vector<16x8xf32>
    %332 = vector.extract_strided_slice %280 {offsets = [1, 0], sizes = [1, 8], strides = [1, 1]} : vector<4x8xf32> to vector<1x8xf32>
    %333 = vector.shape_cast %332 : vector<1x8xf32> to vector<8xf32>
    %334 = vector.shape_cast %333 : vector<8xf32> to vector<1x8xf32>
    %335 = vector.broadcast %334 : vector<1x8xf32> to vector<16x8xf32>
    %336 = arith.addf %331, %335 : vector<16x8xf32>
    %c1_177 = arith.constant 1 : index
    %c2_178 = arith.constant 2 : index
    %c1_179 = arith.constant 1 : index
    %c0_180 = arith.constant 0 : index
    %c0_181 = arith.constant 0 : index
    %337 = vector.load %arg3[%c1_177, %c2_178, %c1_179, %c0_180, %c0_181] : memref<2x3x4x32x8xf32, #tpu.memory_space<vmem>>, vector<1x1x1x32x8xf32>
    %338 = vector.shape_cast %337 : vector<1x1x1x32x8xf32> to vector<32x8xf32>
    %cst_182 = arith.constant dense<0.000000e+00> : vector<16x8xf32>
    %339 = tpu.matmul %276, %338, %cst_182 {dimension_numbers = #tpu.dot_dimension_numbers<[1], [0], [0], [1], [0, 0, 1, 1], [], []>} : vector<16x32xf32>, vector<32x8xf32>, vector<16x8xf32> -> vector<16x8xf32>
    %340 = vector.extract_strided_slice %282 {offsets = [1, 0], sizes = [1, 8], strides = [1, 1]} : vector<4x8xf32> to vector<1x8xf32>
    %341 = vector.shape_cast %340 : vector<1x8xf32> to vector<8xf32>
    %342 = vector.shape_cast %341 : vector<8xf32> to vector<1x8xf32>
    %343 = vector.broadcast %342 : vector<1x8xf32> to vector<16x8xf32>
    %344 = arith.addf %339, %343 : vector<16x8xf32>
    %cst_183 = arith.constant dense<0.000000e+00> : vector<16x16xf32>
    %345 = tpu.matmul %328, %336, %cst_183 {dimension_numbers = #tpu.dot_dimension_numbers<[1], [1], [0], [0], [0, 0, 1, 0], [], []>} : vector<16x8xf32>, vector<16x8xf32>, vector<16x16xf32> -> vector<16x16xf32>
    %346 = arith.addf %345, %1 : vector<16x16xf32>
    %cst_184 = arith.constant dense<0xFF800000> : vector<16xf32>
    %347 = vector.multi_reduction <maximumf>, %346, %cst_184 [1] : vector<16x16xf32> to vector<16xf32>
    %348 = vector.shape_cast %347 : vector<16xf32> to vector<16x1xf32>
    %349 = vector.broadcast %348 : vector<16x1xf32> to vector<16x16xf32>
    %350 = arith.subf %346, %349 : vector<16x16xf32>
    %351 = math.exp %350 : vector<16x16xf32>
    %cst_185 = arith.constant dense<0.000000e+00> : vector<16xf32>
    %352 = vector.multi_reduction <add>, %351, %cst_185 [1] : vector<16x16xf32> to vector<16xf32>
    %353 = vector.shape_cast %352 : vector<16xf32> to vector<16x1xf32>
    %cst_186 = arith.constant 1.000000e+00 : f32
    %354 = vector.broadcast %cst_186 : f32 to vector<16x1xf32>
    %355 = arith.divf %354, %353 : vector<16x1xf32>
    %356 = vector.broadcast %355 : vector<16x1xf32> to vector<16x16xf32>
    %357 = arith.mulf %351, %356 : vector<16x16xf32>
    %cst_187 = arith.constant dense<0.000000e+00> : vector<16x8xf32>
    %358 = tpu.matmul %357, %344, %cst_187 {dimension_numbers = #tpu.dot_dimension_numbers<[1], [0], [0], [1], [0, 0, 1, 1], [], []>} : vector<16x16xf32>, vector<16x8xf32>, vector<16x8xf32> -> vector<16x8xf32>
    %c1_188 = arith.constant 1 : index
    %c0_189 = arith.constant 0 : index
    %c2_190 = arith.constant 2 : index
    %c0_191 = arith.constant 0 : index
    %c0_192 = arith.constant 0 : index
    %359 = vector.load %arg3[%c1_188, %c0_189, %c2_190, %c0_191, %c0_192] : memref<2x3x4x32x8xf32, #tpu.memory_space<vmem>>, vector<1x1x1x32x8xf32>
    %360 = vector.shape_cast %359 : vector<1x1x1x32x8xf32> to vector<32x8xf32>
    %cst_193 = arith.constant dense<0.000000e+00> : vector<16x8xf32>
    %361 = tpu.matmul %276, %360, %cst_193 {dimension_numbers = #tpu.dot_dimension_numbers<[1], [0], [0], [1], [0, 0, 1, 1], [], []>} : vector<16x32xf32>, vector<32x8xf32>, vector<16x8xf32> -> vector<16x8xf32>
    %362 = vector.extract_strided_slice %278 {offsets = [2, 0], sizes = [1, 8], strides = [1, 1]} : vector<4x8xf32> to vector<1x8xf32>
    %363 = vector.shape_cast %362 : vector<1x8xf32> to vector<8xf32>
    %364 = vector.shape_cast %363 : vector<8xf32> to vector<1x8xf32>
    %365 = vector.broadcast %364 : vector<1x8xf32> to vector<16x8xf32>
    %366 = arith.addf %361, %365 : vector<16x8xf32>
    %c1_194 = arith.constant 1 : index
    %c1_195 = arith.constant 1 : index
    %c2_196 = arith.constant 2 : index
    %c0_197 = arith.constant 0 : index
    %c0_198 = arith.constant 0 : index
    %367 = vector.load %arg3[%c1_194, %c1_195, %c2_196, %c0_197, %c0_198] : memref<2x3x4x32x8xf32, #tpu.memory_space<vmem>>, vector<1x1x1x32x8xf32>
    %368 = vector.shape_cast %367 : vector<1x1x1x32x8xf32> to vector<32x8xf32>
    %cst_199 = arith.constant dense<0.000000e+00> : vector<16x8xf32>
    %369 = tpu.matmul %276, %368, %cst_199 {dimension_numbers = #tpu.dot_dimension_numbers<[1], [0], [0], [1], [0, 0, 1, 1], [], []>} : vector<16x32xf32>, vector<32x8xf32>, vector<16x8xf32> -> vector<16x8xf32>
    %370 = vector.extract_strided_slice %280 {offsets = [2, 0], sizes = [1, 8], strides = [1, 1]} : vector<4x8xf32> to vector<1x8xf32>
    %371 = vector.shape_cast %370 : vector<1x8xf32> to vector<8xf32>
    %372 = vector.shape_cast %371 : vector<8xf32> to vector<1x8xf32>
    %373 = vector.broadcast %372 : vector<1x8xf32> to vector<16x8xf32>
    %374 = arith.addf %369, %373 : vector<16x8xf32>
    %c1_200 = arith.constant 1 : index
    %c2_201 = arith.constant 2 : index
    %c2_202 = arith.constant 2 : index
    %c0_203 = arith.constant 0 : index
    %c0_204 = arith.constant 0 : index
    %375 = vector.load %arg3[%c1_200, %c2_201, %c2_202, %c0_203, %c0_204] : memref<2x3x4x32x8xf32, #tpu.memory_space<vmem>>, vector<1x1x1x32x8xf32>
    %376 = vector.shape_cast %375 : vector<1x1x1x32x8xf32> to vector<32x8xf32>
    %cst_205 = arith.constant dense<0.000000e+00> : vector<16x8xf32>
    %377 = tpu.matmul %276, %376, %cst_205 {dimension_numbers = #tpu.dot_dimension_numbers<[1], [0], [0], [1], [0, 0, 1, 1], [], []>} : vector<16x32xf32>, vector<32x8xf32>, vector<16x8xf32> -> vector<16x8xf32>
    %378 = vector.extract_strided_slice %282 {offsets = [2, 0], sizes = [1, 8], strides = [1, 1]} : vector<4x8xf32> to vector<1x8xf32>
    %379 = vector.shape_cast %378 : vector<1x8xf32> to vector<8xf32>
    %380 = vector.shape_cast %379 : vector<8xf32> to vector<1x8xf32>
    %381 = vector.broadcast %380 : vector<1x8xf32> to vector<16x8xf32>
    %382 = arith.addf %377, %381 : vector<16x8xf32>
    %cst_206 = arith.constant dense<0.000000e+00> : vector<16x16xf32>
    %383 = tpu.matmul %366, %374, %cst_206 {dimension_numbers = #tpu.dot_dimension_numbers<[1], [1], [0], [0], [0, 0, 1, 0], [], []>} : vector<16x8xf32>, vector<16x8xf32>, vector<16x16xf32> -> vector<16x16xf32>
    %384 = arith.addf %383, %1 : vector<16x16xf32>
    %cst_207 = arith.constant dense<0xFF800000> : vector<16xf32>
    %385 = vector.multi_reduction <maximumf>, %384, %cst_207 [1] : vector<16x16xf32> to vector<16xf32>
    %386 = vector.shape_cast %385 : vector<16xf32> to vector<16x1xf32>
    %387 = vector.broadcast %386 : vector<16x1xf32> to vector<16x16xf32>
    %388 = arith.subf %384, %387 : vector<16x16xf32>
    %389 = math.exp %388 : vector<16x16xf32>
    %cst_208 = arith.constant dense<0.000000e+00> : vector<16xf32>
    %390 = vector.multi_reduction <add>, %389, %cst_208 [1] : vector<16x16xf32> to vector<16xf32>
    %391 = vector.shape_cast %390 : vector<16xf32> to vector<16x1xf32>
    %cst_209 = arith.constant 1.000000e+00 : f32
    %392 = vector.broadcast %cst_209 : f32 to vector<16x1xf32>
    %393 = arith.divf %392, %391 : vector<16x1xf32>
    %394 = vector.broadcast %393 : vector<16x1xf32> to vector<16x16xf32>
    %395 = arith.mulf %389, %394 : vector<16x16xf32>
    %cst_210 = arith.constant dense<0.000000e+00> : vector<16x8xf32>
    %396 = tpu.matmul %395, %382, %cst_210 {dimension_numbers = #tpu.dot_dimension_numbers<[1], [0], [0], [1], [0, 0, 1, 1], [], []>} : vector<16x16xf32>, vector<16x8xf32>, vector<16x8xf32> -> vector<16x8xf32>
    %c1_211 = arith.constant 1 : index
    %c0_212 = arith.constant 0 : index
    %c3_213 = arith.constant 3 : index
    %c0_214 = arith.constant 0 : index
    %c0_215 = arith.constant 0 : index
    %397 = vector.load %arg3[%c1_211, %c0_212, %c3_213, %c0_214, %c0_215] : memref<2x3x4x32x8xf32, #tpu.memory_space<vmem>>, vector<1x1x1x32x8xf32>
    %398 = vector.shape_cast %397 : vector<1x1x1x32x8xf32> to vector<32x8xf32>
    %cst_216 = arith.constant dense<0.000000e+00> : vector<16x8xf32>
    %399 = tpu.matmul %276, %398, %cst_216 {dimension_numbers = #tpu.dot_dimension_numbers<[1], [0], [0], [1], [0, 0, 1, 1], [], []>} : vector<16x32xf32>, vector<32x8xf32>, vector<16x8xf32> -> vector<16x8xf32>
    %400 = vector.extract_strided_slice %278 {offsets = [3, 0], sizes = [1, 8], strides = [1, 1]} : vector<4x8xf32> to vector<1x8xf32>
    %401 = vector.shape_cast %400 : vector<1x8xf32> to vector<8xf32>
    %402 = vector.shape_cast %401 : vector<8xf32> to vector<1x8xf32>
    %403 = vector.broadcast %402 : vector<1x8xf32> to vector<16x8xf32>
    %404 = arith.addf %399, %403 : vector<16x8xf32>
    %c1_217 = arith.constant 1 : index
    %c1_218 = arith.constant 1 : index
    %c3_219 = arith.constant 3 : index
    %c0_220 = arith.constant 0 : index
    %c0_221 = arith.constant 0 : index
    %405 = vector.load %arg3[%c1_217, %c1_218, %c3_219, %c0_220, %c0_221] : memref<2x3x4x32x8xf32, #tpu.memory_space<vmem>>, vector<1x1x1x32x8xf32>
    %406 = vector.shape_cast %405 : vector<1x1x1x32x8xf32> to vector<32x8xf32>
    %cst_222 = arith.constant dense<0.000000e+00> : vector<16x8xf32>
    %407 = tpu.matmul %276, %406, %cst_222 {dimension_numbers = #tpu.dot_dimension_numbers<[1], [0], [0], [1], [0, 0, 1, 1], [], []>} : vector<16x32xf32>, vector<32x8xf32>, vector<16x8xf32> -> vector<16x8xf32>
    %408 = vector.extract_strided_slice %280 {offsets = [3, 0], sizes = [1, 8], strides = [1, 1]} : vector<4x8xf32> to vector<1x8xf32>
    %409 = vector.shape_cast %408 : vector<1x8xf32> to vector<8xf32>
    %410 = vector.shape_cast %409 : vector<8xf32> to vector<1x8xf32>
    %411 = vector.broadcast %410 : vector<1x8xf32> to vector<16x8xf32>
    %412 = arith.addf %407, %411 : vector<16x8xf32>
    %c1_223 = arith.constant 1 : index
    %c2_224 = arith.constant 2 : index
    %c3_225 = arith.constant 3 : index
    %c0_226 = arith.constant 0 : index
    %c0_227 = arith.constant 0 : index
    %413 = vector.load %arg3[%c1_223, %c2_224, %c3_225, %c0_226, %c0_227] : memref<2x3x4x32x8xf32, #tpu.memory_space<vmem>>, vector<1x1x1x32x8xf32>
    %414 = vector.shape_cast %413 : vector<1x1x1x32x8xf32> to vector<32x8xf32>
    %cst_228 = arith.constant dense<0.000000e+00> : vector<16x8xf32>
    %415 = tpu.matmul %276, %414, %cst_228 {dimension_numbers = #tpu.dot_dimension_numbers<[1], [0], [0], [1], [0, 0, 1, 1], [], []>} : vector<16x32xf32>, vector<32x8xf32>, vector<16x8xf32> -> vector<16x8xf32>
    %416 = vector.extract_strided_slice %282 {offsets = [3, 0], sizes = [1, 8], strides = [1, 1]} : vector<4x8xf32> to vector<1x8xf32>
    %417 = vector.shape_cast %416 : vector<1x8xf32> to vector<8xf32>
    %418 = vector.shape_cast %417 : vector<8xf32> to vector<1x8xf32>
    %419 = vector.broadcast %418 : vector<1x8xf32> to vector<16x8xf32>
    %420 = arith.addf %415, %419 : vector<16x8xf32>
    %cst_229 = arith.constant dense<0.000000e+00> : vector<16x16xf32>
    %421 = tpu.matmul %404, %412, %cst_229 {dimension_numbers = #tpu.dot_dimension_numbers<[1], [1], [0], [0], [0, 0, 1, 0], [], []>} : vector<16x8xf32>, vector<16x8xf32>, vector<16x16xf32> -> vector<16x16xf32>
    %422 = arith.addf %421, %1 : vector<16x16xf32>
    %cst_230 = arith.constant dense<0xFF800000> : vector<16xf32>
    %423 = vector.multi_reduction <maximumf>, %422, %cst_230 [1] : vector<16x16xf32> to vector<16xf32>
    %424 = vector.shape_cast %423 : vector<16xf32> to vector<16x1xf32>
    %425 = vector.broadcast %424 : vector<16x1xf32> to vector<16x16xf32>
    %426 = arith.subf %422, %425 : vector<16x16xf32>
    %427 = math.exp %426 : vector<16x16xf32>
    %cst_231 = arith.constant dense<0.000000e+00> : vector<16xf32>
    %428 = vector.multi_reduction <add>, %427, %cst_231 [1] : vector<16x16xf32> to vector<16xf32>
    %429 = vector.shape_cast %428 : vector<16xf32> to vector<16x1xf32>
    %cst_232 = arith.constant 1.000000e+00 : f32
    %430 = vector.broadcast %cst_232 : f32 to vector<16x1xf32>
    %431 = arith.divf %430, %429 : vector<16x1xf32>
    %432 = vector.broadcast %431 : vector<16x1xf32> to vector<16x16xf32>
    %433 = arith.mulf %427, %432 : vector<16x16xf32>
    %cst_233 = arith.constant dense<0.000000e+00> : vector<16x8xf32>
    %434 = tpu.matmul %433, %420, %cst_233 {dimension_numbers = #tpu.dot_dimension_numbers<[1], [0], [0], [1], [0, 0, 1, 1], [], []>} : vector<16x16xf32>, vector<16x8xf32>, vector<16x8xf32> -> vector<16x8xf32>
    %435 = tpu.concatenate %320, %358, %396, %434 in 1 : vector<16x8xf32>, vector<16x8xf32>, vector<16x8xf32>, vector<16x8xf32> -> vector<16x32xf32>
    %c160 = arith.constant 160 : index
    %c0_234 = arith.constant 0 : index
    %436 = vector.load %arg5[%c160, %c0_234] : memref<224x128xf32, #tpu.memory_space<vmem>>, vector<32x32xf32>
    %cst_235 = arith.constant dense<0.000000e+00> : vector<16x32xf32>
    %437 = tpu.matmul %435, %436, %cst_235 {dimension_numbers = #tpu.dot_dimension_numbers<[1], [0], [0], [1], [0, 0, 1, 1], [], []>} : vector<16x32xf32>, vector<32x32xf32>, vector<16x32xf32> -> vector<16x32xf32>
    %438 = arith.addf %248, %437 : vector<16x32xf32>
    %439 = vector.extract_strided_slice %2 {offsets = [13, 0], sizes = [1, 32], strides = [1, 1]} : vector<16x128xf32> to vector<1x32xf32>
    %440 = vector.shape_cast %439 : vector<1x32xf32> to vector<32xf32>
    %441 = vector.shape_cast %440 : vector<32xf32> to vector<1x32xf32>
    %442 = vector.broadcast %441 : vector<1x32xf32> to vector<16x32xf32>
    %443 = arith.addf %438, %442 : vector<16x32xf32>
    %444 = vector.extract_strided_slice %2 {offsets = [3, 0], sizes = [1, 32], strides = [1, 1]} : vector<16x128xf32> to vector<1x32xf32>
    %445 = vector.shape_cast %444 : vector<1x32xf32> to vector<32xf32>
    %446 = vector.extract_strided_slice %2 {offsets = [8, 0], sizes = [1, 32], strides = [1, 1]} : vector<16x128xf32> to vector<1x32xf32>
    %447 = vector.shape_cast %446 : vector<1x32xf32> to vector<32xf32>
    %cst_236 = arith.constant dense<0.000000e+00> : vector<16xf32>
    %448 = vector.multi_reduction <add>, %443, %cst_236 [1] : vector<16x32xf32> to vector<16xf32>
    %449 = vector.shape_cast %448 : vector<16xf32> to vector<16x1xf32>
    %cst_237 = arith.constant 3.200000e+01 : f32
    %450 = vector.broadcast %cst_237 : f32 to vector<16x1xf32>
    %451 = arith.divf %449, %450 : vector<16x1xf32>
    %452 = vector.broadcast %451 : vector<16x1xf32> to vector<16x32xf32>
    %453 = arith.subf %443, %452 : vector<16x32xf32>
    %454 = arith.mulf %453, %453 : vector<16x32xf32>
    %cst_238 = arith.constant dense<0.000000e+00> : vector<16xf32>
    %455 = vector.multi_reduction <add>, %454, %cst_238 [1] : vector<16x32xf32> to vector<16xf32>
    %456 = vector.shape_cast %455 : vector<16xf32> to vector<16x1xf32>
    %cst_239 = arith.constant 3.200000e+01 : f32
    %457 = vector.broadcast %cst_239 : f32 to vector<16x1xf32>
    %458 = arith.divf %456, %457 : vector<16x1xf32>
    %459 = vector.broadcast %451 : vector<16x1xf32> to vector<16x32xf32>
    %460 = arith.subf %443, %459 : vector<16x32xf32>
    %cst_240 = arith.constant 9.99999974E-6 : f32
    %461 = vector.broadcast %cst_240 : f32 to vector<16x1xf32>
    %462 = arith.addf %458, %461 : vector<16x1xf32>
    %463 = math.rsqrt %462 : vector<16x1xf32>
    %464 = vector.broadcast %463 : vector<16x1xf32> to vector<16x32xf32>
    %465 = arith.mulf %460, %464 : vector<16x32xf32>
    %466 = vector.shape_cast %445 : vector<32xf32> to vector<1x32xf32>
    %467 = vector.broadcast %466 : vector<1x32xf32> to vector<16x32xf32>
    %468 = arith.mulf %465, %467 : vector<16x32xf32>
    %469 = vector.shape_cast %447 : vector<32xf32> to vector<1x32xf32>
    %470 = vector.broadcast %469 : vector<1x32xf32> to vector<16x32xf32>
    %471 = arith.addf %468, %470 : vector<16x32xf32>
    %c96 = arith.constant 96 : index
    %c0_241 = arith.constant 0 : index
    %472 = vector.load %arg5[%c96, %c0_241] : memref<224x128xf32, #tpu.memory_space<vmem>>, vector<32x128xf32>
    %cst_242 = arith.constant dense<0.000000e+00> : vector<16x128xf32>
    %473 = tpu.matmul %471, %472, %cst_242 {dimension_numbers = #tpu.dot_dimension_numbers<[1], [0], [0], [1], [0, 0, 1, 1], [], []>} : vector<16x32xf32>, vector<32x128xf32>, vector<16x128xf32> -> vector<16x128xf32>
    %474 = vector.extract_strided_slice %2 {offsets = [11, 0], sizes = [1, 128], strides = [1, 1]} : vector<16x128xf32> to vector<1x128xf32>
    %475 = vector.shape_cast %474 : vector<1x128xf32> to vector<128xf32>
    %476 = vector.shape_cast %475 : vector<128xf32> to vector<1x128xf32>
    %477 = vector.broadcast %476 : vector<1x128xf32> to vector<16x128xf32>
    %478 = arith.addf %473, %477 : vector<16x128xf32>
    %cst_243 = arith.constant 5.000000e-01 : f32
    %479 = vector.broadcast %cst_243 : f32 to vector<16x128xf32>
    %480 = arith.mulf %479, %478 : vector<16x128xf32>
    %cst_244 = arith.constant 0.707106769 : f32
    %481 = vector.broadcast %cst_244 : f32 to vector<16x128xf32>
    %482 = arith.mulf %478, %481 : vector<16x128xf32>
    %483 = math.erf %482 : vector<16x128xf32>
    %cst_245 = arith.constant 1.000000e+00 : f32
    %484 = vector.broadcast %cst_245 : f32 to vector<16x128xf32>
    %485 = arith.addf %484, %483 : vector<16x128xf32>
    %486 = arith.mulf %480, %485 : vector<16x128xf32>
    %c128 = arith.constant 128 : index
    %c0_246 = arith.constant 0 : index
    %487 = vector.load %arg5[%c128, %c0_246] : memref<224x128xf32, #tpu.memory_space<vmem>>, vector<32x128xf32>
    %cst_247 = arith.constant dense<0.000000e+00> : vector<16x32xf32>
    %488 = tpu.matmul %486, %487, %cst_247 {dimension_numbers = #tpu.dot_dimension_numbers<[1], [1], [0], [0], [0, 0, 1, 0], [], []>} : vector<16x128xf32>, vector<32x128xf32>, vector<16x32xf32> -> vector<16x32xf32>
    %489 = arith.addf %443, %488 : vector<16x32xf32>
    %490 = vector.extract_strided_slice %2 {offsets = [15, 0], sizes = [1, 32], strides = [1, 1]} : vector<16x128xf32> to vector<1x32xf32>
    %491 = vector.shape_cast %490 : vector<1x32xf32> to vector<32xf32>
    %492 = vector.shape_cast %491 : vector<32xf32> to vector<1x32xf32>
    %493 = vector.broadcast %492 : vector<1x32xf32> to vector<16x32xf32>
    %494 = arith.addf %489, %493 : vector<16x32xf32>
    %495 = vector.shape_cast %494 : vector<16x32xf32> to vector<2x8x32xf32>
    %496 = vector.extract_strided_slice %495 {offsets = [0, 7, 0], sizes = [2, 1, 32], strides = [1, 1, 1]} : vector<2x8x32xf32> to vector<2x1x32xf32>
    %497 = vector.shape_cast %496 : vector<2x1x32xf32> to vector<2x32xf32>
    %498 = vector.extract_strided_slice %2 {offsets = [4, 0], sizes = [1, 32], strides = [1, 1]} : vector<16x128xf32> to vector<1x32xf32>
    %499 = vector.shape_cast %498 : vector<1x32xf32> to vector<32xf32>
    %500 = vector.extract_strided_slice %2 {offsets = [9, 0], sizes = [1, 32], strides = [1, 1]} : vector<16x128xf32> to vector<1x32xf32>
    %501 = vector.shape_cast %500 : vector<1x32xf32> to vector<32xf32>
    %cst_248 = arith.constant dense<0.000000e+00> : vector<2xf32>
    %502 = vector.multi_reduction <add>, %497, %cst_248 [1] : vector<2x32xf32> to vector<2xf32>
    %503 = vector.shape_cast %502 : vector<2xf32> to vector<2x1xf32>
    %cst_249 = arith.constant 3.200000e+01 : f32
    %504 = vector.broadcast %cst_249 : f32 to vector<2x1xf32>
    %505 = arith.divf %503, %504 : vector<2x1xf32>
    %506 = vector.broadcast %505 : vector<2x1xf32> to vector<2x32xf32>
    %507 = arith.subf %497, %506 : vector<2x32xf32>
    %508 = arith.mulf %507, %507 : vector<2x32xf32>
    %cst_250 = arith.constant dense<0.000000e+00> : vector<2xf32>
    %509 = vector.multi_reduction <add>, %508, %cst_250 [1] : vector<2x32xf32> to vector<2xf32>
    %510 = vector.shape_cast %509 : vector<2xf32> to vector<2x1xf32>
    %cst_251 = arith.constant 3.200000e+01 : f32
    %511 = vector.broadcast %cst_251 : f32 to vector<2x1xf32>
    %512 = arith.divf %510, %511 : vector<2x1xf32>
    %513 = vector.broadcast %505 : vector<2x1xf32> to vector<2x32xf32>
    %514 = arith.subf %497, %513 : vector<2x32xf32>
    %cst_252 = arith.constant 9.99999974E-6 : f32
    %515 = vector.broadcast %cst_252 : f32 to vector<2x1xf32>
    %516 = arith.addf %512, %515 : vector<2x1xf32>
    %517 = math.rsqrt %516 : vector<2x1xf32>
    %518 = vector.broadcast %517 : vector<2x1xf32> to vector<2x32xf32>
    %519 = arith.mulf %514, %518 : vector<2x32xf32>
    %520 = vector.shape_cast %499 : vector<32xf32> to vector<1x32xf32>
    %521 = vector.broadcast %520 : vector<1x32xf32> to vector<2x32xf32>
    %522 = arith.mulf %519, %521 : vector<2x32xf32>
    %523 = vector.shape_cast %501 : vector<32xf32> to vector<1x32xf32>
    %524 = vector.broadcast %523 : vector<1x32xf32> to vector<2x32xf32>
    %525 = arith.addf %522, %524 : vector<2x32xf32>
    %c192 = arith.constant 192 : index
    %c0_253 = arith.constant 0 : index
    %526 = vector.load %arg5[%c192, %c0_253] : memref<224x128xf32, #tpu.memory_space<vmem>>, vector<32x128xf32>
    %cst_254 = arith.constant dense<0.000000e+00> : vector<2x128xf32>
    %527 = tpu.matmul %525, %526, %cst_254 {dimension_numbers = #tpu.dot_dimension_numbers<[1], [0], [0], [1], [0, 0, 1, 1], [], []>} : vector<2x32xf32>, vector<32x128xf32>, vector<2x128xf32> -> vector<2x128xf32>
    %c0_255 = arith.constant 0 : index
    %c0_256 = arith.constant 0 : index
    %528 = vector.load %arg6[%c0_255, %c0_256] : memref<2x128xf32, #tpu.memory_space<vmem>>, vector<2x128xf32>
    tpu.vector_store %arg6[%c0_255, %c0_256], %527 {strides = array<i32>} : memref<2x128xf32, #tpu.memory_space<vmem>>, vector<2x128xf32>,
    return
  }
}

</mosaic_0001>

<bundles_post_ra>
// kernel: gpt_forward.1
= control target key start
LH: loop header
LB: loop body
LE: loop exit
PB: predicated region body
PF: predicated region fallthrough
CT: control target
= control target key end

     0   :  { %vm30_vm0 = vcmask 261120   ;;  %s3699_s0 = inlined_call_operand.vmem [shape: f32[16,32], index: 0, kind: input, shape index: {}]   ;;  %s3700_s1 = inlined_call_operand.vmem [shape: f32[16,16], index: 1, kind: input, shape index: {}]   ;;  %s3701_s2 = inlined_call_operand.vmem [shape: f32[16,128], index: 2, kind: input, shape index: {}]   ;;  %s3702_s3 = inlined_call_operand.vmem [shape: f32[2,3,4,32,8], index: 3, kind: input, shape index: {}]   ;;  %s3703_s4 = inlined_call_operand.vmem [shape: f32[2,3,4,8], index: 4, kind: input, shape index: {}]   ;;  %s3704_s5 = inlined_call_operand.vmem [shape: f32[224,128], index: 5, kind: input, shape index: {}]   ;;  %s3705_s6 = inlined_call_operand.hbm [shape: f32[2,128], index: 6, kind: output, shape index: {}]  }
   0x1   :  { %v24_v0 = vld [vmem:[%s3699_s0] sm:$0xff] }
   0x2   :  { %11 = vsyncpa [#allocation3], 0  ;;  %v31_v1 = vsel %vm30_vm0, %v24_v0, 0.0  ;;  %v25_v2 = vld [vmem:[%s3699_s0 + $0x8] sm:$0xff]  ;;  %v2778_v4 = vmov 32.0   ;;  %v96_v21 = vld [vmem:[%s3702_s3 + $0x18] sm:$0xff] }
   0x3   :  { %32 = vadd.xlane.f32.xlu0 %v31_v1  ;;  %v34_v3 = vsel %vm30_vm0, %v25_v2, 0.0  ;;  %2651 = vrcp.f32 %v2778_v4  ;;  %v2443_v22 = vld [vmem:[%s3702_s3 + $0x98] sm:$0xff]  ;;  %116 = vmatpush.msra.mxu0 %v96_v21  ;;  %v95_v24 = vld [vmem:[%s3702_s3 + $0x10] sm:$0xff]  ;;  %v94_v27 = vld [vmem:[%s3702_s3 + $0x8] sm:$0xff]  ;;  %vm185_vm8 = vcmask 64512   ;;  %vm221_vm9 = vcmask 130048  }
   0x4   :  { %v2449_v23 = vld [vmem:[%s3702_s3 + $0x118] sm:$0xff]  ;;  %145 = vmatpush.msra.mxu1 %v2443_v22  ;;  %v2442_v25 = vld [vmem:[%s3702_s3 + $0x90] sm:$0xff]  ;;  %2642 = vmatpush.msra.mxu3 %v96_v21  ;;  %v2441_v28 = vld [vmem:[%s3702_s3 + $0x88] sm:$0xff]  ;;  %s2779_s13 = smov 8   ;;  %s2780_s14 = smov 16  }
   0x5   :  { %174 = vmatpush.msra.mxu2 %v2449_v23  ;;  %v2448_v26 = vld [vmem:[%s3702_s3 + $0x110] sm:$0xff]  ;;  %117 = vmatpush.msra.mxu0 %v95_v24  ;;  %v2447_v29 = vld [vmem:[%s3702_s3 + $0x108] sm:$0xff]  ;;  %v93_v30 = vld [vmem:[%s3702_s3] sm:$0xff]  ;;  %s2781_s15 = smov 24   ;;  %s2427_s23 = sshll.u32 %s3705_s6, 4  ;;  %s2428_s23 = int_to_ptr.hbm [resolvable:$true] %s2427_s23 }
   0x6   :  { %146 = vmatpush.msra.mxu1 %v2442_v25  ;;  %2643 = vmatpush.msra.mxu3 %v95_v24  ;;  %v2440_v31 = vld [vmem:[%s3702_s3 + $0x80] sm:$0xff]  ;;  %v2461_v36 = vld [vmem:[%s3702_s3 + $0x38] sm:$0xff]  ;;  %v2460_v38 = vld [vmem:[%s3702_s3 + $0x30] sm:$0xff] }
   0x7   :  { %175 = vmatpush.msra.mxu2 %v2448_v26  ;;  %118 = vmatpush.msra.mxu0 %v94_v27  ;;  %v2446_v32 = vld [vmem:[%s3702_s3 + $0x100] sm:$0xff]  ;;  %v2467_v37 = vld [vmem:[%s3702_s3 + $0xb8] sm:$0xff]  ;;  %v2466_v39 = vld [vmem:[%s3702_s3 + $0xb0] sm:$0xff] }
   0x8   :  { %147 = vmatpush.msra.mxu1 %v2441_v28  ;;  %2644 = vmatpush.msra.mxu3 %v94_v27  ;;  %v2459_v41 = vld [vmem:[%s3702_s3 + $0x28] sm:$0xff]  ;;  %v2458_v44 = vld [vmem:[%s3702_s3 + $0x20] sm:$0xff]  ;;  %v2484_v4 = vld [vmem:[%s3702_s3 + $0x50] sm:$0xff] }
   0x9   :  { %v2652_v5 = vpop.eup %2651  ;;  %176 = vmatpush.msra.mxu2 %v2447_v29  ;;  %119 = vmatpush.msra.mxu0 %v93_v30  ;;  %v2465_v42 = vld [vmem:[%s3702_s3 + $0xa8] sm:$0xff]  ;;  %v2464_v45 = vld [vmem:[%s3702_s3 + $0xa0] sm:$0xff]  ;;  %v2473_v22 = vld [vmem:[%s3702_s3 + $0x138] sm:$0xff] }
   0xa   :  { %v38_v6 = vmul.f32 32.0, %v2652_v5  ;;  %vm42_vm1 = vweird.f32 %v2652_v5  ;;  %148 = vmatpush.msra.mxu1 %v2440_v31  ;;  %2645 = vmatpush.msra.mxu3 %v93_v30  ;;  %v28_v51 = vld [vmem:[%s3701_s2] sm:$0xff]  ;;  %v2472_v27 = vld [vmem:[%s3702_s3 + $0x130] sm:$0xff]  ;;  %v2471_v29 = vld [vmem:[%s3702_s3 + $0x128] sm:$0xff] }
   0xb   :  { %35 = vadd.xlane.f32.xlu0 %v34_v3  ;;  %177 = vmatpush.msra.mxu2 %v2446_v32  ;;  %v82_v56 = vperm.slane %v28_v51, 0  ;;  %v85_v59 = vperm.slane %v28_v51, 5  ;;  %v2470_v30 = vld [vmem:[%s3702_s3 + $0x120] sm:$0xff]  ;;  %v2491_v32 = vld [vmem:[%s3702_s3 + $0xd8] sm:$0xff] }
   0xc   :  { %v39_v7 = vsub.f32 1.0, %v38_v6  ;;  %319 = vmatpush.msrb.mxu1 %v2461_v36  ;;  %v2483_v6 = vld [vmem:[%s3702_s3 + $0x48] sm:$0xff] }
   0xd   :  { %348 = vmatpush.msrb.mxu2 %v2467_v37  ;;  %v2489_v36 = vld [vmem:[%s3702_s3 + $0xc8] sm:$0xff]  ;;  %v2488_v37 = vld [vmem:[%s3702_s3 + $0xc0] sm:$0xff] }
   0xe   :  { %v40_v8 = vmul.f32 %v2652_v5, %v39_v7  ;;  %320 = vmatpush.msrb.mxu1 %v2460_v38 }
   0xf   :  { %349 = vmatpush.msrb.mxu2 %v2466_v39 }
  0x10   :  { %v41_v9 = vadd.f32 %v2652_v5, %v40_v8  ;;  %321 = vmatpush.msrb.mxu1 %v2459_v41  ;;  %v2509_v41 = vld [vmem:[%s3702_s3 + $0x78] sm:$0xff] }
  0x11   :  { %350 = vmatpush.msrb.mxu2 %v2465_v42  ;;  %v2508_v42 = vld [vmem:[%s3702_s3 + $0x70] sm:$0xff] }
  0x12   :  { %v2826_v10 = vsel %vm42_vm1, %v2652_v5, %v41_v9  ;;  %322 = vmatpush.msrb.mxu1 %v2458_v44  ;;  %v2482_v9 = vld [vmem:[%s3702_s3 + $0x40] sm:$0xff]  ;;  %v2507_v44 = vld [vmem:[%s3702_s3 + $0x68] sm:$0xff] }
  0x13   :  { %351 = vmatpush.msrb.mxu2 %v2464_v45  ;;  %v2506_v45 = vld [vmem:[%s3702_s3 + $0x60] sm:$0xff] }
  0x76   :  { %v33_v11 = vpop.xlane.xlu0 %32 }
  0x77   :  { %v44_v12 = vmul.f32 %v2826_v10, %v33_v11 }
  0x79   :  { %v2829_v13 = vsub.f32 %v24_v0, %v44_v12  ;;  %v2950_v12 = vld [vmem:[%s3703_s4 + $0x4] sm:$0xf] }
  0x7a   :  { %v335_v38 = vperm.slane %v2950_v12, 1 }
  0x7b   :  { %v48_v14 = vmul.f32 %v2829_v13, %v2829_v13 }
  0x7d   :  { %v50_v15 = vsel %vm30_vm0, %v48_v14, 0.0 }
  0x7e   :  { %51 = vadd.xlane.f32.xlu1 %v50_v15  ;;  %v36_v16 = vpop.xlane.xlu0 %35 }
  0x7f   :  { %v45_v17 = vmul.f32 %v2826_v10, %v36_v16  ;;  %v2956_v16 = vld [vmem:[%s3703_s4] sm:$0xf] }
  0x81   :  { %v2835_v18 = vsub.f32 %v25_v2, %v45_v17  ;;  %v2485_v2 = vld [vmem:[%s3702_s3 + $0x58] sm:$0xff] }
  0x83   :  { %v49_v19 = vmul.f32 %v2835_v18, %v2835_v18 }
  0x85   :  { %v53_v20 = vsel %vm30_vm0, %v49_v19, 0.0  ;;  %v97_v19 = vperm.slane %v2956_v16, 0 }
  0x86   :  { %54 = vadd.xlane.f32.xlu1 %v53_v20 }
  0xf1   :  { %v52_v33 = vpop.xlane.xlu1 %51 }
  0xf2   :  { %v56_v34 = vmul.f32 %v52_v33, %v2826_v10 }
  0xf4   :  { %v58_v35 = vadd.f32 1e-05, %v56_v34 }
  0xf6   :  { %2653 = vrsqrt.f32 %v58_v35  ;;  %vm66_vm3 = vweird.f32 %v58_v35 }
  0xf9   :  { %v55_v40 = vpop.xlane.xlu1 %54 }
  0xfa   :  { %v57_v43 = vmul.f32 %v55_v40, %v2826_v10 }
  0xfc   :  { %v2654_v46 = vpop.eup %2653  ;;  %v59_v47 = vadd.f32 1e-05, %v57_v43 }
  0xfd   :  { %v61_v48 = vmul.f32 %v2654_v46, %v58_v35  ;;  %vm67_vm2 = vweird.f32 %v2654_v46  ;;  %v2490_v35 = vld [vmem:[%s3702_s3 + $0xd0] sm:$0xff] }
  0xfe   :  { %2655 = vrsqrt.f32 %v59_v47  ;;  %vm68_vm4 = vmor %vm66_vm3, %vm67_vm2  ;;  %vm76_vm6 = vweird.f32 %v59_v47 }
  0xff   :  { %v62_v49 = vmul.f32 %v2654_v46, %v61_v48 }
 0x101   :  { %v63_v50 = vmul.f32 0.5, %v62_v49 }
 0x103   :  { %v64_v52 = vsub.f32 1.5, %v63_v50  ;;  %v3030_v50 = vld [vmem:[%s3700_s1 + $0x8] sm:$0xff] }
 0x104   :  { %v2656_v53 = vpop.eup %2655 }
 0x105   :  { %v65_v54 = vmul.f32 %v2654_v46, %v64_v52  ;;  %v71_v55 = vmul.f32 %v2656_v53, %v59_v47  ;;  %vm77_vm5 = vweird.f32 %v2656_v53 }
 0x106   :  { %vm78_vm7 = vmor %vm76_vm6, %vm77_vm5 }
 0x107   :  { %v69_v57 = vsel %vm68_vm4, %v2654_v46, %v65_v54  ;;  %v72_v58 = vmul.f32 %v2656_v53, %v71_v55  ;;  %v3023_v46 = vld [vmem:[%s3700_s1] sm:$0xff] }
 0x108   :  { %v80_v60 = vmul.f32 %v69_v57, %v2829_v13  ;;  %v132_v13 = vperm.slane %v2950_v12, 0 }
 0x109   :  { %v73_v61 = vmul.f32 0.5, %v72_v58 }
 0x10a   :  { %v83_v62 = vmul.f32 %v82_v56, %v80_v60  ;;  %v536_v60 = vperm.slane %v2950_v12, 2 }
 0x10b   :  { %v74_v63 = vsub.f32 1.5, %v73_v61 }
 0x10c   :  { %v2906_v0 = vadd.f32 %v85_v59, %v83_v62 }
 0x10d   :  { %v75_v1 = vmul.f32 %v2656_v53, %v74_v63 }
 0x10e   :  { %2438 = vmatmul.msk.f32.vlgmr.msra.gmra.mxu0 %vm30_vm0, %v2906_v0  ;;  %2444 = vmatmul.msk.f32.vlgmr.msra.gmra.mxu1 %vm30_vm0, %v2906_v0 }
 0x10f   :  { %v79_v3 = vsel %vm78_vm7, %v2656_v53, %v75_v1  ;;  %2450 = vmatmul.msk.f32.vlgmr.msra.gmra.mxu2 %vm30_vm0, %v2906_v0 }
 0x110   :  { %v81_v5 = vmul.f32 %v79_v3, %v2835_v18  ;;  %520 = vmatpush.msra.mxu2 %v2485_v2  ;;  %v2961_v18 = vld [vmem:[%s3703_s4 + $0x8] sm:$0xf] }
 0x111   :  { %v161_v23 = vperm.slane %v2961_v18, 0  ;;  %v364_v55 = vperm.slane %v2961_v18, 1 }
 0x112   :  { %v84_v7 = vmul.f32 %v82_v56, %v81_v5  ;;  %521 = vmatpush.msra.mxu2 %v2484_v4 }
 0x114   :  { %v2924_v8 = vadd.f32 %v85_v59, %v84_v7  ;;  %522 = vmatpush.msra.mxu2 %v2483_v6 }
 0x116   :  { %2439 = vmatmul.msk.f32.vlgmr.msra.gmra.mxu3 %vm30_vm0, %v2924_v8  ;;  %2445 = vmatmul.msk.f32.gmra.mxu1 %vm30_vm0, %v2924_v8 }
 0x117   :  { %2451 = vmatmul.msk.f32.gmra.mxu2 %vm30_vm0, %v2924_v8 }
 0x118   :  { %523 = vmatpush.msra.mxu2 %v2482_v9 }
 0x11e   :  { %2462 = vmatmul.msk.f32.vlgmr.msrb.gmra.mxu1 %vm30_vm0, %v2906_v0 }
 0x11f   :  { %2468 = vmatmul.msk.f32.vlgmr.msrb.gmra.mxu2 %vm30_vm0, %v2906_v0 }
 0x126   :  { %2463 = vmatmul.msk.f32.gmra.mxu1 %vm30_vm0, %v2924_v8 }
 0x127   :  { %2469 = vmatmul.msk.f32.gmra.mxu2 %vm30_vm0, %v2924_v8 }
 0x12f   :  { %2486 = vmatmul.msk.f32.vlgmr.msra.gmra.mxu2 %vm30_vm0, %v2906_v0 }
 0x137   :  { %2487 = vmatmul.msk.f32.gmra.mxu2 %vm30_vm0, %v2924_v8 }
 0x18b   :  { %v150_v11 = vpop.f32.mrf.mxu1  ;;  %v121_v20 = vpop.f32.mrf.mxu0 }
 0x18c   :  { %v151_v21 = vadd.f32 %v150_v11, %v132_v13  ;;  %v122_v25 = vadd.f32 %v121_v20, %v97_v19 }
 0x192   :  { %v179_v14 = vpop.f32.mrf.mxu2 }
 0x193   :  { %v153_v15 = vpop.f32.mrf.mxu1  ;;  %v180_v28 = vadd.f32 %v179_v14, %v161_v23 }
 0x194   :  { %v154_v17 = vadd.f32 %v153_v15, %v132_v13 }
 0x196   :  { %2452 = vmatpush.xpose.msk.msrb.mxu3 %vm185_vm8, %v154_v17 }
 0x199   :  { %v124_v31 = vpop.f32.mrf.mxu3 }
 0x19a   :  { %v182_v24 = vpop.f32.mrf.mxu2  ;;  %2453 = vmatpush.xpose.msk.msrb.mxu3 %vm185_vm8, %v151_v21  ;;  %v125_v34 = vadd.f32 %v124_v31, %v97_v19 }
 0x19b   :  { %v183_v26 = vadd.f32 %v182_v24, %v161_v23 }
 0x19d   :  { %292 = vmatpush.msrb.mxu0 %v183_v26  ;;  %2454 = vmatmul.msk.f32.vlgmr.msrb.gmra.mxu3 %vm185_vm8, %v122_v25 }
 0x19e   :  { %377 = vmatpush.msra.mxu3 %v2473_v22 }
 0x19f   :  { %293 = vmatpush.msrb.mxu0 %v180_v28 }
 0x1a0   :  { %378 = vmatpush.msra.mxu3 %v2472_v27 }
 0x1a2   :  { %379 = vmatpush.msra.mxu3 %v2471_v29  ;;  %v353_v33 = vpop.f32.mrf.mxu2 }
 0x1a3   :  { %v354_v43 = vadd.f32 %v353_v33, %v335_v38 }
 0x1a4   :  { %380 = vmatpush.msra.mxu3 %v2470_v30 }
 0x1a5   :  { %2455 = vmatmul.msk.f32.gmra.mxu3 %vm185_vm8, %v125_v34 }
 0x1a6   :  { %549 = vmatpush.msrb.mxu3 %v2491_v32  ;;  %v2497_v32 = vld [vmem:[%s3702_s3 + $0x158] sm:$0xff] }
 0x1a8   :  { %550 = vmatpush.msrb.mxu3 %v2490_v35 }
 0x1aa   :  { %551 = vmatpush.msrb.mxu3 %v2489_v36  ;;  %v356_v39 = vpop.f32.mrf.mxu2  ;;  %v2496_v36 = vld [vmem:[%s3702_s3 + $0x150] sm:$0xff] }
 0x1ab   :  { %v357_v40 = vadd.f32 %v356_v39, %v335_v38  ;;  %v2495_v38 = vld [vmem:[%s3702_s3 + $0x148] sm:$0xff] }
 0x1ac   :  { %552 = vmatpush.msrb.mxu3 %v2488_v37 }
 0x1ad   :  { %2476 = vmatpush.xpose.msk.msra.mxu0 %vm185_vm8, %v357_v40  ;;  %2474 = vmatmul.msk.f32.vlgmr.msra.gmra.mxu3 %vm30_vm0, %v2906_v0 }
 0x1ae   :  { %721 = vmatpush.msra.mxu3 %v2509_v41  ;;  %v2494_v41 = vld [vmem:[%s3702_s3 + $0x140] sm:$0xff] }
 0x1b0   :  { %722 = vmatpush.msra.mxu3 %v2508_v42 }
 0x1b1   :  { %2477 = vmatpush.xpose.msk.msra.mxu0 %vm185_vm8, %v354_v43 }
 0x1b2   :  { %723 = vmatpush.msra.mxu3 %v2507_v44  ;;  %v324_v44 = vpop.f32.mrf.mxu1 }
 0x1b4   :  { %724 = vmatpush.msra.mxu3 %v2506_v45  ;;  %v306_v45 = vperm.slane %v2956_v16, 1 }
 0x1b5   :  { %2475 = vmatmul.msk.f32.gmra.mxu3 %vm30_vm0, %v2924_v8 }
 0x1bd   :  { %2492 = vmatmul.msk.f32.vlgmr.msrb.gmra.mxu3 %vm30_vm0, %v2906_v0 }
 0x1c5   :  { %2493 = vmatmul.msk.f32.gmra.mxu3 %vm30_vm0, %v2924_v8 }
 0x1cd   :  { %2510 = vmatmul.msk.f32.vlgmr.msra.gmra.mxu3 %vm30_vm0, %v2906_v0 }
 0x1d5   :  { %2511 = vmatmul.msk.f32.gmra.mxu3 %vm30_vm0, %v2924_v8 }
 0x220   :  { %v215_v47 = vpop.f32.mrf.mxu3 }
 0x221   :  { %v216_v48 = vadd.f32 %v215_v47, %v3023_v46  ;;  %v325_v47 = vadd.f32 %v324_v44, %v306_v45  ;;  %v2520_v44 = vld [vmem:[%s3702_s3 + $0x170] sm:$0xff] }
 0x223   :  { %v222_v49 = vsel %vm221_vm9, %v216_v48, -inf }
 0x224   :  { %223 = vmax.xlane.f32.xlu2 %v222_v49  ;;  %v2514_v49 = vld [vmem:[%s3702_s3 + $0xf0] sm:$0xff] }
 0x228   :  { %v218_v51 = vpop.f32.mrf.mxu3 }
 0x229   :  { %v219_v52 = vadd.f32 %v218_v51, %v3030_v50  ;;  %v2513_v51 = vld [vmem:[%s3702_s3 + $0xe8] sm:$0xff] }
 0x22b   :  { %v225_v53 = vsel %vm221_vm9, %v219_v52, -inf }
 0x22c   :  { %226 = vmax.xlane.f32.xlu2 %v225_v53  ;;  %v2512_v53 = vld [vmem:[%s3702_s3 + $0xe0] sm:$0xff] }
 0x230   :  { %v382_v54 = vpop.f32.mrf.mxu3 }
 0x231   :  { %v383_v58 = vadd.f32 %v382_v54, %v364_v55 }
 0x238   :  { %v385_v56 = vpop.f32.mrf.mxu3 }
 0x239   :  { %v386_v57 = vadd.f32 %v385_v56, %v364_v55 }
 0x23b   :  { %493 = vmatpush.msra.mxu1 %v386_v57 }
 0x23d   :  { %494 = vmatpush.msra.mxu1 %v383_v58 }
 0x240   :  { %v554_v59 = vpop.f32.mrf.mxu3 }
 0x241   :  { %v555_v63 = vadd.f32 %v554_v59, %v536_v60 }
 0x248   :  { %v557_v61 = vpop.f32.mrf.mxu3 }
 0x249   :  { %v558_v62 = vadd.f32 %v557_v61, %v536_v60 }
 0x24b   :  { %2500 = vmatpush.xpose.msk.msrb.mxu1 %vm185_vm8, %v558_v62 }
 0x24f   :  { %2501 = vmatpush.xpose.msk.msrb.mxu1 %vm185_vm8, %v555_v63 }
 0x297   :  { %v224_v1 = vpop.xlane.xlu2 %223 }
 0x298   :  { %v228_v2 = vsub.f32 %v216_v48, %v224_v1  ;;  %v2515_v48 = vld [vmem:[%s3702_s3 + $0xf8] sm:$0xff]  ;;  %v565_v1 = vperm.slane %v2961_v18, 2 }
 0x29a   :  { %v230_v3 = vmul.f32 1.442695, %v228_v2 }
 0x29c   :  { %2657 = vpow2.f32 %v230_v3 }
 0x29f   :  { %v227_v4 = vpop.xlane.xlu2 %226 }
 0x2a0   :  { %v229_v5 = vsub.f32 %v219_v52, %v227_v4  ;;  %v327_v52 = vpop.f32.mrf.mxu1 }
 0x2a1   :  { %v328_v54 = vadd.f32 %v327_v52, %v306_v45 }
 0x2a2   :  { %v2658_v6 = vpop.eup %2657  ;;  %v232_v7 = vmul.f32 1.442695, %v229_v5 }
 0x2a3   :  { %v234_v9 = vsel %vm221_vm9, %v2658_v6, 0.0 }
 0x2a4   :  { %2659 = vpow2.f32 %v232_v7  ;;  %235 = vadd.xlane.f32.xlu0 %v234_v9 }
 0x2aa   :  { %v2660_v11 = vpop.eup %2659 }
 0x2ab   :  { %v237_v13 = vsel %vm221_vm9, %v2660_v11, 0.0 }
 0x2ac   :  { %238 = vadd.xlane.f32.xlu1 %v237_v13 }
 0x317   :  { %v236_v14 = vpop.xlane.xlu0 %235 }
 0x318   :  { %2661 = vrcp.f32 %v236_v14  ;;  %v251_v21 = vand.u32 2147483648, %v236_v14  ;;  %v249_v23 = vand.u32 2147483647, %v236_v14  ;;  %vm245_vm11 = vweird.f32 %v236_v14 }
 0x31a   :  { %v252_v26 = vor.u32 1.1754944e-38, %v251_v21  ;;  %vm250_vm13 = vcmp.eq.f32.partialorder %v249_v23, 8.507059e+37 }
 0x31e   :  { %v2662_v15 = vpop.eup %2661 }
 0x31f   :  { %v241_v17 = vmul.f32 %v2662_v15, %v236_v14  ;;  %v239_v19 = vpop.xlane.xlu1 %238  ;;  %vm246_vm10 = vweird.f32 %v2662_v15 }
 0x320   :  { %2663 = vrcp.f32 %v239_v19  ;;  %vm247_vm12 = vmor %vm245_vm11, %vm246_vm10  ;;  %v266_v33 = vand.u32 2147483648, %v239_v19  ;;  %v264_v35 = vand.u32 2147483647, %v239_v19  ;;  %vm260_vm15 = vweird.f32 %v239_v19 }
 0x321   :  { %v242_v20 = vsub.f32 1.0, %v241_v17 }
 0x322   :  { %v267_v39 = vor.u32 1.1754944e-38, %v266_v33  ;;  %vm265_vm2 = vcmp.eq.f32.partialorder %v264_v35, 8.507059e+37 }
 0x323   :  { %v243_v22 = vmul.f32 %v2662_v15, %v242_v20 }
 0x325   :  { %v244_v24 = vadd.f32 %v2662_v15, %v243_v22 }
 0x326   :  { %v2664_v25 = vpop.eup %2663 }
 0x327   :  { %v256_v27 = vmul.f32 %v2664_v25, %v239_v19  ;;  %v248_v28 = vsel %vm247_vm12, %v2662_v15, %v244_v24  ;;  %vm261_vm14 = vweird.f32 %v2664_v25 }
 0x328   :  { %v253_v29 = vsel %vm250_vm13, %v252_v26, %v248_v28  ;;  %vm262_vm1 = vmor %vm260_vm15, %vm261_vm14 }
 0x329   :  { %v257_v30 = vsub.f32 1.0, %v256_v27  ;;  %v270_v31 = vmul.f32 %v2658_v6, %v253_v29  ;;  %v737_v6 = vperm.slane %v2950_v12, 3 }
 0x32b   :  { %v258_v34 = vmul.f32 %v2664_v25, %v257_v30  ;;  %2456 = vmatmul.msk.f32.vlgmr.msrb.gmra.mxu0 %vm221_vm9, %v270_v31 }
 0x32c   :  { %578 = vmatpush.msrb.mxu0 %v2497_v32 }
 0x32d   :  { %v259_v37 = vadd.f32 %v2664_v25, %v258_v34 }
 0x32e   :  { %579 = vmatpush.msrb.mxu0 %v2496_v36 }
 0x32f   :  { %v263_v40 = vsel %vm262_vm1, %v2664_v25, %v259_v37 }
 0x330   :  { %v268_v42 = vsel %vm265_vm2, %v267_v39, %v263_v40  ;;  %580 = vmatpush.msrb.mxu0 %v2495_v38  ;;  %v2521_v40 = vld [vmem:[%s3702_s3 + $0x178] sm:$0xff] }
 0x331   :  { %v271_v43 = vmul.f32 %v2660_v11, %v268_v42 }
 0x332   :  { %581 = vmatpush.msrb.mxu0 %v2494_v41 }
 0x333   :  { %2457 = vmatmul.msk.f32.gmra.mxu0 %vm221_vm9, %v271_v43 }
 0x33b   :  { %2478 = vmatmul.msk.f32.vlgmr.msra.gmra.mxu0 %vm185_vm8, %v325_v47  ;;  %v2519_v47 = vld [vmem:[%s3702_s3 + $0x168] sm:$0xff] }
 0x33c   :  { %750 = vmatpush.msra.mxu0 %v2515_v48 }
 0x33e   :  { %751 = vmatpush.msra.mxu0 %v2514_v49 }
 0x340   :  { %752 = vmatpush.msra.mxu0 %v2513_v51  ;;  %v2518_v51 = vld [vmem:[%s3702_s3 + $0x160] sm:$0xff] }
 0x342   :  { %753 = vmatpush.msra.mxu0 %v2512_v53 }
 0x343   :  { %2479 = vmatmul.msk.f32.gmra.mxu0 %vm185_vm8, %v328_v54  ;;  %v525_v54 = vpop.f32.mrf.mxu2 }
 0x34b   :  { %2498 = vmatmul.msk.f32.vlgmr.msrb.gmra.mxu0 %vm30_vm0, %v2906_v0 }
 0x353   :  { %2499 = vmatmul.msk.f32.gmra.mxu0 %vm30_vm0, %v2924_v8 }
 0x35b   :  { %2516 = vmatmul.msk.f32.vlgmr.msra.gmra.mxu0 %vm30_vm0, %v2906_v0 }
 0x363   :  { %2517 = vmatmul.msk.f32.gmra.mxu0 %vm30_vm0, %v2924_v8 }
 0x3a8   :  { %v3077_v55 = vpop.f32.mrf.mxu0 }
 0x3b0   :  { %v3079_v56 = vpop.f32.mrf.mxu0 }
 0x3b8   :  { %v417_v57 = vpop.f32.mrf.mxu0 }
 0x3b9   :  { %v418_v58 = vadd.f32 %v417_v57, %v3023_v46  ;;  %v507_v57 = vperm.slane %v2956_v16, 2 }
 0x3bb   :  { %v423_v59 = vsel %vm221_vm9, %v418_v58, -inf }
 0x3bc   :  { %424 = vmax.xlane.f32.xlu2 %v423_v59  ;;  %v528_v59 = vpop.f32.mrf.mxu2 }
 0x3c0   :  { %v420_v60 = vpop.f32.mrf.mxu0 }
 0x3c1   :  { %v421_v61 = vadd.f32 %v420_v60, %v3030_v50  ;;  %v529_v60 = vadd.f32 %v528_v59, %v507_v57 }
 0x3c3   :  { %v426_v62 = vsel %vm221_vm9, %v421_v61, -inf }
 0x3c4   :  { %427 = vmax.xlane.f32.xlu0 %v426_v62 }
 0x3c8   :  { %v583_v63 = vpop.f32.mrf.mxu0 }
 0x3c9   :  { %v584_v4 = vadd.f32 %v583_v63, %v565_v1 }
 0x3d0   :  { %v586_v2 = vpop.f32.mrf.mxu0 }
 0x3d1   :  { %v587_v3 = vadd.f32 %v586_v2, %v565_v1 }
 0x3d3   :  { %694 = vmatpush.msrb.mxu2 %v587_v3 }
 0x3d5   :  { %695 = vmatpush.msrb.mxu2 %v584_v4 }
 0x3d8   :  { %v755_v5 = vpop.f32.mrf.mxu0 }
 0x3d9   :  { %v756_v11 = vadd.f32 %v755_v5, %v737_v6 }
 0x3e0   :  { %v758_v7 = vpop.f32.mrf.mxu0 }
 0x3e1   :  { %v759_v9 = vadd.f32 %v758_v7, %v737_v6  ;;  %v766_v6 = vperm.slane %v2961_v18, 3 }
 0x3e3   :  { %2524 = vmatpush.xpose.msk.msra.mxu2 %vm185_vm8, %v759_v9 }
 0x3e7   :  { %2525 = vmatpush.xpose.msk.msra.mxu2 %vm185_vm8, %v756_v11 }
 0x42f   :  { %v425_v13 = vpop.xlane.xlu2 %424 }
 0x430   :  { %v429_v14 = vsub.f32 %v418_v58, %v425_v13  ;;  %v526_v58 = vadd.f32 %v525_v54, %v507_v57 }
 0x432   :  { %v431_v15 = vmul.f32 1.442695, %v429_v14 }
 0x434   :  { %2665 = vpow2.f32 %v431_v15 }
 0x437   :  { %v428_v17 = vpop.xlane.xlu0 %427 }
 0x438   :  { %v430_v19 = vsub.f32 %v421_v61, %v428_v17 }
 0x43a   :  { %v2666_v20 = vpop.eup %2665  ;;  %v433_v21 = vmul.f32 1.442695, %v430_v19 }
 0x43b   :  { %v435_v22 = vsel %vm221_vm9, %v2666_v20, 0.0 }
 0x43c   :  { %2667 = vpow2.f32 %v433_v21  ;;  %436 = vadd.xlane.f32.xlu1 %v435_v22 }
 0x442   :  { %v2668_v12 = vpop.eup %2667 }
 0x443   :  { %v438_v23 = vsel %vm221_vm9, %v2668_v12, 0.0 }
 0x444   :  { %439 = vadd.xlane.f32.xlu2 %v438_v23 }
 0x4af   :  { %v437_v24 = vpop.xlane.xlu1 %436 }
 0x4b0   :  { %2669 = vrcp.f32 %v437_v24  ;;  %v452_v29 = vand.u32 2147483648, %v437_v24  ;;  %v450_v31 = vand.u32 2147483647, %v437_v24  ;;  %vm446_vm4 = vweird.f32 %v437_v24 }
 0x4b2   :  { %v453_v34 = vor.u32 1.1754944e-38, %v452_v29  ;;  %vm451_vm6 = vcmp.eq.f32.partialorder %v450_v31, 8.507059e+37 }
 0x4b6   :  { %v2670_v25 = vpop.eup %2669 }
 0x4b7   :  { %v442_v26 = vmul.f32 %v2670_v25, %v437_v24  ;;  %v440_v27 = vpop.xlane.xlu2 %439  ;;  %vm447_vm3 = vweird.f32 %v2670_v25 }
 0x4b8   :  { %2671 = vrcp.f32 %v440_v27  ;;  %vm448_vm5 = vmor %vm446_vm4, %vm447_vm3  ;;  %v467_v41 = vand.u32 2147483648, %v440_v27  ;;  %v465_v43 = vand.u32 2147483647, %v440_v27  ;;  %vm461_vm10 = vweird.f32 %v440_v27 }
 0x4b9   :  { %v443_v28 = vsub.f32 1.0, %v442_v26 }
 0x4ba   :  { %v468_v48 = vor.u32 1.1754944e-38, %v467_v41  ;;  %vm466_vm12 = vcmp.eq.f32.partialorder %v465_v43, 8.507059e+37 }
 0x4bb   :  { %v444_v30 = vmul.f32 %v2670_v25, %v443_v28 }
 0x4bd   :  { %v445_v32 = vadd.f32 %v2670_v25, %v444_v30 }
 0x4be   :  { %v2672_v33 = vpop.eup %2671 }
 0x4bf   :  { %v449_v35 = vsel %vm448_vm5, %v2670_v25, %v445_v32  ;;  %v457_v36 = vmul.f32 %v2672_v33, %v440_v27  ;;  %vm462_vm7 = vweird.f32 %v2672_v33 }
 0x4c0   :  { %v454_v37 = vsel %vm451_vm6, %v453_v34, %v449_v35  ;;  %vm463_vm11 = vmor %vm461_vm10, %vm462_vm7 }
 0x4c1   :  { %v458_v38 = vsub.f32 1.0, %v457_v36  ;;  %v471_v39 = vmul.f32 %v2666_v20, %v454_v37 }
 0x4c3   :  { %v459_v42 = vmul.f32 %v2672_v33, %v458_v38  ;;  %2480 = vmatmul.msk.f32.vlgmr.msra.gmra.mxu1 %vm221_vm9, %v471_v39 }
 0x4c4   :  { %779 = vmatpush.msra.mxu1 %v2521_v40 }
 0x4c5   :  { %v460_v45 = vadd.f32 %v2672_v33, %v459_v42 }
 0x4c6   :  { %780 = vmatpush.msra.mxu1 %v2520_v44 }
 0x4c7   :  { %v464_v49 = vsel %vm463_vm11, %v2672_v33, %v460_v45 }
 0x4c8   :  { %v469_v52 = vsel %vm466_vm12, %v468_v48, %v464_v49  ;;  %781 = vmatpush.msra.mxu1 %v2519_v47  ;;  %v726_v47 = vpop.f32.mrf.mxu3  ;;  %v708_v48 = vperm.slane %v2956_v16, 3 }
 0x4c9   :  { %v472_v53 = vmul.f32 %v2668_v12, %v469_v52 }
 0x4ca   :  { %782 = vmatpush.msra.mxu1 %v2518_v51  ;;  %v727_v49 = vadd.f32 %v726_v47, %v708_v48 }
 0x4cb   :  { %2481 = vmatmul.msk.f32.gmra.mxu1 %vm221_vm9, %v472_v53 }
 0x4d0   :  { %v729_v51 = vpop.f32.mrf.mxu3 }
 0x4d1   :  { %v730_v52 = vadd.f32 %v729_v51, %v708_v48 }
 0x4d3   :  { %2502 = vmatmul.msk.f32.vlgmr.msrb.gmra.mxu1 %vm185_vm8, %v526_v58 }
 0x4db   :  { %2503 = vmatmul.msk.f32.gmra.mxu1 %vm185_vm8, %v529_v60 }
 0x4e3   :  { %2522 = vmatmul.msk.f32.vlgmr.msra.gmra.mxu1 %vm30_vm0, %v2906_v0 }
 0x4eb   :  { %2523 = vmatmul.msk.f32.gmra.mxu1 %vm30_vm0, %v2924_v8 }
 0x540   :  { %v3112_v61 = vpop.f32.mrf.mxu1 }
 0x548   :  { %v3114_v62 = vpop.f32.mrf.mxu1 }
 0x550   :  { %v618_v63 = vpop.f32.mrf.mxu1 }
 0x551   :  { %v619_v1 = vadd.f32 %v618_v63, %v3023_v46 }
 0x553   :  { %v624_v2 = vsel %vm221_vm9, %v619_v1, -inf }
 0x554   :  { %625 = vmax.xlane.f32.xlu0 %v624_v2 }
 0x558   :  { %v621_v3 = vpop.f32.mrf.mxu1 }
 0x559   :  { %v622_v4 = vadd.f32 %v621_v3, %v3030_v50 }
 0x55b   :  { %v627_v5 = vsel %vm221_vm9, %v622_v4, -inf }
 0x55c   :  { %628 = vmax.xlane.f32.xlu1 %v627_v5 }
 0x560   :  { %v784_v0 = vpop.f32.mrf.mxu1 }
 0x561   :  { %v785_v9 = vadd.f32 %v784_v0, %v766_v6 }
 0x568   :  { %v787_v8 = vpop.f32.mrf.mxu1 }
 0x569   :  { %v788_v7 = vadd.f32 %v787_v8, %v766_v6 }
 0x56b   :  { %895 = vmatpush.msrb.mxu3 %v788_v7 }
 0x56d   :  { %896 = vmatpush.msrb.mxu3 %v785_v9 }
 0x5c7   :  { %v626_v11 = vpop.xlane.xlu0 %625 }
 0x5c8   :  { %v630_v13 = vsub.f32 %v619_v1, %v626_v11 }
 0x5ca   :  { %v632_v14 = vmul.f32 1.442695, %v630_v13 }
 0x5cc   :  { %2673 = vpow2.f32 %v632_v14 }
 0x5cf   :  { %v629_v15 = vpop.xlane.xlu1 %628 }
 0x5d0   :  { %v631_v17 = vsub.f32 %v622_v4, %v629_v15 }
 0x5d2   :  { %v2674_v19 = vpop.eup %2673  ;;  %v634_v20 = vmul.f32 1.442695, %v631_v17 }
 0x5d3   :  { %v636_v21 = vsel %vm221_vm9, %v2674_v19, 0.0 }
 0x5d4   :  { %2675 = vpow2.f32 %v634_v20  ;;  %637 = vadd.xlane.f32.xlu2 %v636_v21 }
 0x5da   :  { %v2676_v22 = vpop.eup %2675 }
 0x5db   :  { %v639_v18 = vsel %vm221_vm9, %v2676_v22, 0.0 }
 0x5dc   :  { %640 = vadd.xlane.f32.xlu0 %v639_v18 }
 0x647   :  { %v638_v12 = vpop.xlane.xlu2 %637 }
 0x648   :  { %2677 = vrcp.f32 %v638_v12  ;;  %v653_v27 = vand.u32 2147483648, %v638_v12  ;;  %v651_v29 = vand.u32 2147483647, %v638_v12  ;;  %vm647_vm14 = vweird.f32 %v638_v12 }
 0x64a   :  { %v654_v32 = vor.u32 1.1754944e-38, %v653_v27  ;;  %vm652_vm1 = vcmp.eq.f32.partialorder %v651_v29, 8.507059e+37 }
 0x64e   :  { %v2678_v23 = vpop.eup %2677 }
 0x64f   :  { %v643_v24 = vmul.f32 %v2678_v23, %v638_v12  ;;  %v641_v25 = vpop.xlane.xlu0 %640  ;;  %vm648_vm13 = vweird.f32 %v2678_v23 }
 0x650   :  { %2679 = vrcp.f32 %v641_v25  ;;  %vm649_vm15 = vmor %vm647_vm14, %vm648_vm13  ;;  %v668_v38 = vand.u32 2147483648, %v641_v25  ;;  %v666_v40 = vand.u32 2147483647, %v641_v25  ;;  %vm662_vm3 = vweird.f32 %v641_v25 }
 0x651   :  { %v644_v26 = vsub.f32 1.0, %v643_v24 }
 0x652   :  { %v669_v42 = vor.u32 1.1754944e-38, %v668_v38  ;;  %vm667_vm5 = vcmp.eq.f32.partialorder %v666_v40, 8.507059e+37 }
 0x653   :  { %v645_v28 = vmul.f32 %v2678_v23, %v644_v26 }
 0x655   :  { %v646_v30 = vadd.f32 %v2678_v23, %v645_v28 }
 0x656   :  { %v2680_v31 = vpop.eup %2679 }
 0x657   :  { %v650_v33 = vsel %vm649_vm15, %v2678_v23, %v646_v30  ;;  %v658_v34 = vmul.f32 %v2680_v31, %v641_v25  ;;  %vm663_vm2 = vweird.f32 %v2680_v31 }
 0x658   :  { %v655_v35 = vsel %vm652_vm1, %v654_v32, %v650_v33  ;;  %vm664_vm4 = vmor %vm662_vm3, %vm663_vm2  ;;  %vm932_vm1 = vcmask 195584  }
 0x659   :  { %v659_v36 = vsub.f32 1.0, %v658_v34  ;;  %v672_v37 = vmul.f32 %v2674_v19, %v655_v35  ;;  %v938_v34 = vld [vmem:[%s3704_s5 + $0x58] sm:$0xff]  ;;  %v937_v35 = vld [vmem:[%s3704_s5 + $0x50] sm:$0xff] }
 0x65a   :  { %957 = vmatpush.msrb.mxu0 %v938_v34 }
 0x65b   :  { %v660_v39 = vmul.f32 %v2680_v31, %v659_v36  ;;  %2504 = vmatmul.msk.f32.vlgmr.msrb.gmra.mxu2 %vm221_vm9, %v672_v37  ;;  %v936_v36 = vld [vmem:[%s3704_s5 + $0x48] sm:$0xff]  ;;  %v935_v37 = vld [vmem:[%s3704_s5 + $0x40] sm:$0xff] }
 0x65c   :  { %958 = vmatpush.msrb.mxu0 %v937_v35 }
 0x65d   :  { %v661_v41 = vadd.f32 %v2680_v31, %v660_v39 }
 0x65e   :  { %959 = vmatpush.msrb.mxu0 %v936_v36 }
 0x65f   :  { %v665_v43 = vsel %vm664_vm4, %v2680_v31, %v661_v41 }
 0x660   :  { %v670_v44 = vsel %vm667_vm5, %v669_v42, %v665_v43  ;;  %960 = vmatpush.msrb.mxu0 %v935_v37 }
 0x661   :  { %v673_v45 = vmul.f32 %v2676_v22, %v670_v44 }
 0x663   :  { %2505 = vmatmul.msk.f32.gmra.mxu2 %vm221_vm9, %v673_v45 }
 0x66b   :  { %2526 = vmatmul.msk.f32.vlgmr.msra.gmra.mxu2 %vm185_vm8, %v727_v49 }
 0x673   :  { %2527 = vmatmul.msk.f32.gmra.mxu2 %vm185_vm8, %v730_v52 }
 0x6de   :  { %v697_v53 = vpop.f32.mrf.mxu2 }
 0x6e6   :  { %v700_v54 = vpop.f32.mrf.mxu2 }
 0x6ee   :  { %v819_v57 = vpop.f32.mrf.mxu2 }
 0x6ef   :  { %v820_v58 = vadd.f32 %v819_v57, %v3023_v46 }
 0x6f1   :  { %v825_v59 = vsel %vm221_vm9, %v820_v58, -inf }
 0x6f2   :  { %826 = vmax.xlane.f32.xlu1 %v825_v59 }
 0x6f6   :  { %v822_v60 = vpop.f32.mrf.mxu2 }
 0x6f7   :  { %v823_v63 = vadd.f32 %v822_v60, %v3030_v50  ;;  %v2746_v60 = vld [vmem:[%s3699_s0 + $0x8] sm:$0xff] }
 0x6f9   :  { %v828_v16 = vsel %vm221_vm9, %v823_v63, -inf }
 0x6fa   :  { %829 = vmax.xlane.f32.xlu2 %v828_v16 }
 0x712   :  { %906 = vrot.lane.b32.xlu2 %v3112_v61, %s2779_s13 }
 0x71a   :  { %908 = vrot.lane.b32.xlu2 %v3114_v62, %s2779_s13 }
 0x765   :  { %v827_v1 = vpop.xlane.xlu1 %826 }
 0x766   :  { %v831_v2 = vsub.f32 %v820_v58, %v827_v1 }
 0x768   :  { %v833_v3 = vmul.f32 1.442695, %v831_v2 }
 0x76a   :  { %2681 = vpow2.f32 %v833_v3 }
 0x76d   :  { %v830_v46 = vpop.xlane.xlu2 %829 }
 0x76e   :  { %v832_v4 = vsub.f32 %v823_v63, %v830_v46 }
 0x770   :  { %v2682_v5 = vpop.eup %2681  ;;  %v835_v0 = vmul.f32 1.442695, %v832_v4 }
 0x771   :  { %v837_v50 = vsel %vm221_vm9, %v2682_v5, 0.0 }
 0x772   :  { %2683 = vpow2.f32 %v835_v0  ;;  %838 = vadd.xlane.f32.xlu0 %v837_v50 }
 0x775   :  { %v907_v38 = vpop.permute.xlu2 %906 }
 0x776   :  { %v928_v41 = vsel %vm185_vm8, %v3077_v55, %v907_v38  ;;  %v3169_v55 = vld [vmem:[%s3701_s2 + $0x8] sm:$0xff] }
 0x777   :  { %v970_v52 = vperm.slane %v3169_v55, 4 }
 0x778   :  { %v2684_v6 = vpop.eup %2683 }
 0x779   :  { %v840_v8 = vsel %vm221_vm9, %v2684_v6, 0.0 }
 0x77a   :  { %841 = vadd.xlane.f32.xlu1 %v840_v8 }
 0x77d   :  { %v909_v40 = vpop.permute.xlu2 %908 }
 0x77e   :  { %v929_v48 = vsel %vm185_vm8, %v3079_v56, %v909_v40 }
 0x786   :  { %914 = vrot.lane.b32.xlu0 %v697_v53, %s2780_s14 }
 0x78e   :  { %916 = vrot.lane.b32.xlu0 %v700_v54, %s2780_s14  ;;  %v2745_v54 = vld [vmem:[%s3699_s0] sm:$0xff] }
 0x7e5   :  { %v839_v61 = vpop.xlane.xlu0 %838 }
 0x7e6   :  { %2685 = vrcp.f32 %v839_v61  ;;  %v854_v13 = vand.u32 2147483648, %v839_v61  ;;  %v852_v15 = vand.u32 2147483647, %v839_v61  ;;  %vm848_vm7 = vweird.f32 %v839_v61 }
 0x7e8   :  { %v855_v20 = vor.u32 1.1754944e-38, %v854_v13  ;;  %vm853_vm11 = vcmp.eq.f32.partialorder %v852_v15, 8.507059e+37 }
 0x7ec   :  { %v2686_v62 = vpop.eup %2685 }
 0x7ed   :  { %v844_v7 = vmul.f32 %v2686_v62, %v839_v61  ;;  %v842_v9 = vpop.xlane.xlu1 %841  ;;  %vm849_vm6 = vweird.f32 %v2686_v62 }
 0x7ee   :  { %2687 = vrcp.f32 %v842_v9  ;;  %vm850_vm10 = vmor %vm848_vm7, %vm849_vm6  ;;  %v869_v24 = vand.u32 2147483648, %v842_v9  ;;  %v867_v26 = vand.u32 2147483647, %v842_v9  ;;  %vm863_vm13 = vweird.f32 %v842_v9 }
 0x7ef   :  { %v845_v11 = vsub.f32 1.0, %v844_v7  ;;  %v1025_v7 = vld [vmem:[%s3704_s5 + $0x10] sm:$0xff] }
 0x7f0   :  { %v870_v28 = vor.u32 1.1754944e-38, %v869_v24  ;;  %vm868_vm15 = vcmp.eq.f32.partialorder %v867_v26, 8.507059e+37 }
 0x7f1   :  { %v846_v14 = vmul.f32 %v2686_v62, %v845_v11  ;;  %v1023_v11 = vld [vmem:[%s3704_s5] sm:$0xff] }
 0x7f3   :  { %v847_v17 = vadd.f32 %v2686_v62, %v846_v14 }
 0x7f4   :  { %v2688_v19 = vpop.eup %2687 }
 0x7f5   :  { %v851_v21 = vsel %vm850_vm10, %v2686_v62, %v847_v17  ;;  %v859_v22 = vmul.f32 %v2688_v19, %v842_v9  ;;  %vm864_vm12 = vweird.f32 %v2688_v19  ;;  %v1026_v62 = vld [vmem:[%s3704_s5 + $0x18] sm:$0xff]  ;;  %v1024_v9 = vld [vmem:[%s3704_s5 + $0x8] sm:$0xff] }
 0x7f6   :  { %v856_v18 = vsel %vm853_vm11, %v855_v20, %v851_v21  ;;  %vm865_vm14 = vmor %vm863_vm13, %vm864_vm12  ;;  %1046 = vmatpush.msrb.mxu1 %v1026_v62 }
 0x7f7   :  { %v860_v12 = vsub.f32 1.0, %v859_v22  ;;  %v873_v23 = vmul.f32 %v2682_v5, %v856_v18 }
 0x7f8   :  { %v915_v39 = vpop.permute.xlu0 %914  ;;  %1047 = vmatpush.msrb.mxu1 %v1025_v7 }
 0x7f9   :  { %v861_v25 = vmul.f32 %v2688_v19, %v860_v12  ;;  %2528 = vmatmul.msk.f32.vlgmr.msrb.gmra.mxu3 %vm221_vm9, %v873_v23  ;;  %v930_v42 = vsel %vm221_vm9, %v928_v41, %v915_v39 }
 0x7fa   :  { %1048 = vmatpush.msrb.mxu1 %v1024_v9 }
 0x7fb   :  { %v862_v27 = vadd.f32 %v2688_v19, %v861_v25 }
 0x7fc   :  { %1049 = vmatpush.msrb.mxu1 %v1023_v11 }
 0x7fd   :  { %v866_v29 = vsel %vm865_vm14, %v2688_v19, %v862_v27  ;;  %v3209_v27 = vld [vmem:[%s3701_s2] sm:$0xff] }
 0x7fe   :  { %v871_v30 = vsel %vm868_vm15, %v870_v28, %v866_v29  ;;  %v1017_v28 = vperm.slane %v3209_v27, 1 }
 0x7ff   :  { %v874_v31 = vmul.f32 %v2684_v6, %v871_v30 }
 0x800   :  { %v917_v45 = vpop.permute.xlu0 %916 }
 0x801   :  { %2529 = vmatmul.msk.f32.gmra.mxu3 %vm221_vm9, %v874_v31  ;;  %v931_v49 = vsel %vm221_vm9, %v929_v48, %v917_v45 }
 0x87c   :  { %v898_v32 = vpop.f32.mrf.mxu3 }
 0x87d   :  { %922 = vrot.lane.b32.xlu1 %v898_v32, %s2781_s15  ;;  %v1020_v32 = vperm.slane %v3209_v27, 6 }
 0x884   :  { %v901_v33 = vpop.f32.mrf.mxu3 }
 0x885   :  { %924 = vrot.lane.b32.xlu2 %v901_v33, %s2781_s15 }
 0x8df   :  { %v925_v47 = vpop.permute.xlu2 %924 }
 0x8e0   :  { %v934_v51 = vsel %vm932_vm1, %v931_v49, %v925_v47  ;;  %v1148_v49 = vld [vmem:[%s3704_s5 + $0x38] sm:$0xff] }
 0x8e1   :  { %1161 = vmatpush.xpose.msrb.mxu2 %v1148_v49 }
 0x8ef   :  { %v923_v43 = vpop.permute.xlu1 %922 }
 0x8f0   :  { %v933_v44 = vsel %vm932_vm1, %v930_v42, %v923_v43  ;;  %v1027_v42 = vperm.slane %v3169_v55, 2 }
 0x8f1   :  { %2530 = vmatmul.msk.f32.vlgmr.msrb.gmra.mxu0 %vm30_vm0, %v933_v44 }
 0x8f9   :  { %2531 = vmatmul.msk.f32.gmra.mxu0 %vm30_vm0, %v934_v51 }
 0x96e   :  { %v962_v53 = vpop.f32.mrf.mxu0 }
 0x96f   :  { %v968_v57 = vadd.f32 %v2745_v54, %v962_v53 }
 0x971   :  { %v3175_v56 = vadd.f32 %v970_v52, %v968_v57 }
 0x973   :  { %v973_v58 = vsel %vm30_vm0, %v3175_v56, 0.0 }
 0x974   :  { %974 = vadd.xlane.f32.xlu1 %v973_v58 }
 0x976   :  { %v965_v59 = vpop.f32.mrf.mxu0 }
 0x977   :  { %v969_v63 = vadd.f32 %v2746_v60, %v965_v59  ;;  %v1147_v59 = vld [vmem:[%s3704_s5 + $0x30] sm:$0xff] }
 0x978   :  { %1162 = vmatpush.xpose.msrb.mxu2 %v1147_v59 }
 0x979   :  { %v3182_v16 = vadd.f32 %v970_v52, %v969_v63 }
 0x97b   :  { %v976_v1 = vsel %vm30_vm0, %v3182_v16, 0.0 }
 0x97c   :  { %977 = vadd.xlane.f32.xlu0 %v976_v1 }
 0x9e7   :  { %v975_v2 = vpop.xlane.xlu1 %974 }
 0x9e8   :  { %v979_v3 = vmul.f32 %v975_v2, %v2826_v10 }
 0x9ea   :  { %v981_v46 = vsub.f32 %v3175_v56, %v979_v3 }
 0x9ec   :  { %v983_v4 = vmul.f32 %v981_v46, %v981_v46 }
 0x9ee   :  { %v985_v5 = vsel %vm30_vm0, %v983_v4, 0.0 }
 0x9ef   :  { %986 = vadd.xlane.f32.xlu2 %v985_v5  ;;  %v978_v0 = vpop.xlane.xlu0 %977 }
 0x9f0   :  { %v980_v50 = vmul.f32 %v978_v0, %v2826_v10 }
 0x9f2   :  { %v982_v6 = vsub.f32 %v3182_v16, %v980_v50 }
 0x9f4   :  { %v984_v8 = vmul.f32 %v982_v6, %v982_v6 }
 0x9f6   :  { %v988_v61 = vsel %vm30_vm0, %v984_v8, 0.0 }
 0x9f7   :  { %989 = vadd.xlane.f32.xlu1 %v988_v61  ;;  %v1145_v61 = vld [vmem:[%s3704_s5 + $0x20] sm:$0xff] }
 0xa62   :  { %v987_v13 = vpop.xlane.xlu2 %986 }
 0xa63   :  { %v991_v14 = vmul.f32 %v987_v13, %v2826_v10 }
 0xa65   :  { %v993_v15 = vadd.f32 1e-05, %v991_v14 }
 0xa67   :  { %2689 = vrsqrt.f32 %v993_v15  ;;  %vm1001_vm3 = vweird.f32 %v993_v15 }
 0xa6a   :  { %v990_v17 = vpop.xlane.xlu1 %989 }
 0xa6b   :  { %v992_v19 = vmul.f32 %v990_v17, %v2826_v10 }
 0xa6d   :  { %v2690_v20 = vpop.eup %2689  ;;  %v994_v21 = vadd.f32 1e-05, %v992_v19 }
 0xa6e   :  { %v996_v22 = vmul.f32 %v2690_v20, %v993_v15  ;;  %vm1002_vm2 = vweird.f32 %v2690_v20 }
 0xa6f   :  { %2691 = vrsqrt.f32 %v994_v21  ;;  %vm1003_vm4 = vmor %vm1001_vm3, %vm1002_vm2  ;;  %vm1011_vm6 = vweird.f32 %v994_v21 }
 0xa70   :  { %v997_v18 = vmul.f32 %v2690_v20, %v996_v22 }
 0xa72   :  { %v998_v12 = vmul.f32 0.5, %v997_v18 }
 0xa74   :  { %v999_v23 = vsub.f32 1.5, %v998_v12 }
 0xa75   :  { %v2692_v24 = vpop.eup %2691 }
 0xa76   :  { %v1000_v25 = vmul.f32 %v2690_v20, %v999_v23  ;;  %v1006_v26 = vmul.f32 %v2692_v24, %v994_v21  ;;  %vm1012_vm5 = vweird.f32 %v2692_v24 }
 0xa77   :  { %vm1013_vm7 = vmor %vm1011_vm6, %vm1012_vm5 }
 0xa78   :  { %v1004_v29 = vsel %vm1003_vm4, %v2690_v20, %v1000_v25  ;;  %v1007_v30 = vmul.f32 %v2692_v24, %v1006_v26 }
 0xa79   :  { %v1015_v31 = vmul.f32 %v1004_v29, %v981_v46  ;;  %v1146_v46 = vld [vmem:[%s3704_s5 + $0x28] sm:$0xff] }
 0xa7a   :  { %v1008_v33 = vmul.f32 0.5, %v1007_v30  ;;  %1163 = vmatpush.xpose.msrb.mxu2 %v1146_v46 }
 0xa7b   :  { %v1018_v34 = vmul.f32 %v1017_v28, %v1015_v31 }
 0xa7c   :  { %v1009_v35 = vsub.f32 1.5, %v1008_v33 }
 0xa7d   :  { %v1021_v36 = vadd.f32 %v1020_v32, %v1018_v34 }
 0xa7e   :  { %v1010_v37 = vmul.f32 %v2692_v24, %v1009_v35  ;;  %1164 = vmatpush.xpose.msrb.mxu2 %v1145_v61 }
 0xa7f   :  { %2532 = vmatmul.msk.f32.vlgmr.msrb.gmra.mxu1 %vm30_vm0, %v1021_v36 }
 0xa80   :  { %v1014_v38 = vsel %vm1013_vm7, %v2692_v24, %v1010_v37 }
 0xa81   :  { %v1016_v39 = vmul.f32 %v1014_v38, %v982_v6 }
 0xa83   :  { %v1019_v40 = vmul.f32 %v1017_v28, %v1016_v39 }
 0xa85   :  { %v1022_v41 = vadd.f32 %v1020_v32, %v1019_v40 }
 0xa87   :  { %2533 = vmatmul.msk.f32.gmra.mxu1 %vm30_vm0, %v1022_v41 }
 0xafc   :  { %v1051_v43 = vpop.f32.mrf.mxu1 }
 0xafd   :  { %v3216_v44 = vadd.f32 %v1051_v43, %v1027_v42 }
 0xaff   :  { %v3219_v45 = vmul.f32 0.70710677, %v3216_v44  ;;  %v1057_v46 = vmul.f32 0.5, %v3216_v44  ;;  %v1174_v44 = vperm.slane %v3169_v55, 6 }
 0xb01   :  { %v1061_v47 = vmul.f32 %v3219_v45, %v3219_v45 }
 0xb03   :  { %v1062_v48 = vmin.f32 %v1061_v47, 16.0 }
 0xb04   :  { %v1054_v51 = vpop.f32.mrf.mxu1 }
 0xb05   :  { %v1063_v52 = vmul.f32 2.1237322e-06, %v1062_v48  ;;  %v1074_v53 = vmul.f32 3.8918573e-05, %v1062_v48  ;;  %v3226_v54 = vadd.f32 %v1054_v51, %v1027_v42 }
 0xb07   :  { %v1064_v57 = vadd.f32 0.00028619796, %v1063_v52  ;;  %v1075_v58 = vadd.f32 0.001143296, %v1074_v53  ;;  %v3232_v60 = vmul.f32 0.70710677, %v3226_v54 }
 0xb09   :  { %v1065_v63 = vmul.f32 %v1064_v57, %v1062_v48  ;;  %v1076_v1 = vmul.f32 %v1075_v58, %v1062_v48  ;;  %v1101_v2 = vmul.f32 %v3232_v60, %v3232_v60 }
 0xb0b   :  { %v1077_v3 = vadd.f32 0.014752088, %v1076_v1  ;;  %v1066_v4 = vadd.f32 0.0036580483, %v1065_v63  ;;  %v1102_v5 = vmin.f32 %v1101_v2, 16.0 }
 0xb0d   :  { %v1078_v0 = vmul.f32 %v1077_v3, %v1062_v48  ;;  %v1103_v50 = vmul.f32 2.1237322e-06, %v1102_v5  ;;  %v1114_v6 = vmul.f32 3.8918573e-05, %v1102_v5  ;;  %v1067_v62 = vmul.f32 %v1066_v4, %v1062_v48 }
 0xb0f   :  { %v1079_v8 = vadd.f32 0.112945676, %v1078_v0  ;;  %v1104_v7 = vadd.f32 0.00028619796, %v1103_v50  ;;  %v1115_v9 = vadd.f32 0.001143296, %v1114_v6 }
 0xb10   :  { %v1068_v17 = vadd.f32 0.05243302, %v1067_v62 }
 0xb11   :  { %v1080_v11 = vmul.f32 %v1079_v8, %v1062_v48  ;;  %v1105_v13 = vmul.f32 %v1104_v7, %v1102_v5  ;;  %v1116_v14 = vmul.f32 %v1115_v9, %v1102_v5  ;;  %v1058_v7 = vmul.f32 0.5, %v3226_v54 }
 0xb12   :  { %v1069_v12 = vmul.f32 %v1068_v17, %v1062_v48 }
 0xb13   :  { %v1081_v15 = vadd.f32 0.4994258, %v1080_v11  ;;  %v1117_v19 = vadd.f32 0.014752088, %v1116_v14  ;;  %v1106_v21 = vadd.f32 0.0036580483, %v1105_v13 }
 0xb14   :  { %v1070_v26 = vadd.f32 0.18741608, %v1069_v12 }
 0xb15   :  { %v1082_v20 = vmul.f32 %v1081_v15, %v1062_v48  ;;  %v1118_v22 = vmul.f32 %v1117_v19, %v1102_v5  ;;  %v1107_v24 = vmul.f32 %v1106_v21, %v1102_v5 }
 0xb16   :  { %v1071_v32 = vmul.f32 %v1070_v26, %v1062_v48  ;;  %v2542_v26 = vld [vmem:[%s3702_s3 + $0x198] sm:$0xff] }
 0xb17   :  { %v1083_v18 = vadd.f32 1.0, %v1082_v20  ;;  %v1119_v23 = vadd.f32 0.112945676, %v1118_v22  ;;  %v1108_v29 = vadd.f32 0.05243302, %v1107_v24  ;;  %1257 = vmatpush.msra.mxu3 %v2542_v26 }
 0xb18   :  { %v1072_v38 = vadd.f32 1.1283791, %v1071_v32  ;;  %v2553_v32 = vld [vmem:[%s3702_s3 + $0x290] sm:$0xff] }
 0xb19   :  { %2693 = vrcp.f32 %v1083_v18  ;;  %v1120_v25 = vmul.f32 %v1119_v23, %v1102_v5  ;;  %v1109_v35 = vmul.f32 %v1108_v29, %v1102_v5  ;;  %v1095_v37 = vand.u32 2147483648, %v1083_v18  ;;  %v2554_v29 = vld [vmem:[%s3702_s3 + $0x298] sm:$0xff] }
 0xb1a   :  { %v1093_v40 = vand.u32 2147483647, %v1083_v18  ;;  %vm1089_vm11 = vweird.f32 %v1083_v18  ;;  %v1073_v49 = vmul.f32 %v1072_v38, %v3219_v45  ;;  %1315 = vmatpush.msra.mxu1 %v2554_v29  ;;  %v2551_v38 = vld [vmem:[%s3702_s3 + $0x280] sm:$0xff] }
 0xb1b   :  { %v1121_v28 = vadd.f32 0.4994258, %v1120_v25  ;;  %v1110_v41 = vadd.f32 0.18741608, %v1109_v35  ;;  %v1096_v43 = vor.u32 1.1754944e-38, %v1095_v37  ;;  %v2552_v35 = vld [vmem:[%s3702_s3 + $0x288] sm:$0xff] }
 0xb1c   :  { %vm1094_vm13 = vcmp.eq.f32.partialorder %v1093_v40, 8.507059e+37  ;;  %1316 = vmatpush.msra.mxu1 %v2553_v32  ;;  %v2545_v37 = vld [vmem:[%s3702_s3 + $0x200] sm:$0xff] }
 0xb1d   :  { %v1122_v30 = vmul.f32 %v1121_v28, %v1102_v5  ;;  %v1111_v52 = vmul.f32 %v1110_v41, %v1102_v5  ;;  %v2548_v28 = vld [vmem:[%s3702_s3 + $0x218] sm:$0xff] }
 0xb1e   :  { %1286 = vmatpush.msra.mxu0 %v2548_v28  ;;  %1317 = vmatpush.msra.mxu1 %v2552_v35  ;;  %v2577_v35 = vld [vmem:[%s3702_s3 + $0x2b0] sm:$0xff] }
 0xb1f   :  { %v2694_v31 = vpop.eup %2693  ;;  %v1123_v34 = vadd.f32 1.0, %v1122_v30  ;;  %v1112_v1 = vadd.f32 1.1283791, %v1111_v52  ;;  %v2541_v30 = vld [vmem:[%s3702_s3 + $0x190] sm:$0xff]  ;;  %v2570_v52 = vld [vmem:[%s3702_s3 + $0x228] sm:$0xff] }
 0xb20   :  { %v1085_v33 = vmul.f32 %v2694_v31, %v1083_v18  ;;  %vm1090_vm10 = vweird.f32 %v2694_v31  ;;  %1258 = vmatpush.msra.mxu3 %v2541_v30  ;;  %1318 = vmatpush.msra.mxu1 %v2551_v38  ;;  %v2575_v38 = vld [vmem:[%s3702_s3 + $0x2a0] sm:$0xff] }
 0xb21   :  { %2695 = vrcp.f32 %v1123_v34  ;;  %vm1091_vm12 = vmor %vm1089_vm11, %vm1090_vm10  ;;  %v1135_v63 = vand.u32 2147483648, %v1123_v34  ;;  %v1133_v3 = vand.u32 2147483647, %v1123_v34  ;;  %vm1129_vm15 = vweird.f32 %v1123_v34 }
 0xb22   :  { %v1086_v36 = vsub.f32 1.0, %v1085_v33  ;;  %v1113_v6 = vmul.f32 %v1112_v1, %v3232_v60  ;;  %v2540_v33 = vld [vmem:[%s3702_s3 + $0x188] sm:$0xff] }
 0xb23   :  { %v1136_v45 = vor.u32 1.1754944e-38, %v1135_v63  ;;  %vm1134_vm3 = vcmp.eq.f32.partialorder %v1133_v3, 8.507059e+37  ;;  %1259 = vmatpush.msra.mxu3 %v2540_v33  ;;  %v2578_v33 = vld [vmem:[%s3702_s3 + $0x2b8] sm:$0xff] }
 0xb24   :  { %v1087_v39 = vmul.f32 %v2694_v31, %v1086_v36  ;;  %v2539_v36 = vld [vmem:[%s3702_s3 + $0x180] sm:$0xff] }
 0xb25   :  { %1260 = vmatpush.msra.mxu3 %v2539_v36 }
 0xb26   :  { %v1088_v42 = vadd.f32 %v2694_v31, %v1087_v39 }
 0xb27   :  { %v2696_v47 = vpop.eup %2695 }
 0xb28   :  { %v1092_v51 = vsel %vm1091_vm12, %v2694_v31, %v1088_v42  ;;  %v1125_v53 = vmul.f32 %v2696_v47, %v1123_v34  ;;  %vm1130_vm14 = vweird.f32 %v2696_v47  ;;  %v2547_v31 = vld [vmem:[%s3702_s3 + $0x210] sm:$0xff]  ;;  %v2546_v34 = vld [vmem:[%s3702_s3 + $0x208] sm:$0xff]  ;;  %v2566_v42 = vld [vmem:[%s3702_s3 + $0x1b8] sm:$0xff] }
 0xb29   :  { %v1097_v48 = vsel %vm1094_vm13, %v1096_v43, %v1092_v51  ;;  %vm1131_vm2 = vmor %vm1129_vm15, %vm1130_vm14  ;;  %1287 = vmatpush.msra.mxu0 %v2547_v31  ;;  %v2572_v43 = vld [vmem:[%s3702_s3 + $0x238] sm:$0xff] }
 0xb2a   :  { %v1098_v57 = vmul.f32 %v1097_v48, %v1073_v49  ;;  %v1126_v58 = vsub.f32 1.0, %v1125_v53  ;;  %1487 = vmatpush.msrb.mxu1 %v2572_v43  ;;  %v2571_v49 = vld [vmem:[%s3702_s3 + $0x230] sm:$0xff]  ;;  %v2564_v48 = vld [vmem:[%s3702_s3 + $0x1a8] sm:$0xff] }
 0xb2b   :  { %1288 = vmatpush.msra.mxu0 %v2546_v34  ;;  %v2595_v43 = vld [vmem:[%s3702_s3 + $0x250] sm:$0xff] }
 0xb2c   :  { %v2534_v59 = vclamps-f32 %v1098_v57, 1.0  ;;  %v1127_v2 = vmul.f32 %v2696_v47, %v1126_v58  ;;  %1488 = vmatpush.msrb.mxu1 %v2571_v49  ;;  %v2563_v58 = vld [vmem:[%s3702_s3 + $0x1a0] sm:$0xff] }
 0xb2d   :  { %1289 = vmatpush.msra.mxu0 %v2545_v37  ;;  %v2576_v37 = vld [vmem:[%s3702_s3 + $0x2a8] sm:$0xff] }
 0xb2e   :  { %v1141_v4 = vadd.f32 1.0, %v2534_v59  ;;  %v1128_v0 = vadd.f32 %v2696_v47, %v1127_v2  ;;  %v2569_v59 = vld [vmem:[%s3702_s3 + $0x220] sm:$0xff]  ;;  %1489 = vmatpush.msrb.mxu1 %v2570_v52 }
 0xb2f   :  { %1458 = vmatpush.msrb.mxu0 %v2566_v42 }
 0xb30   :  { %v1143_v50 = vmul.f32 %v1141_v4, %v1057_v46  ;;  %v1132_v5 = vsel %vm1131_vm2, %v2696_v47, %v1128_v0  ;;  %v2565_v47 = vld [vmem:[%s3702_s3 + $0x1b0] sm:$0xff]  ;;  %1490 = vmatpush.msrb.mxu1 %v2569_v59  ;;  %v2611_v59 = vld [vmem:[%s3702_s3 + $0x1e0] sm:$0xff] }
 0xb31   :  { %v1137_v8 = vsel %vm1134_vm3, %v1136_v45, %v1132_v5  ;;  %1459 = vmatpush.msrb.mxu0 %v2565_v47  ;;  %v1224_v5 = vperm.slane %v3209_v27, 7 }
 0xb32   :  { %1165 = vmatmul.f32.vlgmr.msrb.gmra.mxu2 %v1143_v50  ;;  %v1138_v61 = vmul.f32 %v1137_v8, %v1113_v6  ;;  %v1221_v50 = vperm.slane %v3209_v27, 2  ;;  %v2589_v27 = vld [vmem:[%s3702_s3 + $0x1d0] sm:$0xff] }
 0xb33   :  { %1460 = vmatpush.msrb.mxu0 %v2564_v48  ;;  %v2593_v48 = vld [vmem:[%s3702_s3 + $0x240] sm:$0xff] }
 0xb34   :  { %v2535_v62 = vclamps-f32 %v1138_v61, 1.0 }
 0xb35   :  { %1461 = vmatpush.msrb.mxu0 %v2563_v58  ;;  %v2612_v58 = vld [vmem:[%s3702_s3 + $0x1e8] sm:$0xff] }
 0xb36   :  { %v1142_v9 = vadd.f32 1.0, %v2535_v62 }
 0xb38   :  { %v1144_v11 = vmul.f32 %v1142_v9, %v1058_v7 }
 0xb3a   :  { %1168 = vmatmul.f32.gmra.mxu2 %v1144_v11 }
 0xbb5   :  { %v1166_v13 = vpop.f32.mrf.mxu2 }
 0xbb6   :  { %v1172_v14 = vadd.f32 %v1166_v13, %v3175_v56 }
 0xbb8   :  { %v3248_v15 = vadd.f32 %v1174_v44, %v1172_v14 }
 0xbba   :  { %v1177_v60 = vsel %vm30_vm0, %v3248_v15, 0.0 }
 0xbbb   :  { %1178 = vadd.xlane.f32.xlu0 %v1177_v60 }
 0xbbd   :  { %v1169_v17 = vpop.f32.mrf.mxu2 }
 0xbbe   :  { %v1173_v19 = vadd.f32 %v1169_v17, %v3182_v16  ;;  %v2588_v17 = vld [vmem:[%s3702_s3 + $0x1c8] sm:$0xff] }
 0xbc0   :  { %v3253_v20 = vadd.f32 %v1174_v44, %v1173_v19  ;;  %v2590_v44 = vld [vmem:[%s3702_s3 + $0x1d8] sm:$0xff] }
 0xbc2   :  { %v1180_v54 = vsel %vm30_vm0, %v3253_v20, 0.0 }
 0xbc3   :  { %1181 = vadd.xlane.f32.xlu2 %v1180_v54  ;;  %v2587_v54 = vld [vmem:[%s3702_s3 + $0x1c0] sm:$0xff] }
 0xc2e   :  { %v1179_v21 = vpop.xlane.xlu0 %1178 }
 0xc2f   :  { %v1183_v55 = vmul.f32 %v1179_v21, %v2826_v10 }
 0xc31   :  { %v3259_v56 = vsub.f32 %v3248_v15, %v1183_v55 }
 0xc33   :  { %v1187_v22 = vmul.f32 %v3259_v56, %v3259_v56 }
 0xc35   :  { %v1189_v18 = vsel %vm30_vm0, %v1187_v22, 0.0  ;;  %v3380_v22 = vld [vmem:[%s3703_s4 + $0x10] sm:$0xf] }
 0xc36   :  { %1190 = vadd.xlane.f32.xlu1 %v1189_v18  ;;  %v1182_v12 = vpop.xlane.xlu2 %1181  ;;  %v3385_v18 = vld [vmem:[%s3703_s4 + $0x14] sm:$0xf]  ;;  %v1474_v42 = vperm.slane %v3380_v22, 1 }
 0xc37   :  { %v1184_v16 = vmul.f32 %v1182_v12, %v2826_v10  ;;  %v1273_v12 = vperm.slane %v3380_v22, 0 }
 0xc39   :  { %v3266_v23 = vsub.f32 %v3253_v20, %v1184_v16  ;;  %v1302_v16 = vperm.slane %v3385_v18, 0 }
 0xc3b   :  { %v1188_v24 = vmul.f32 %v3266_v23, %v3266_v23 }
 0xc3d   :  { %v1192_v25 = vsel %vm30_vm0, %v1188_v24, 0.0  ;;  %v3392_v24 = vld [vmem:[%s3703_s4 + $0xc] sm:$0xf] }
 0xc3e   :  { %1193 = vadd.xlane.f32.xlu0 %v1192_v25  ;;  %v1238_v31 = vperm.slane %v3392_v24, 0 }
 0xca9   :  { %v1191_v39 = vpop.xlane.xlu1 %1190 }
 0xcaa   :  { %v1195_v40 = vmul.f32 %v1191_v39, %v2826_v10 }
 0xcac   :  { %v1197_v41 = vadd.f32 1e-05, %v1195_v40  ;;  %v2596_v40 = vld [vmem:[%s3702_s3 + $0x258] sm:$0xff] }
 0xcae   :  { %2697 = vrsqrt.f32 %v1197_v41  ;;  %vm1205_vm5 = vweird.f32 %v1197_v41 }
 0xcb1   :  { %v1194_v51 = vpop.xlane.xlu0 %1193 }
 0xcb2   :  { %v1196_v53 = vmul.f32 %v1194_v51, %v2826_v10  ;;  %v2594_v51 = vld [vmem:[%s3702_s3 + $0x248] sm:$0xff] }
 0xcb4   :  { %v2698_v57 = vpop.eup %2697  ;;  %v1198_v1 = vadd.f32 1e-05, %v1196_v53  ;;  %v2614_v53 = vld [vmem:[%s3702_s3 + $0x1f8] sm:$0xff] }
 0xcb5   :  { %v1200_v63 = vmul.f32 %v2698_v57, %v1197_v41  ;;  %vm1206_vm4 = vweird.f32 %v2698_v57 }
 0xcb6   :  { %2699 = vrsqrt.f32 %v1198_v1  ;;  %vm1207_vm6 = vmor %vm1205_vm5, %vm1206_vm4  ;;  %vm1215_vm10 = vweird.f32 %v1198_v1 }
 0xcb7   :  { %v1201_v2 = vmul.f32 %v2698_v57, %v1200_v63 }
 0xcb9   :  { %v1202_v3 = vmul.f32 0.5, %v1201_v2 }
 0xcbb   :  { %v1203_v46 = vsub.f32 1.5, %v1202_v3 }
 0xcbc   :  { %v2700_v4 = vpop.eup %2699 }
 0xcbd   :  { %v1204_v0 = vmul.f32 %v2698_v57, %v1203_v46  ;;  %v1210_v45 = vmul.f32 %v2700_v4, %v1198_v1  ;;  %vm1216_vm7 = vweird.f32 %v2700_v4  ;;  %v3453_v1 = vld [vmem:[%s3700_s1] sm:$0xff] }
 0xcbe   :  { %vm1217_vm11 = vmor %vm1215_vm10, %vm1216_vm7 }
 0xcbf   :  { %v1208_v6 = vsel %vm1207_vm6, %v2698_v57, %v1204_v0  ;;  %v1211_v61 = vmul.f32 %v2700_v4, %v1210_v45  ;;  %v2613_v57 = vld [vmem:[%s3702_s3 + $0x1f0] sm:$0xff] }
 0xcc0   :  { %v1219_v8 = vmul.f32 %v1208_v6, %v3259_v56  ;;  %v1503_v6 = vperm.slane %v3385_v18, 1 }
 0xcc1   :  { %v1212_v7 = vmul.f32 0.5, %v1211_v61 }
 0xcc2   :  { %v1222_v62 = vmul.f32 %v1221_v50, %v1219_v8 }
 0xcc3   :  { %v1213_v11 = vsub.f32 1.5, %v1212_v7  ;;  %v1675_v7 = vperm.slane %v3380_v22, 2 }
 0xcc4   :  { %v3336_v9 = vadd.f32 %v1224_v5, %v1222_v62 }
 0xcc5   :  { %v1214_v13 = vmul.f32 %v2700_v4, %v1213_v11 }
 0xcc6   :  { %2543 = vmatmul.msk.f32.vlgmr.msra.gmra.mxu3 %vm30_vm0, %v3336_v9  ;;  %2549 = vmatmul.msk.f32.vlgmr.msra.gmra.mxu0 %vm30_vm0, %v3336_v9 }
 0xcc7   :  { %2555 = vmatmul.msk.f32.vlgmr.msra.gmra.mxu1 %vm30_vm0, %v3336_v9  ;;  %v1218_v14 = vsel %vm1217_vm11, %v2700_v4, %v1214_v13  ;;  %v3460_v4 = vld [vmem:[%s3700_s1 + $0x8] sm:$0xff] }
 0xcc8   :  { %1659 = vmatpush.msra.mxu1 %v2590_v44  ;;  %v1220_v60 = vmul.f32 %v1218_v14, %v3266_v23 }
 0xcca   :  { %1660 = vmatpush.msra.mxu1 %v2589_v27  ;;  %v1223_v19 = vmul.f32 %v1221_v50, %v1220_v60 }
 0xccc   :  { %1661 = vmatpush.msra.mxu1 %v2588_v17  ;;  %v3357_v21 = vadd.f32 %v1224_v5, %v1223_v19 }
 0xcce   :  { %1662 = vmatpush.msra.mxu1 %v2587_v54  ;;  %2544 = vmatmul.msk.f32.gmra.mxu3 %vm30_vm0, %v3357_v21 }
 0xccf   :  { %2550 = vmatmul.msk.f32.gmra.mxu0 %vm30_vm0, %v3357_v21  ;;  %2556 = vmatmul.msk.f32.gmra.mxu1 %vm30_vm0, %v3357_v21 }
 0xcd7   :  { %2567 = vmatmul.msk.f32.vlgmr.msrb.gmra.mxu0 %vm30_vm0, %v3336_v9  ;;  %2573 = vmatmul.msk.f32.vlgmr.msrb.gmra.mxu1 %vm30_vm0, %v3336_v9 }
 0xcdf   :  { %2568 = vmatmul.msk.f32.gmra.mxu0 %vm30_vm0, %v3357_v21  ;;  %2574 = vmatmul.msk.f32.gmra.mxu1 %vm30_vm0, %v3357_v21 }
 0xce7   :  { %2591 = vmatmul.msk.f32.vlgmr.msra.gmra.mxu1 %vm30_vm0, %v3336_v9 }
 0xcef   :  { %2592 = vmatmul.msk.f32.gmra.mxu1 %vm30_vm0, %v3357_v21 }
 0xd43   :  { %v1291_v55 = vpop.f32.mrf.mxu0 }
 0xd44   :  { %v1320_v56 = vpop.f32.mrf.mxu1  ;;  %v1292_v32 = vadd.f32 %v1291_v55, %v1273_v12 }
 0xd45   :  { %v1321_v30 = vadd.f32 %v1320_v56, %v1302_v16 }
 0xd49   :  { %v1262_v29 = vpop.f32.mrf.mxu3 }
 0xd4a   :  { %v1263_v34 = vadd.f32 %v1262_v29, %v1238_v31 }
 0xd4c   :  { %v1294_v23 = vpop.f32.mrf.mxu0  ;;  %v1323_v26 = vpop.f32.mrf.mxu1 }
 0xd4d   :  { %v1295_v25 = vadd.f32 %v1294_v23, %v1273_v12  ;;  %v1324_v28 = vadd.f32 %v1323_v26, %v1302_v16 }
 0xd4f   :  { %2557 = vmatpush.xpose.msk.msra.mxu2 %vm185_vm8, %v1295_v25  ;;  %1431 = vmatpush.msrb.mxu3 %v1324_v28 }
 0xd51   :  { %1432 = vmatpush.msrb.mxu3 %v1321_v30  ;;  %v1265_v39 = vpop.f32.mrf.mxu3 }
 0xd52   :  { %v1266_v41 = vadd.f32 %v1265_v39, %v1238_v31 }
 0xd53   :  { %2558 = vmatpush.xpose.msk.msra.mxu2 %vm185_vm8, %v1292_v32 }
 0xd54   :  { %v1492_v36 = vpop.f32.mrf.mxu1 }
 0xd55   :  { %v1493_v52 = vadd.f32 %v1492_v36, %v1474_v42 }
 0xd56   :  { %2559 = vmatmul.msk.f32.vlgmr.msra.gmra.mxu2 %vm185_vm8, %v1263_v34 }
 0xd57   :  { %1516 = vmatpush.msrb.mxu2 %v2578_v33 }
 0xd59   :  { %1517 = vmatpush.msrb.mxu2 %v2577_v35 }
 0xd5b   :  { %1518 = vmatpush.msrb.mxu2 %v2576_v37 }
 0xd5c   :  { %v1495_v47 = vpop.f32.mrf.mxu1 }
 0xd5d   :  { %1519 = vmatpush.msrb.mxu2 %v2575_v38  ;;  %v1496_v49 = vadd.f32 %v1495_v47, %v1474_v42 }
 0xd5e   :  { %2560 = vmatmul.msk.f32.gmra.mxu2 %vm185_vm8, %v1266_v41  ;;  %v2602_v41 = vld [vmem:[%s3702_s3 + $0x2d8] sm:$0xff] }
 0xd5f   :  { %1688 = vmatpush.msra.mxu2 %v2596_v40  ;;  %2581 = vmatpush.xpose.msk.msra.mxu3 %vm185_vm8, %v1496_v49  ;;  %v2601_v49 = vld [vmem:[%s3702_s3 + $0x2d0] sm:$0xff] }
 0xd61   :  { %1689 = vmatpush.msra.mxu2 %v2595_v43 }
 0xd63   :  { %1690 = vmatpush.msra.mxu2 %v2594_v51  ;;  %2582 = vmatpush.xpose.msk.msra.mxu3 %vm185_vm8, %v1493_v52 }
 0xd65   :  { %1691 = vmatpush.msra.mxu2 %v2593_v48  ;;  %v2600_v48 = vld [vmem:[%s3702_s3 + $0x2c8] sm:$0xff] }
 0xd66   :  { %2579 = vmatmul.msk.f32.vlgmr.msrb.gmra.mxu2 %vm30_vm0, %v3336_v9 }
 0xd67   :  { %1860 = vmatpush.msrb.mxu2 %v2614_v53 }
 0xd69   :  { %1861 = vmatpush.msrb.mxu2 %v2613_v57  ;;  %v2599_v57 = vld [vmem:[%s3702_s3 + $0x2c0] sm:$0xff] }
 0xd6b   :  { %1862 = vmatpush.msrb.mxu2 %v2612_v58 }
 0xd6d   :  { %1863 = vmatpush.msrb.mxu2 %v2611_v59 }
 0xd6e   :  { %2580 = vmatmul.msk.f32.gmra.mxu2 %vm30_vm0, %v3357_v21 }
 0xd76   :  { %2597 = vmatmul.msk.f32.vlgmr.msra.gmra.mxu2 %vm30_vm0, %v3336_v9 }
 0xd7e   :  { %2598 = vmatmul.msk.f32.gmra.mxu2 %vm30_vm0, %v3357_v21 }
 0xd86   :  { %2615 = vmatmul.msk.f32.vlgmr.msrb.gmra.mxu2 %vm30_vm0, %v3336_v9 }
 0xd8e   :  { %2616 = vmatmul.msk.f32.gmra.mxu2 %vm30_vm0, %v3357_v21 }
 0xdd9   :  { %v1355_v63 = vpop.f32.mrf.mxu2 }
 0xdda   :  { %v1356_v2 = vadd.f32 %v3453_v1, %v1355_v63  ;;  %v1463_v63 = vpop.f32.mrf.mxu0 }
 0xddc   :  { %v1361_v3 = vsel %vm221_vm9, %v1356_v2, -inf }
 0xddd   :  { %1362 = vmax.xlane.f32.xlu2 %v1361_v3 }
 0xde1   :  { %v1358_v46 = vpop.f32.mrf.mxu2 }
 0xde2   :  { %v1359_v0 = vadd.f32 %v3460_v4, %v1358_v46  ;;  %v2620_v46 = vld [vmem:[%s3702_s3 + $0x278] sm:$0xff] }
 0xde4   :  { %v1364_v50 = vsel %vm221_vm9, %v1359_v0, -inf }
 0xde5   :  { %1365 = vmax.xlane.f32.xlu1 %v1364_v50  ;;  %v2618_v50 = vld [vmem:[%s3702_s3 + $0x268] sm:$0xff] }
 0xde9   :  { %v1521_v45 = vpop.f32.mrf.mxu2 }
 0xdea   :  { %v1522_v61 = vadd.f32 %v1521_v45, %v1503_v6  ;;  %v1466_v45 = vpop.f32.mrf.mxu0 }
 0xdf1   :  { %v1524_v5 = vpop.f32.mrf.mxu2 }
 0xdf2   :  { %v1525_v8 = vadd.f32 %v1524_v5, %v1503_v6  ;;  %v2617_v6 = vld [vmem:[%s3702_s3 + $0x260] sm:$0xff] }
 0xdf4   :  { %1632 = vmatpush.msra.mxu0 %v1525_v8 }
 0xdf6   :  { %1633 = vmatpush.msra.mxu0 %v1522_v61 }
 0xdf9   :  { %v1693_v62 = vpop.f32.mrf.mxu2 }
 0xdfa   :  { %v1694_v13 = vadd.f32 %v1693_v62, %v1675_v7 }
 0xe01   :  { %v1696_v11 = vpop.f32.mrf.mxu2 }
 0xe02   :  { %v1697_v44 = vadd.f32 %v1696_v11, %v1675_v7 }
 0xe04   :  { %2605 = vmatpush.xpose.msk.msrb.mxu0 %vm185_vm8, %v1697_v44 }
 0xe08   :  { %2606 = vmatpush.xpose.msk.msrb.mxu0 %vm185_vm8, %v1694_v13 }
 0xe50   :  { %v1363_v27 = vpop.xlane.xlu2 %1362 }
 0xe51   :  { %v1367_v14 = vsub.f32 %v1356_v2, %v1363_v27  ;;  %v1445_v2 = vperm.slane %v3392_v24, 1 }
 0xe53   :  { %v1369_v60 = vmul.f32 1.442695, %v1367_v14  ;;  %v1464_v3 = vadd.f32 %v1463_v63, %v1445_v2  ;;  %v1467_v5 = vadd.f32 %v1466_v45, %v1445_v2 }
 0xe55   :  { %2701 = vpow2.f32 %v1369_v60  ;;  %v1704_v60 = vperm.slane %v3385_v18, 2 }
 0xe58   :  { %v1366_v17 = vpop.xlane.xlu1 %1365 }
 0xe59   :  { %v1368_v19 = vsub.f32 %v1359_v0, %v1366_v17  ;;  %v2619_v0 = vld [vmem:[%s3702_s3 + $0x270] sm:$0xff] }
 0xe5b   :  { %v2702_v54 = vpop.eup %2701  ;;  %v1371_v55 = vmul.f32 1.442695, %v1368_v19 }
 0xe5c   :  { %v1373_v56 = vsel %vm221_vm9, %v2702_v54, 0.0 }
 0xe5d   :  { %2703 = vpow2.f32 %v1371_v55  ;;  %1374 = vadd.xlane.f32.xlu0 %v1373_v56  ;;  %v1876_v56 = vperm.slane %v3380_v22, 3 }
 0xe63   :  { %v2704_v12 = vpop.eup %2703 }
 0xe64   :  { %v1376_v16 = vsel %vm221_vm9, %v2704_v12, 0.0 }
 0xe65   :  { %1377 = vadd.xlane.f32.xlu2 %v1376_v16 }
 0xed0   :  { %v1375_v23 = vpop.xlane.xlu0 %1374 }
 0xed1   :  { %2705 = vrcp.f32 %v1375_v23  ;;  %v1390_v30 = vand.u32 2147483648, %v1375_v23  ;;  %v1388_v32 = vand.u32 2147483647, %v1375_v23  ;;  %vm1384_vm13 = vweird.f32 %v1375_v23 }
 0xed3   :  { %v1391_v35 = vor.u32 1.1754944e-38, %v1390_v30  ;;  %vm1389_vm15 = vcmp.eq.f32.partialorder %v1388_v32, 8.507059e+37 }
 0xed7   :  { %v2706_v25 = vpop.eup %2705 }
 0xed8   :  { %v1380_v26 = vmul.f32 %v2706_v25, %v1375_v23  ;;  %v1378_v28 = vpop.xlane.xlu2 %1377  ;;  %vm1385_vm12 = vweird.f32 %v2706_v25 }
 0xed9   :  { %2707 = vrcp.f32 %v1378_v28  ;;  %vm1386_vm14 = vmor %vm1384_vm13, %vm1385_vm12  ;;  %v1405_v42 = vand.u32 2147483648, %v1378_v28  ;;  %v1403_v47 = vand.u32 2147483647, %v1378_v28  ;;  %vm1399_vm3 = vweird.f32 %v1378_v28 }
 0xeda   :  { %v1381_v29 = vsub.f32 1.0, %v1380_v26 }
 0xedb   :  { %v1406_v52 = vor.u32 1.1754944e-38, %v1405_v42  ;;  %vm1404_vm5 = vcmp.eq.f32.partialorder %v1403_v47, 8.507059e+37 }
 0xedc   :  { %v1382_v31 = vmul.f32 %v2706_v25, %v1381_v29 }
 0xede   :  { %v1383_v33 = vadd.f32 %v2706_v25, %v1382_v31 }
 0xedf   :  { %v2708_v34 = vpop.eup %2707 }
 0xee0   :  { %v1387_v36 = vsel %vm1386_vm14, %v2706_v25, %v1383_v33  ;;  %v1395_v37 = vmul.f32 %v2708_v34, %v1378_v28  ;;  %vm1400_vm2 = vweird.f32 %v2708_v34 }
 0xee1   :  { %v1392_v38 = vsel %vm1389_vm15, %v1391_v35, %v1387_v36  ;;  %vm1401_vm4 = vmor %vm1399_vm3, %vm1400_vm2 }
 0xee2   :  { %v1396_v39 = vsub.f32 1.0, %v1395_v37  ;;  %v1409_v40 = vmul.f32 %v2702_v54, %v1392_v38 }
 0xee4   :  { %v1397_v43 = vmul.f32 %v2708_v34, %v1396_v39  ;;  %2561 = vmatmul.msk.f32.vlgmr.msrb.gmra.mxu3 %vm221_vm9, %v1409_v40 }
 0xee5   :  { %1717 = vmatpush.msrb.mxu3 %v2602_v41 }
 0xee6   :  { %v1398_v51 = vadd.f32 %v2708_v34, %v1397_v43 }
 0xee7   :  { %1718 = vmatpush.msrb.mxu3 %v2601_v49 }
 0xee8   :  { %v1402_v53 = vsel %vm1401_vm4, %v2708_v34, %v1398_v51 }
 0xee9   :  { %v1407_v58 = vsel %vm1404_vm5, %v1406_v52, %v1402_v53  ;;  %1719 = vmatpush.msrb.mxu3 %v2600_v48 }
 0xeea   :  { %v1410_v59 = vmul.f32 %v2704_v12, %v1407_v58  ;;  %v2626_v58 = vld [vmem:[%s3702_s3 + $0x2f8] sm:$0xff] }
 0xeeb   :  { %1720 = vmatpush.msrb.mxu3 %v2599_v57 }
 0xeec   :  { %2562 = vmatmul.msk.f32.gmra.mxu3 %vm221_vm9, %v1410_v59 }
 0xef4   :  { %2583 = vmatmul.msk.f32.vlgmr.msra.gmra.mxu3 %vm185_vm8, %v1464_v3  ;;  %v2625_v3 = vld [vmem:[%s3702_s3 + $0x2f0] sm:$0xff] }
 0xef5   :  { %1889 = vmatpush.msra.mxu3 %v2620_v46 }
 0xef7   :  { %1890 = vmatpush.msra.mxu3 %v2619_v0  ;;  %v2624_v0 = vld [vmem:[%s3702_s3 + $0x2e8] sm:$0xff] }
 0xef9   :  { %1891 = vmatpush.msra.mxu3 %v2618_v50 }
 0xefb   :  { %1892 = vmatpush.msra.mxu3 %v2617_v6  ;;  %v2623_v6 = vld [vmem:[%s3702_s3 + $0x2e0] sm:$0xff] }
 0xefc   :  { %2584 = vmatmul.msk.f32.gmra.mxu3 %vm185_vm8, %v1467_v5 }
 0xf04   :  { %2603 = vmatmul.msk.f32.vlgmr.msrb.gmra.mxu3 %vm30_vm0, %v3336_v9 }
 0xf0c   :  { %2604 = vmatmul.msk.f32.gmra.mxu3 %vm30_vm0, %v3357_v21 }
 0xf14   :  { %2621 = vmatmul.msk.f32.vlgmr.msra.gmra.mxu3 %vm30_vm0, %v3336_v9 }
 0xf1c   :  { %2622 = vmatmul.msk.f32.gmra.mxu3 %vm30_vm0, %v3357_v21 }
 0xf67   :  { %v3507_v8 = vpop.f32.mrf.mxu3 }
 0xf6f   :  { %v3509_v61 = vpop.f32.mrf.mxu3 }
 0xf77   :  { %v1556_v62 = vpop.f32.mrf.mxu3 }
 0xf78   :  { %v1557_v7 = vadd.f32 %v3453_v1, %v1556_v62 }
 0xf7a   :  { %v1562_v11 = vsel %vm221_vm9, %v1557_v7, -inf }
 0xf7b   :  { %1563 = vmax.xlane.f32.xlu1 %v1562_v11  ;;  %v1646_v11 = vperm.slane %v3392_v24, 2 }
 0xf7f   :  { %v1559_v44 = vpop.f32.mrf.mxu3 }
 0xf80   :  { %v1560_v13 = vadd.f32 %v3460_v4, %v1559_v44 }
 0xf82   :  { %v1565_v27 = vsel %vm221_vm9, %v1560_v13, -inf }
 0xf83   :  { %1566 = vmax.xlane.f32.xlu0 %v1565_v27 }
 0xf87   :  { %v1722_v14 = vpop.f32.mrf.mxu3 }
 0xf88   :  { %v1723_v54 = vadd.f32 %v1722_v14, %v1704_v60 }
 0xf8f   :  { %v1725_v17 = vpop.f32.mrf.mxu3 }
 0xf90   :  { %v1726_v19 = vadd.f32 %v1725_v17, %v1704_v60 }
 0xf92   :  { %1833 = vmatpush.msrb.mxu1 %v1726_v19 }
 0xf94   :  { %1834 = vmatpush.msrb.mxu1 %v1723_v54 }
 0xf97   :  { %v1894_v55 = vpop.f32.mrf.mxu3 }
 0xf98   :  { %v1895_v23 = vadd.f32 %v1894_v55, %v1876_v56 }
 0xf9f   :  { %v1897_v12 = vpop.f32.mrf.mxu3 }
 0xfa0   :  { %v1898_v16 = vadd.f32 %v1897_v12, %v1876_v56 }
 0xfa2   :  { %2629 = vmatpush.xpose.msk.msra.mxu1 %vm185_vm8, %v1898_v16  ;;  %v1905_v16 = vperm.slane %v3385_v18, 3 }
 0xfa6   :  { %2630 = vmatpush.xpose.msk.msra.mxu1 %vm185_vm8, %v1895_v23 }
 0xfee   :  { %v1564_v25 = vpop.xlane.xlu1 %1563 }
 0xfef   :  { %v1568_v26 = vsub.f32 %v1557_v7, %v1564_v25  ;;  %v1664_v7 = vpop.f32.mrf.mxu1 }
 0xff0   :  { %v1665_v44 = vadd.f32 %v1664_v7, %v1646_v11 }
 0xff1   :  { %v1570_v28 = vmul.f32 1.442695, %v1568_v26 }
 0xff3   :  { %2709 = vpow2.f32 %v1570_v28 }
 0xff6   :  { %v1567_v29 = vpop.xlane.xlu0 %1566 }
 0xff7   :  { %v1569_v30 = vsub.f32 %v1560_v13, %v1567_v29  ;;  %v1667_v13 = vpop.f32.mrf.mxu1 }
 0xff8   :  { %v1668_v27 = vadd.f32 %v1667_v13, %v1646_v11 }
 0xff9   :  { %v2710_v31 = vpop.eup %2709  ;;  %v1572_v32 = vmul.f32 1.442695, %v1569_v30 }
 0xffa   :  { %v1574_v33 = vsel %vm221_vm9, %v2710_v31, 0.0 }
 0xffb   :  { %2711 = vpow2.f32 %v1572_v32  ;;  %1575 = vadd.xlane.f32.xlu2 %v1574_v33 }
0x1001   :  { %v2712_v22 = vpop.eup %2711 }
0x1002   :  { %v1577_v34 = vsel %vm221_vm9, %v2712_v22, 0.0 }
0x1003   :  { %1578 = vadd.xlane.f32.xlu1 %v1577_v34 }
0x106e   :  { %v1576_v35 = vpop.xlane.xlu2 %1575 }
0x106f   :  { %2713 = vrcp.f32 %v1576_v35  ;;  %v1591_v40 = vand.u32 2147483648, %v1576_v35  ;;  %v1589_v42 = vand.u32 2147483647, %v1576_v35  ;;  %vm1585_vm7 = vweird.f32 %v1576_v35 }
0x1071   :  { %v1592_v49 = vor.u32 1.1754944e-38, %v1591_v40  ;;  %vm1590_vm11 = vcmp.eq.f32.partialorder %v1589_v42, 8.507059e+37 }
0x1075   :  { %v2714_v36 = vpop.eup %2713 }
0x1076   :  { %v1581_v37 = vmul.f32 %v2714_v36, %v1576_v35  ;;  %v1579_v38 = vpop.xlane.xlu1 %1578  ;;  %vm1586_vm6 = vweird.f32 %v2714_v36 }
0x1077   :  { %2715 = vrcp.f32 %v1579_v38  ;;  %vm1587_vm10 = vmor %vm1585_vm7, %vm1586_vm6  ;;  %v1606_v59 = vand.u32 2147483648, %v1579_v38  ;;  %v1604_v2 = vand.u32 2147483647, %v1579_v38  ;;  %vm1600_vm13 = vweird.f32 %v1579_v38 }
0x1078   :  { %v1582_v39 = vsub.f32 1.0, %v1581_v37 }
0x1079   :  { %v1607_v50 = vor.u32 1.1754944e-38, %v1606_v59  ;;  %vm1605_vm15 = vcmp.eq.f32.partialorder %v1604_v2, 8.507059e+37 }
0x107a   :  { %v1583_v41 = vmul.f32 %v2714_v36, %v1582_v39 }
0x107c   :  { %v1584_v43 = vadd.f32 %v2714_v36, %v1583_v41 }
0x107d   :  { %v2716_v47 = vpop.eup %2715 }
0x107e   :  { %v1588_v51 = vsel %vm1587_vm10, %v2714_v36, %v1584_v43  ;;  %v1596_v48 = vmul.f32 %v2716_v47, %v1579_v38  ;;  %vm1601_vm12 = vweird.f32 %v2716_v47 }
0x107f   :  { %v1593_v52 = vsel %vm1590_vm11, %v1592_v49, %v1588_v51  ;;  %vm1602_vm14 = vmor %vm1600_vm13, %vm1601_vm12 }
0x1080   :  { %v1597_v53 = vsub.f32 1.0, %v1596_v48  ;;  %v1610_v57 = vmul.f32 %v2710_v31, %v1593_v52 }
0x1082   :  { %v1598_v63 = vmul.f32 %v2716_v47, %v1597_v53  ;;  %2585 = vmatmul.msk.f32.vlgmr.msra.gmra.mxu0 %vm221_vm9, %v1610_v57 }
0x1083   :  { %1918 = vmatpush.msra.mxu0 %v2626_v58 }
0x1084   :  { %v1599_v46 = vadd.f32 %v2716_v47, %v1598_v63 }
0x1085   :  { %1919 = vmatpush.msra.mxu0 %v2625_v3 }
0x1086   :  { %v1603_v45 = vsel %vm1602_vm14, %v2716_v47, %v1599_v46 }
0x1087   :  { %v1608_v5 = vsel %vm1605_vm15, %v1607_v50, %v1603_v45  ;;  %1920 = vmatpush.msra.mxu0 %v2624_v0  ;;  %v1865_v45 = vpop.f32.mrf.mxu2 }
0x1088   :  { %v1611_v62 = vmul.f32 %v2712_v22, %v1608_v5 }
0x1089   :  { %1921 = vmatpush.msra.mxu0 %v2623_v6  ;;  %v1847_v6 = vperm.slane %v3392_v24, 3 }
0x108a   :  { %2586 = vmatmul.msk.f32.gmra.mxu0 %vm221_vm9, %v1611_v62 }
0x108b   :  { %v1866_v5 = vadd.f32 %v1865_v45, %v1847_v6 }
0x108f   :  { %v1868_v62 = vpop.f32.mrf.mxu2 }
0x1090   :  { %v1869_v7 = vadd.f32 %v1868_v62, %v1847_v6 }
0x1092   :  { %2607 = vmatmul.msk.f32.vlgmr.msrb.gmra.mxu0 %vm185_vm8, %v1665_v44 }
0x109a   :  { %2608 = vmatmul.msk.f32.gmra.mxu0 %vm185_vm8, %v1668_v27 }
0x10a2   :  { %2627 = vmatmul.msk.f32.vlgmr.msra.gmra.mxu0 %vm30_vm0, %v3336_v9 }
0x10aa   :  { %2628 = vmatmul.msk.f32.gmra.mxu0 %vm30_vm0, %v3357_v21 }
0x10ff   :  { %v3542_v14 = vpop.f32.mrf.mxu0 }
0x1107   :  { %v3544_v60 = vpop.f32.mrf.mxu0 }
0x110f   :  { %v1757_v17 = vpop.f32.mrf.mxu0 }
0x1110   :  { %v1758_v19 = vadd.f32 %v3453_v1, %v1757_v17 }
0x1112   :  { %v1763_v54 = vsel %vm221_vm9, %v1758_v19, -inf }
0x1113   :  { %1764 = vmax.xlane.f32.xlu0 %v1763_v54 }
0x1117   :  { %v1760_v55 = vpop.f32.mrf.mxu0 }
0x1118   :  { %v1761_v56 = vadd.f32 %v3460_v4, %v1760_v55 }
0x111a   :  { %v1766_v12 = vsel %vm221_vm9, %v1761_v56, -inf }
0x111b   :  { %1767 = vmax.xlane.f32.xlu2 %v1766_v12 }
0x111f   :  { %v1923_v9 = vpop.f32.mrf.mxu0 }
0x1120   :  { %v1924_v25 = vadd.f32 %v1923_v9, %v1905_v16 }
0x1127   :  { %v1926_v21 = vpop.f32.mrf.mxu0 }
0x1128   :  { %v1927_v23 = vadd.f32 %v1926_v21, %v1905_v16 }
0x112a   :  { %2034 = vmatpush.msra.mxu2 %v1927_v23 }
0x112c   :  { %2035 = vmatpush.msra.mxu2 %v1924_v25 }
0x1186   :  { %v1765_v26 = vpop.xlane.xlu0 %1764 }
0x1187   :  { %v1769_v28 = vsub.f32 %v1758_v19, %v1765_v26 }
0x1189   :  { %v1771_v29 = vmul.f32 1.442695, %v1769_v28 }
0x118b   :  { %2717 = vpow2.f32 %v1771_v29 }
0x118e   :  { %v1768_v30 = vpop.xlane.xlu2 %1767 }
0x118f   :  { %v1770_v31 = vsub.f32 %v1761_v56, %v1768_v30 }
0x1191   :  { %v2718_v32 = vpop.eup %2717  ;;  %v1773_v33 = vmul.f32 1.442695, %v1770_v31 }
0x1192   :  { %v1775_v22 = vsel %vm221_vm9, %v2718_v32, 0.0 }
0x1193   :  { %2719 = vpow2.f32 %v1773_v33  ;;  %1776 = vadd.xlane.f32.xlu1 %v1775_v22 }
0x1199   :  { %v2720_v34 = vpop.eup %2719 }
0x119a   :  { %v1778_v18 = vsel %vm221_vm9, %v2720_v34, 0.0 }
0x119b   :  { %1779 = vadd.xlane.f32.xlu0 %v1778_v18 }
0x1206   :  { %v1777_v35 = vpop.xlane.xlu1 %1776 }
0x1207   :  { %2721 = vrcp.f32 %v1777_v35  ;;  %v1792_v40 = vand.u32 2147483648, %v1777_v35  ;;  %v1790_v42 = vand.u32 2147483647, %v1777_v35  ;;  %vm1786_vm3 = vweird.f32 %v1777_v35 }
0x1209   :  { %v1793_v49 = vor.u32 1.1754944e-38, %v1792_v40  ;;  %vm1791_vm5 = vcmp.eq.f32.partialorder %v1790_v42, 8.507059e+37 }
0x120d   :  { %v2722_v36 = vpop.eup %2721 }
0x120e   :  { %v1782_v37 = vmul.f32 %v2722_v36, %v1777_v35  ;;  %v1780_v38 = vpop.xlane.xlu0 %1779  ;;  %vm1787_vm2 = vweird.f32 %v2722_v36 }
0x120f   :  { %2723 = vrcp.f32 %v1780_v38  ;;  %vm1788_vm4 = vmor %vm1786_vm3, %vm1787_vm2  ;;  %v1807_v58 = vand.u32 2147483648, %v1780_v38  ;;  %v1805_v63 = vand.u32 2147483647, %v1780_v38  ;;  %vm1801_vm7 = vweird.f32 %v1780_v38 }
0x1210   :  { %v1783_v39 = vsub.f32 1.0, %v1782_v37 }
0x1211   :  { %v1808_v3 = vor.u32 1.1754944e-38, %v1807_v58  ;;  %vm1806_vm11 = vcmp.eq.f32.partialorder %v1805_v63, 8.507059e+37 }
0x1212   :  { %v1784_v41 = vmul.f32 %v2722_v36, %v1783_v39 }
0x1214   :  { %v1785_v43 = vadd.f32 %v2722_v36, %v1784_v41 }
0x1215   :  { %v2724_v47 = vpop.eup %2723 }
0x1216   :  { %v1789_v51 = vsel %vm1788_vm4, %v2722_v36, %v1785_v43  ;;  %v1797_v48 = vmul.f32 %v2724_v47, %v1780_v38  ;;  %vm1802_vm6 = vweird.f32 %v2724_v47 }
0x1217   :  { %v1794_v52 = vsel %vm1791_vm5, %v1793_v49, %v1789_v51  ;;  %vm1803_vm10 = vmor %vm1801_vm7, %vm1802_vm6 }
0x1218   :  { %v1798_v53 = vsub.f32 1.0, %v1797_v48  ;;  %v1811_v57 = vmul.f32 %v2718_v32, %v1794_v52  ;;  %v2076_v48 = vld [vmem:[%s3704_s5 + $0xb8] sm:$0xff]  ;;  %v2075_v52 = vld [vmem:[%s3704_s5 + $0xb0] sm:$0xff] }
0x1219   :  { %2095 = vmatpush.msrb.mxu3 %v2076_v48 }
0x121a   :  { %v1799_v59 = vmul.f32 %v2724_v47, %v1798_v53  ;;  %2609 = vmatmul.msk.f32.vlgmr.msrb.gmra.mxu1 %vm221_vm9, %v1811_v57  ;;  %v2074_v53 = vld [vmem:[%s3704_s5 + $0xa8] sm:$0xff] }
0x121b   :  { %2096 = vmatpush.msrb.mxu3 %v2075_v52 }
0x121c   :  { %v1800_v2 = vadd.f32 %v2724_v47, %v1799_v59  ;;  %v2073_v59 = vld [vmem:[%s3704_s5 + $0xa0] sm:$0xff] }
0x121d   :  { %2097 = vmatpush.msrb.mxu3 %v2074_v53 }
0x121e   :  { %v1804_v46 = vsel %vm1803_vm10, %v2724_v47, %v1800_v2 }
0x121f   :  { %v1809_v0 = vsel %vm1806_vm11, %v1808_v3, %v1804_v46  ;;  %2098 = vmatpush.msrb.mxu3 %v2073_v59 }
0x1220   :  { %v1812_v50 = vmul.f32 %v2720_v34, %v1809_v0 }
0x1222   :  { %2610 = vmatmul.msk.f32.gmra.mxu1 %vm221_vm9, %v1812_v50 }
0x122a   :  { %2631 = vmatmul.msk.f32.vlgmr.msra.gmra.mxu1 %vm185_vm8, %v1866_v5 }
0x1232   :  { %2632 = vmatmul.msk.f32.gmra.mxu1 %vm185_vm8, %v1869_v7 }
0x1297   :  { %v1836_v11 = vpop.f32.mrf.mxu1 }
0x129f   :  { %v1839_v44 = vpop.f32.mrf.mxu1 }
0x12a7   :  { %v1958_v13 = vpop.f32.mrf.mxu1 }
0x12a8   :  { %v1959_v27 = vadd.f32 %v3453_v1, %v1958_v13 }
0x12aa   :  { %v1964_v17 = vsel %vm221_vm9, %v1959_v27, -inf }
0x12ab   :  { %1965 = vmax.xlane.f32.xlu2 %v1964_v17 }
0x12af   :  { %v1961_v19 = vpop.f32.mrf.mxu1 }
0x12b0   :  { %v1962_v54 = vadd.f32 %v3460_v4, %v1961_v19 }
0x12b2   :  { %v1967_v24 = vsel %vm221_vm9, %v1962_v54, -inf }
0x12b3   :  { %1968 = vmax.xlane.f32.xlu1 %v1967_v24 }
0x12cc   :  { %2045 = vrot.lane.b32.xlu1 %v3542_v14, %s2779_s13 }
0x12d4   :  { %2055 = vrot.lane.b32.xlu1 %v1839_v44, %s2780_s14 }
0x131e   :  { %v1966_v55 = vpop.xlane.xlu2 %1965 }
0x131f   :  { %v1970_v56 = vsub.f32 %v1959_v27, %v1966_v55 }
0x1321   :  { %v1972_v12 = vmul.f32 1.442695, %v1970_v56 }
0x1323   :  { %2725 = vpow2.f32 %v1972_v12 }
0x1326   :  { %v1969_v9 = vpop.xlane.xlu1 %1968 }
0x1327   :  { %v1971_v1 = vsub.f32 %v1962_v54, %v1969_v9 }
0x1329   :  { %v2726_v16 = vpop.eup %2725  ;;  %v1974_v21 = vmul.f32 1.442695, %v1971_v1 }
0x132a   :  { %v1976_v23 = vsel %vm221_vm9, %v2726_v16, 0.0 }
0x132b   :  { %2727 = vpow2.f32 %v1974_v21  ;;  %1977 = vadd.xlane.f32.xlu0 %v1976_v23 }
0x1331   :  { %v2728_v4 = vpop.eup %2727 }
0x1332   :  { %v1979_v25 = vsel %vm221_vm9, %v2728_v4, 0.0 }
0x1333   :  { %1980 = vadd.xlane.f32.xlu2 %v1979_v25  ;;  %v2164_v25 = vld [vmem:[%s3704_s5 + $0x78] sm:$0xff] }
0x1334   :  { %2184 = vmatpush.msrb.mxu0 %v2164_v25 }
0x133e   :  { %v2046_v2 = vpop.permute.xlu1 %2045 }
0x133f   :  { %2053 = vrot.lane.b32.xlu0 %v1836_v11, %s2780_s14  ;;  %v2067_v3 = vsel %vm185_vm8, %v3507_v8, %v2046_v2  ;;  %v3599_v8 = vld [vmem:[%s3701_s2 + $0x8] sm:$0xff] }
0x1340   :  { %v2108_v44 = vperm.slane %v3599_v8, 5 }
0x1346   :  { %v2056_v5 = vpop.permute.xlu1 %2055 }
0x1347   :  { %2047 = vrot.lane.b32.xlu0 %v3544_v60, %s2779_s13 }
0x139e   :  { %v1978_v14 = vpop.xlane.xlu0 %1977 }
0x139f   :  { %2729 = vrcp.f32 %v1978_v14  ;;  %v1993_v31 = vand.u32 2147483648, %v1978_v14  ;;  %v1991_v33 = vand.u32 2147483647, %v1978_v14  ;;  %vm1987_vm13 = vweird.f32 %v1978_v14 }
0x13a1   :  { %v1994_v18 = vor.u32 1.1754944e-38, %v1993_v31  ;;  %vm1992_vm15 = vcmp.eq.f32.partialorder %v1991_v33, 8.507059e+37 }
0x13a5   :  { %v2730_v26 = vpop.eup %2729 }
0x13a6   :  { %v1983_v28 = vmul.f32 %v2730_v26, %v1978_v14  ;;  %v1981_v29 = vpop.xlane.xlu2 %1980  ;;  %vm1988_vm12 = vweird.f32 %v2730_v26  ;;  %v2163_v14 = vld [vmem:[%s3704_s5 + $0x70] sm:$0xff] }
0x13a7   :  { %2731 = vrcp.f32 %v1981_v29  ;;  %vm1989_vm14 = vmor %vm1987_vm13, %vm1988_vm12  ;;  %v2008_v39 = vand.u32 2147483648, %v1981_v29  ;;  %v2006_v41 = vand.u32 2147483647, %v1981_v29  ;;  %vm2002_vm3 = vweird.f32 %v1981_v29  ;;  %2185 = vmatpush.msrb.mxu0 %v2163_v14 }
0x13a8   :  { %v1984_v30 = vsub.f32 1.0, %v1983_v28  ;;  %v2161_v28 = vld [vmem:[%s3704_s5 + $0x60] sm:$0xff] }
0x13a9   :  { %v2009_v43 = vor.u32 1.1754944e-38, %v2008_v39  ;;  %vm2007_vm5 = vcmp.eq.f32.partialorder %v2006_v41, 8.507059e+37 }
0x13aa   :  { %v1985_v32 = vmul.f32 %v2730_v26, %v1984_v30 }
0x13ac   :  { %v1986_v22 = vadd.f32 %v2730_v26, %v1985_v32 }
0x13ad   :  { %v2732_v34 = vpop.eup %2731 }
0x13ae   :  { %v1990_v35 = vsel %vm1989_vm14, %v2730_v26, %v1986_v22  ;;  %v1998_v36 = vmul.f32 %v2732_v34, %v1981_v29  ;;  %vm2003_vm2 = vweird.f32 %v2732_v34  ;;  %v2162_v26 = vld [vmem:[%s3704_s5 + $0x68] sm:$0xff] }
0x13af   :  { %v1995_v60 = vsel %vm1992_vm15, %v1994_v18, %v1990_v35  ;;  %vm2004_vm4 = vmor %vm2002_vm3, %vm2003_vm2  ;;  %2186 = vmatpush.msrb.mxu0 %v2162_v26 }
0x13b0   :  { %v1999_v37 = vsub.f32 1.0, %v1998_v36  ;;  %v2012_v38 = vmul.f32 %v2726_v16, %v1995_v60 }
0x13b1   :  { %v2054_v63 = vpop.permute.xlu0 %2053  ;;  %2187 = vmatpush.msrb.mxu0 %v2161_v28 }
0x13b2   :  { %v2000_v40 = vmul.f32 %v2732_v34, %v1999_v37  ;;  %2633 = vmatmul.msk.f32.vlgmr.msra.gmra.mxu2 %vm221_vm9, %v2012_v38  ;;  %v2069_v46 = vsel %vm221_vm9, %v2067_v3, %v2054_v63  ;;  %v2165_v3 = vperm.slane %v3599_v8, 3 }
0x13b4   :  { %v2001_v42 = vadd.f32 %v2732_v34, %v2000_v40  ;;  %v3635_v40 = vld [vmem:[%s3701_s2] sm:$0xff] }
0x13b5   :  { %v2155_v41 = vperm.slane %v3635_v40, 3 }
0x13b6   :  { %v2005_v47 = vsel %vm2004_vm4, %v2732_v34, %v2001_v42 }
0x13b7   :  { %v2010_v49 = vsel %vm2007_vm5, %v2009_v43, %v2005_v47  ;;  %vm2320_vm5 = vcmask 261127  }
0x13b8   :  { %v2013_v51 = vmul.f32 %v2728_v4, %v2010_v49  ;;  %v2158_v49 = vperm.slane %v3599_v8, 0 }
0x13b9   :  { %v2048_v45 = vpop.permute.xlu0 %2047 }
0x13ba   :  { %2634 = vmatmul.msk.f32.gmra.mxu2 %vm221_vm9, %v2013_v51  ;;  %v2068_v6 = vsel %vm185_vm8, %v3509_v61, %v2048_v45 }
0x13bb   :  { %v2070_v7 = vsel %vm221_vm9, %v2068_v6, %v2056_v5  ;;  %v2286_v5 = vld [vmem:[%s3704_s5 + $0x98] sm:$0xff] }
0x13bc   :  { %2299 = vmatpush.xpose.msrb.mxu1 %v2286_v5 }
0x1435   :  { %v2037_v57 = vpop.f32.mrf.mxu2 }
0x1436   :  { %2061 = vrot.lane.b32.xlu2 %v2037_v57, %s2781_s15 }
0x143d   :  { %v2040_v58 = vpop.f32.mrf.mxu2 }
0x143e   :  { %2063 = vrot.lane.b32.xlu2 %v2040_v58, %s2781_s15 }
0x1490   :  { %v2062_v0 = vpop.permute.xlu2 %2061 }
0x1491   :  { %v2071_v50 = vsel %vm932_vm1, %v2069_v46, %v2062_v0 }
0x1492   :  { %2635 = vmatmul.msk.f32.vlgmr.msrb.gmra.mxu3 %vm30_vm0, %v2071_v50 }
0x1498   :  { %v2064_v62 = vpop.permute.xlu2 %2063 }
0x1499   :  { %v2072_v11 = vsel %vm932_vm1, %v2070_v7, %v2064_v62 }
0x149a   :  { %2636 = vmatmul.msk.f32.gmra.mxu3 %vm30_vm0, %v2072_v11 }
0x1515   :  { %v2100_v13 = vpop.f32.mrf.mxu3 }
0x1516   :  { %v2106_v27 = vadd.f32 %v2100_v13, %v3248_v15 }
0x1518   :  { %v3603_v17 = vadd.f32 %v2108_v44, %v2106_v27 }
0x151a   :  { %v2111_v61 = vsel %vm30_vm0, %v3603_v17, 0.0 }
0x151b   :  { %2112 = vadd.xlane.f32.xlu0 %v2111_v61  ;;  %v2285_v61 = vld [vmem:[%s3704_s5 + $0x90] sm:$0xff] }
0x151c   :  { %2300 = vmatpush.xpose.msrb.mxu1 %v2285_v61 }
0x151d   :  { %v2103_v19 = vpop.f32.mrf.mxu3 }
0x151e   :  { %v2107_v54 = vadd.f32 %v2103_v19, %v3253_v20 }
0x1520   :  { %v3608_v24 = vadd.f32 %v2108_v44, %v2107_v54 }
0x1522   :  { %v2114_v55 = vsel %vm30_vm0, %v3608_v24, 0.0 }
0x1523   :  { %2115 = vadd.xlane.f32.xlu1 %v2114_v55 }
0x158e   :  { %v2113_v56 = vpop.xlane.xlu0 %2112 }
0x158f   :  { %v2117_v12 = vmul.f32 %v2113_v56, %v2826_v10 }
0x1591   :  { %v2119_v15 = vsub.f32 %v3603_v17, %v2117_v12 }
0x1593   :  { %v2121_v9 = vmul.f32 %v2119_v15, %v2119_v15 }
0x1595   :  { %v2123_v1 = vsel %vm30_vm0, %v2121_v9, 0.0 }
0x1596   :  { %2124 = vadd.xlane.f32.xlu2 %v2123_v1  ;;  %v2116_v16 = vpop.xlane.xlu1 %2115 }
0x1597   :  { %v2118_v21 = vmul.f32 %v2116_v16, %v2826_v10 }
0x1599   :  { %v2120_v20 = vsub.f32 %v3608_v24, %v2118_v21 }
0x159b   :  { %v2122_v23 = vmul.f32 %v2120_v20, %v2120_v20 }
0x159d   :  { %v2126_v4 = vsel %vm30_vm0, %v2122_v23, 0.0 }
0x159e   :  { %2127 = vadd.xlane.f32.xlu0 %v2126_v4  ;;  %v2283_v4 = vld [vmem:[%s3704_s5 + $0x80] sm:$0xff] }
0x1609   :  { %v2125_v29 = vpop.xlane.xlu2 %2124 }
0x160a   :  { %v2129_v30 = vmul.f32 %v2125_v29, %v2826_v10 }
0x160c   :  { %v2131_v31 = vadd.f32 1e-05, %v2129_v30 }
0x160e   :  { %2733 = vrsqrt.f32 %v2131_v31  ;;  %vm2139_vm9 = vweird.f32 %v2131_v31 }
0x1611   :  { %v2128_v32 = vpop.xlane.xlu0 %2127 }
0x1612   :  { %v2130_v33 = vmul.f32 %v2128_v32, %v2826_v10 }
0x1614   :  { %v2734_v22 = vpop.eup %2733  ;;  %v2132_v34 = vadd.f32 1e-05, %v2130_v33 }
0x1615   :  { %v2134_v18 = vmul.f32 %v2734_v22, %v2131_v31  ;;  %vm2140_vm8 = vweird.f32 %v2734_v22 }
0x1616   :  { %2735 = vrsqrt.f32 %v2132_v34  ;;  %vm2141_vm1 = vmor %vm2139_vm9, %vm2140_vm8  ;;  %vm2149_vm7 = vweird.f32 %v2132_v34  ;;  %vm2324_vm8 = vcmask 253952  }
0x1617   :  { %v2135_v35 = vmul.f32 %v2734_v22, %v2134_v18 }
0x1619   :  { %v2136_v36 = vmul.f32 0.5, %v2135_v35 }
0x161b   :  { %v2137_v60 = vsub.f32 1.5, %v2136_v36 }
0x161c   :  { %v2736_v37 = vpop.eup %2735 }
0x161d   :  { %v2138_v38 = vmul.f32 %v2734_v22, %v2137_v60  ;;  %v2144_v39 = vmul.f32 %v2736_v37, %v2132_v34  ;;  %vm2150_vm6 = vweird.f32 %v2736_v37 }
0x161e   :  { %vm2151_vm10 = vmor %vm2149_vm7, %vm2150_vm6 }
0x161f   :  { %v2142_v42 = vsel %vm2141_vm1, %v2734_v22, %v2138_v38  ;;  %v2145_v43 = vmul.f32 %v2736_v37, %v2144_v39 }
0x1620   :  { %v2153_v47 = vmul.f32 %v2142_v42, %v2119_v15  ;;  %v2284_v15 = vld [vmem:[%s3704_s5 + $0x88] sm:$0xff] }
0x1621   :  { %v2146_v51 = vmul.f32 0.5, %v2145_v43  ;;  %2301 = vmatpush.xpose.msrb.mxu1 %v2284_v15 }
0x1622   :  { %v2156_v48 = vmul.f32 %v2155_v41, %v2153_v47 }
0x1623   :  { %v2147_v52 = vsub.f32 1.5, %v2146_v51 }
0x1624   :  { %v2159_v53 = vadd.f32 %v2158_v49, %v2156_v48 }
0x1625   :  { %v2148_v57 = vmul.f32 %v2736_v37, %v2147_v52  ;;  %2302 = vmatpush.xpose.msrb.mxu1 %v2283_v4 }
0x1626   :  { %2637 = vmatmul.msk.f32.vlgmr.msrb.gmra.mxu0 %vm30_vm0, %v2159_v53 }
0x1627   :  { %v2152_v58 = vsel %vm2151_vm10, %v2736_v37, %v2148_v57 }
0x1628   :  { %v2154_v59 = vmul.f32 %v2152_v58, %v2120_v20 }
0x162a   :  { %v2157_v63 = vmul.f32 %v2155_v41, %v2154_v59 }
0x162c   :  { %v2160_v2 = vadd.f32 %v2158_v49, %v2157_v63 }
0x162e   :  { %2638 = vmatmul.msk.f32.gmra.mxu0 %vm30_vm0, %v2160_v2 }
0x16a3   :  { %v2189_v46 = vpop.f32.mrf.mxu0 }
0x16a4   :  { %v3642_v0 = vadd.f32 %v2189_v46, %v2165_v3 }
0x16a6   :  { %v3645_v50 = vmul.f32 0.70710677, %v3642_v0  ;;  %v2195_v15 = vmul.f32 0.5, %v3642_v0  ;;  %v2312_v0 = vperm.slane %v3599_v8, 7 }
0x16a8   :  { %v2199_v45 = vmul.f32 %v3645_v50, %v3645_v50 }
0x16aa   :  { %v2200_v6 = vmin.f32 %v2199_v45, 16.0 }
0x16ab   :  { %v2192_v62 = vpop.f32.mrf.mxu0 }
0x16ac   :  { %v2201_v7 = vmul.f32 2.1237322e-06, %v2200_v6  ;;  %v2212_v11 = vmul.f32 3.8918573e-05, %v2200_v6  ;;  %v3652_v44 = vadd.f32 %v2192_v62, %v2165_v3 }
0x16ae   :  { %v2202_v13 = vadd.f32 0.00028619796, %v2201_v7  ;;  %v2213_v27 = vadd.f32 0.001143296, %v2212_v11  ;;  %v3658_v19 = vmul.f32 0.70710677, %v3652_v44 }
0x16b0   :  { %v2203_v54 = vmul.f32 %v2202_v13, %v2200_v6  ;;  %v2214_v55 = vmul.f32 %v2213_v27, %v2200_v6  ;;  %v2239_v56 = vmul.f32 %v3658_v19, %v3658_v19 }
0x16b2   :  { %v2215_v12 = vadd.f32 0.014752088, %v2214_v55  ;;  %v2204_v9 = vadd.f32 0.0036580483, %v2203_v54  ;;  %v2240_v1 = vmin.f32 %v2239_v56, 16.0 }
0x16b4   :  { %v2216_v16 = vmul.f32 %v2215_v12, %v2200_v6  ;;  %v2241_v21 = vmul.f32 2.1237322e-06, %v2240_v1  ;;  %v2252_v20 = vmul.f32 3.8918573e-05, %v2240_v1  ;;  %v2205_v25 = vmul.f32 %v2204_v9, %v2200_v6 }
0x16b6   :  { %v2217_v23 = vadd.f32 0.112945676, %v2216_v16  ;;  %v2242_v14 = vadd.f32 0.00028619796, %v2241_v21  ;;  %v2253_v26 = vadd.f32 0.001143296, %v2252_v20 }
0x16b7   :  { %v2206_v32 = vadd.f32 0.05243302, %v2205_v25 }
0x16b8   :  { %v2218_v28 = vmul.f32 %v2217_v23, %v2200_v6  ;;  %v2243_v29 = vmul.f32 %v2242_v14, %v2240_v1  ;;  %v2254_v30 = vmul.f32 %v2253_v26, %v2240_v1  ;;  %v2196_v14 = vmul.f32 0.5, %v3652_v44 }
0x16b9   :  { %v2207_v36 = vmul.f32 %v2206_v32, %v2200_v6 }
0x16ba   :  { %v2219_v31 = vadd.f32 0.4994258, %v2218_v28  ;;  %v2255_v33 = vadd.f32 0.014752088, %v2254_v30  ;;  %v2244_v34 = vadd.f32 0.0036580483, %v2243_v29 }
0x16bb   :  { %v2208_v39 = vadd.f32 0.18741608, %v2207_v36 }
0x16bc   :  { %v2220_v22 = vmul.f32 %v2219_v31, %v2200_v6  ;;  %v2256_v18 = vmul.f32 %v2255_v33, %v2240_v1  ;;  %v2245_v37 = vmul.f32 %v2244_v34, %v2240_v1 }
0x16bd   :  { %v2209_v49 = vmul.f32 %v2208_v39, %v2200_v6 }
0x16be   :  { %v2221_v35 = vadd.f32 1.0, %v2220_v22  ;;  %v2257_v60 = vadd.f32 0.112945676, %v2256_v18  ;;  %v2246_v42 = vadd.f32 0.05243302, %v2245_v37 }
0x16bf   :  { %v2210_v58 = vadd.f32 1.1283791, %v2209_v49 }
0x16c0   :  { %2737 = vrcp.f32 %v2221_v35  ;;  %v2258_v38 = vmul.f32 %v2257_v60, %v2240_v1  ;;  %v2247_v52 = vmul.f32 %v2246_v42, %v2240_v1  ;;  %v2233_v57 = vand.u32 2147483648, %v2221_v35 }
0x16c1   :  { %v2231_v63 = vand.u32 2147483647, %v2221_v35  ;;  %vm2227_vm12 = vweird.f32 %v2221_v35  ;;  %v2211_v5 = vmul.f32 %v2210_v58, %v3645_v50 }
0x16c2   :  { %v2259_v41 = vadd.f32 0.4994258, %v2258_v38  ;;  %v2248_v2 = vadd.f32 0.18741608, %v2247_v52  ;;  %v2234_v46 = vor.u32 1.1754944e-38, %v2233_v57  ;;  %v2389_v52 = vld [vmem:[%s3704_s5 + $0xd0] sm:$0xff] }
0x16c3   :  { %vm2232_vm14 = vcmp.eq.f32.partialorder %v2231_v63, 8.507059e+37 }
0x16c4   :  { %v2260_v43 = vmul.f32 %v2259_v41, %v2240_v1  ;;  %v2249_v7 = vmul.f32 %v2248_v2, %v2240_v1 }
0x16c6   :  { %v2738_v47 = vpop.eup %2737  ;;  %v2261_v48 = vadd.f32 1.0, %v2260_v43  ;;  %v2250_v55 = vadd.f32 1.1283791, %v2249_v7 }
0x16c7   :  { %v2223_v51 = vmul.f32 %v2738_v47, %v2221_v35  ;;  %vm2228_vm11 = vweird.f32 %v2738_v47 }
0x16c8   :  { %2739 = vrcp.f32 %v2261_v48  ;;  %vm2229_vm13 = vmor %vm2227_vm12, %vm2228_vm11  ;;  %v2273_v54 = vand.u32 2147483648, %v2261_v48  ;;  %v2271_v12 = vand.u32 2147483647, %v2261_v48  ;;  %vm2267_vm2 = vweird.f32 %v2261_v48 }
0x16c9   :  { %v2224_v53 = vsub.f32 1.0, %v2223_v51  ;;  %v2251_v20 = vmul.f32 %v2250_v55, %v3658_v19  ;;  %vm2395_vm12 = vcmask 1041409  }
0x16ca   :  { %v2274_v50 = vor.u32 1.1754944e-38, %v2273_v54  ;;  %vm2272_vm4 = vcmp.eq.f32.partialorder %v2271_v12, 8.507059e+37  ;;  %v2381_v54 = vperm.slane %v3635_v40, 4 }
0x16cb   :  { %v2225_v59 = vmul.f32 %v2738_v47, %v2224_v53  ;;  %v2388_v53 = vld [vmem:[%s3704_s5 + $0xc8] sm:$0xff] }
0x16cd   :  { %v2226_v3 = vadd.f32 %v2738_v47, %v2225_v59  ;;  %v2387_v59 = vld [vmem:[%s3704_s5 + $0xc0] sm:$0xff] }
0x16ce   :  { %v2740_v45 = vpop.eup %2739 }
0x16cf   :  { %v2230_v62 = vsel %vm2229_vm13, %v2738_v47, %v2226_v3  ;;  %v2263_v11 = vmul.f32 %v2740_v45, %v2261_v48  ;;  %vm2268_vm15 = vweird.f32 %v2740_v45  ;;  %v2390_v48 = vld [vmem:[%s3704_s5 + $0xd8] sm:$0xff]  ;;  %s2782_s5 = smov [#allocation2]  }
0x16d0   :  { %v2235_v6 = vsel %vm2232_vm14, %v2234_v46, %v2230_v62  ;;  %vm2269_vm3 = vmor %vm2267_vm2, %vm2268_vm15  ;;  %2411 = vmatpush.msrb.mxu2 %v2390_v48  ;;  %s2425_s21 = sshll.u32 %s2782_s5, 4  ;;  %s2426_s21 = int_to_ptr.vmem [resolvable:$true] %s2425_s21 }
0x16d1   :  { %v2236_v13 = vmul.f32 %v2235_v6, %v2211_v5  ;;  %v2264_v27 = vsub.f32 1.0, %v2263_v11 }
0x16d2   :  { %2412 = vmatpush.msrb.mxu2 %v2389_v52 }
0x16d3   :  { %v2639_v61 = vclamps-f32 %v2236_v13, 1.0  ;;  %v2265_v56 = vmul.f32 %v2740_v45, %v2264_v27 }
0x16d4   :  { %2413 = vmatpush.msrb.mxu2 %v2388_v53 }
0x16d5   :  { %v2279_v9 = vadd.f32 1.0, %v2639_v61  ;;  %v2266_v16 = vadd.f32 %v2740_v45, %v2265_v56 }
0x16d6   :  { %2414 = vmatpush.msrb.mxu2 %v2387_v59 }
0x16d7   :  { %v2281_v21 = vmul.f32 %v2279_v9, %v2195_v15  ;;  %v2270_v1 = vsel %vm2269_vm3, %v2740_v45, %v2266_v16  ;;  %v2384_v9 = vperm.slane %v3599_v8, 1 }
0x16d8   :  { %v2275_v23 = vsel %vm2272_vm4, %v2274_v50, %v2270_v1 }
0x16d9   :  { %2303 = vmatmul.f32.vlgmr.msrb.gmra.mxu1 %v2281_v21  ;;  %v2276_v4 = vmul.f32 %v2275_v23, %v2251_v20 }
0x16db   :  { %v2640_v25 = vclamps-f32 %v2276_v4, 1.0 }
0x16dd   :  { %v2280_v26 = vadd.f32 1.0, %v2640_v25 }
0x16df   :  { %v2282_v28 = vmul.f32 %v2280_v26, %v2196_v14 }
0x16e1   :  { %2306 = vmatmul.f32.gmra.mxu1 %v2282_v28 }
0x1756   :  { %v2304_v29 = vpop.f32.mrf.mxu1 }
0x1757   :  { %v2310_v30 = vadd.f32 %v2304_v29, %v3603_v17 }
0x1759   :  { %v2313_v31 = vadd.f32 %v2312_v0, %v2310_v30 }
0x175b   :  { %v2321_v32 = vsel %vm2320_vm5, %v2313_v31, 0.0 }
0x175c   :  { %2322 = vadd.xlane.f32.xlu2 %v2321_v32 }
0x175e   :  { %v2307_v19 = vpop.f32.mrf.mxu1 }
0x175f   :  { %v2311_v33 = vadd.f32 %v2307_v19, %v3608_v24 }
0x1761   :  { %v2314_v22 = vadd.f32 %v2312_v0, %v2311_v33 }
0x1763   :  { %v2317_v34 = vrot.slane %v2314_v22, 7 }
0x1765   :  { %v2325_v44 = vsel %vm2324_vm8, %v2317_v34, 0.0 }
0x1766   :  { %2326 = vadd.xlane.f32.xlu1 %v2325_v44 }
0x17cf   :  { %v2323_v18 = vpop.xlane.xlu2 %2322 }
0x17d0   :  { %v2328_v35 = vmul.f32 %v2323_v18, %v2826_v10 }
0x17d2   :  { %v2335_v36 = vsub.f32 %v2313_v31, %v2328_v35 }
0x17d4   :  { %v2337_v60 = vmul.f32 %v2335_v36, %v2335_v36 }
0x17d6   :  { %v2344_v37 = vsel %vm2320_vm5, %v2337_v60, 0.0 }
0x17d7   :  { %2345 = vadd.xlane.f32.xlu1 %v2344_v37 }
0x17d9   :  { %v2327_v17 = vpop.xlane.xlu1 %2326 }
0x17da   :  { %v2329_v38 = vmul.f32 %v2327_v17, %v2826_v10 }
0x17dc   :  { %v2332_v39 = vrot.slane %v2329_v38, 1 }
0x17de   :  { %v2336_v41 = vsub.f32 %v2314_v22, %v2332_v39 }
0x17e0   :  { %v2338_v42 = vmul.f32 %v2336_v41, %v2336_v41 }
0x17e2   :  { %v2341_v24 = vrot.slane %v2338_v42, 7 }
0x17e4   :  { %v2347_v43 = vsel %vm2324_vm8, %v2341_v24, 0.0 }
0x17e5   :  { %2348 = vadd.xlane.f32.xlu0 %v2347_v43 }
0x184a   :  { %v2346_v47 = vpop.xlane.xlu1 %2345 }
0x184b   :  { %v2350_v49 = vmul.f32 %v2346_v47, %v2826_v10 }
0x184d   :  { %v2352_v51 = vadd.f32 1e-05, %v2350_v49 }
0x184f   :  { %2741 = vrsqrt.f32 %v2352_v51  ;;  %vm2360_vm1 = vweird.f32 %v2352_v51 }
0x1855   :  { %v2742_v57 = vpop.eup %2741 }
0x1856   :  { %v2355_v58 = vmul.f32 %v2742_v57, %v2352_v51  ;;  %vm2361_vm9 = vweird.f32 %v2742_v57 }
0x1857   :  { %vm2362_vm6 = vmor %vm2360_vm1, %vm2361_vm9 }
0x1858   :  { %v2356_v63 = vmul.f32 %v2742_v57, %v2355_v58  ;;  %v2349_v2 = vpop.xlane.xlu0 %2348 }
0x1859   :  { %v2351_v3 = vmul.f32 %v2349_v2, %v2826_v10 }
0x185a   :  { %v2357_v45 = vmul.f32 0.5, %v2356_v63 }
0x185b   :  { %v2353_v46 = vadd.f32 1e-05, %v2351_v3 }
0x185c   :  { %v2358_v5 = vsub.f32 1.5, %v2357_v45 }
0x185d   :  { %2743 = vrsqrt.f32 %v2353_v46  ;;  %vm2370_vm10 = vweird.f32 %v2353_v46 }
0x185e   :  { %v2359_v6 = vmul.f32 %v2742_v57, %v2358_v5 }
0x1860   :  { %v2363_v13 = vsel %vm2362_vm6, %v2742_v57, %v2359_v6 }
0x1861   :  { %v2379_v55 = vmul.f32 %v2363_v13, %v2335_v36 }
0x1863   :  { %v2744_v62 = vpop.eup %2743  ;;  %v2382_v12 = vmul.f32 %v2381_v54, %v2379_v55 }
0x1864   :  { %v2365_v7 = vmul.f32 %v2744_v62, %v2353_v46  ;;  %vm2371_vm7 = vweird.f32 %v2744_v62 }
0x1865   :  { %vm2372_vm11 = vmor %vm2370_vm10, %vm2371_vm7  ;;  %v2385_v50 = vadd.f32 %v2384_v9, %v2382_v12 }
0x1866   :  { %v2366_v11 = vmul.f32 %v2744_v62, %v2365_v7 }
0x1867   :  { %v2393_v1 = vrot.slane %v2385_v50, 7 }
0x1868   :  { %v2367_v27 = vmul.f32 0.5, %v2366_v11 }
0x186a   :  { %v2368_v61 = vsub.f32 1.5, %v2367_v27 }
0x186c   :  { %v2369_v56 = vmul.f32 %v2744_v62, %v2368_v61 }
0x186e   :  { %v2373_v10 = vsel %vm2372_vm11, %v2744_v62, %v2369_v56 }
0x186f   :  { %v2376_v15 = vrot.slane %v2373_v10, 1 }
0x1871   :  { %v2380_v16 = vmul.f32 %v2376_v15, %v2336_v41 }
0x1873   :  { %v2383_v21 = vmul.f32 %v2381_v54, %v2380_v16 }
0x1875   :  { %v2386_v20 = vadd.f32 %v2384_v9, %v2383_v21 }
0x1877   :  { %v2394_v23 = vrot.slane %v2386_v20, 6 }
0x1879   :  { %v2396_v4 = vsel %vm2395_vm12, %v2394_v23, %v2393_v1 }
0x187a   :  { %2641 = vmatmul.msk.f32.vlgmr.msrb.gmra.mxu2 %vm30_vm0, %v2396_v4 }
0x18fd   :  { %v2416_v40 = vpop.f32.mrf.mxu2 }
0x18fe   :  { %2419 = vst [vmem:[#allocation2] sm:$0x3] %v2416_v40 }
0x18ff   :  { %2430 = dma.vmem_to_hbm [thread:$0]  %s2426_s21, 32, %s2428_s23, [#allocation3]  }
0x1900   :  { %2776 = dma.done.wait [#allocation3], 32  }
0x1901   :  { %2777 = vsyncadd [#allocation3], 4294967264 }
0x1902   :  { %2435 = vsyncpa [#allocation3], 1 }

</bundles_post_ra>
